<compile_context>
chip_gen: v7x
topology: tpu7x:2x2x1
jax: 0.10.0
libtpu: 0.0.40
codegen_flags: <defaults>
</compile_context>

<pallas_src>
import functools
import jax
import jax.numpy as jnp
from jax import lax
from jax.experimental import pallas as pl
from jax.experimental.pallas import tpu as pltpu


def _round_up(x, m):
    return (x + m - 1) // m * m


def _choose_tm(m, k_dim):
    """Lane-tile size for the (OC_pad, M) output: multiple of 128, VMEM-bounded."""
    m_pad = _round_up(m, 128)
    if m_pad <= 256:
        return m_pad
    # split M so there are >= 2 grid steps (megacore sharding) but cap the tile at 2048
    tm = min(2048, _round_up((m_pad + 1) // 2, 128))
    # keep each (K, TM) bf16 patch buffer under ~2 MiB (double-buffered by Pallas)
    budget = max(128, (2 * 1024 * 1024) // max(k_dim, 1) // 128 * 128)
    return min(tm, budget)


# ---------------------------------------------------------------------------
# Pallas kernel: fused (im2col-matmul) conv + folded-BN shift + LeakyReLU
#   out(OC_pad, TM) = W(OC_pad, K) @ P(K, TM) ; M on lanes => dense stores.
# ---------------------------------------------------------------------------
def _fused_conv_kernel(w_ref, p_ref, b_ref, o_ref, *, negative_slope, apply_act):
    acc = jnp.dot(w_ref[...], p_ref[...], preferred_element_type=jnp.float32)
    acc = acc + b_ref[...]                       # per-output-channel shift / bias (f32)
    if apply_act:
        acc = jnp.where(acc >= 0.0, acc, negative_slope * acc)   # LeakyReLU(0.2)
    o_ref[...] = acc.astype(o_ref.dtype)


def fused_conv_matmul(w_mat, patches, shift, *, apply_act, out_dtype,
                      negative_slope=0.2):
    """w_mat: (OCp, K) bf16, patches: (K, M) bf16, shift: (OCp, 1) f32 -> (OCp, M)."""
    oc_pad, k_dim = w_mat.shape
    m = patches.shape[1]
    tm = _choose_tm(m, k_dim)
    grid = pl.cdiv(m, tm)

    return pl.pallas_call(
        functools.partial(_fused_conv_kernel,
                          negative_slope=negative_slope, apply_act=apply_act),
        out_shape=jax.ShapeDtypeStruct((oc_pad, m), out_dtype),
        grid_spec=pltpu.PrefetchScalarGridSpec(
            num_scalar_prefetch=0,
            grid=(grid,),
            in_specs=[
                pl.BlockSpec((oc_pad, k_dim), lambda i: (0, 0)),  # folded weights (resident)
                pl.BlockSpec((k_dim, tm), lambda i: (0, i)),      # patch tile, M on lanes
                pl.BlockSpec((oc_pad, 1), lambda i: (0, 0)),      # per-channel shift (resident)
            ],
            out_specs=pl.BlockSpec((oc_pad, tm), lambda i: (0, i)),
        ),
        compiler_params=pltpu.CompilerParams(dimension_semantics=("parallel",)),
    )(w_mat, patches, shift)


# ---------------------------------------------------------------------------
# Plain-JAX glue: channel-major im2col + layer plumbing (no per-layer transposes)
# ---------------------------------------------------------------------------
def im2col_cnhw(x, kh, kw, stride):
    """x: (C, N, H, W) -> patches (C*KH*KW, N*OH*OW).

    K index order = (c, kh, kw), matching torch weight.reshape(OC, -1)."""
    C, N, H, W = x.shape
    OH = (H - kh) // stride + 1
    OW = (W - kw) // stride + 1
    taps = []
    for i in range(kh):
        for j in range(kw):
            taps.append(x[:, :, i:i + stride * OH:stride, j:j + stride * OW:stride])
    p = jnp.stack(taps, axis=1)                      # (C, KH*KW, N, OH, OW)
    p = p.reshape(C * kh * kw, N * OH * OW)          # (K, M) — dtype of x (bf16)
    return p, OH, OW


def disc_block(h, layer):
    """Conv2d(stride, VALID) [+ folded BN + LeakyReLU unless final]. h: (C, N, H, W) bf16."""
    _, N, _, _ = h.shape
    k, s, oc, final = layer["k"], layer["s"], layer["oc"], layer["final"]
    w_mat, shift = layer["w_mat"], layer["shift"]
    k_dim = w_mat.shape[1]

    patches, OH, OW = im2col_cnhw(h, k, k, s)        # (K, M) bf16
    K, M = patches.shape
    if k_dim != K:                                   # pad contraction dim to sublane mult of 8
        patches = jnp.pad(patches, ((0, k_dim - K), (0, 0)))

    out_dtype = jnp.float32 if final else jnp.bfloat16

    if M < 64:
        # micro layer (a handful of output positions): a pallas launch is pure overhead
        acc = jnp.dot(w_mat, patches, preferred_element_type=jnp.float32) + shift
        out = acc if final else jnp.where(acc >= 0.0, acc, 0.2 * acc)
        out = out.astype(out_dtype)
    else:
        out = fused_conv_matmul(w_mat, patches, shift,
                                apply_act=not final, out_dtype=out_dtype)

    return out[:oc].reshape(oc, N, OH, OW)           # stay channel-major for the next layer


def init_params(key, im_chan=1, hidden_dim=8):
    # (in_ch, out_ch, kernel, stride, final_layer) — mirrors Discriminator.__init__
    cfg = [
        (im_chan,        hidden_dim,     4, 2, False),
        (hidden_dim,     hidden_dim * 2, 3, 2, False),
        (hidden_dim * 2, hidden_dim * 4, 3, 2, False),
        (hidden_dim * 4, hidden_dim * 4, 3, 2, False),
        (hidden_dim * 4, hidden_dim * 8, 3, 2, False),
        (hidden_dim * 8, hidden_dim,     4, 1, False),
        (hidden_dim,     1,              3, 2, True),
    ]
    eps = 1e-5
    layers, ref_layers = [], []
    for (ic, oc, k, s, final) in cfg:
        key, wk, gk, bk, mk, vk = jax.random.split(key, 6)
        w = 0.05 * jax.random.normal(wk, (oc, ic, k, k), jnp.float32)
        if not final:
            gamma = 1.0 + 0.1 * jax.random.normal(gk, (oc,), jnp.float32)
            beta = 0.1 * jax.random.normal(bk, (oc,), jnp.float32)
            rmean = 0.1 * jax.random.normal(mk, (oc,), jnp.float32)
            rvar = 1.0 + 0.1 * jax.random.uniform(vk, (oc,), jnp.float32)
            scale = gamma / jnp.sqrt(rvar + eps)      # fold inference BN into the conv
            shift = beta - rmean * scale
        else:
            scale = jnp.ones((oc,), jnp.float32)
            shift = 0.01 * jax.random.normal(bk, (oc,), jnp.float32)  # conv bias
        K = ic * k * k
        k_dim = _round_up(K, 8)                       # sublane alignment only (see header)
        oc_pad = _round_up(oc, 16)                    # clean bf16 output sublane packing
        w_mat = w.reshape(oc, K) * scale[:, None]
        w_mat = jnp.pad(w_mat, ((0, oc_pad - oc), (0, k_dim - K))).astype(jnp.bfloat16)
        shift_col = jnp.pad(shift, (0, oc_pad - oc)).reshape(oc_pad, 1).astype(jnp.float32)
        layers.append(dict(w_mat=w_mat, shift=shift_col, k=k, s=s, oc=oc, final=final))
        ref_layers.append(dict(w=w, scale=scale, shift=shift, s=s, final=final))
    return layers, ref_layers


def discriminator_forward(x_nchw, layers):
    n = x_nchw.shape[0]
    # single boundary transpose + cast -> (C, N, H, W) bf16
    h = jnp.transpose(x_nchw, (1, 0, 2, 3)).astype(jnp.bfloat16)
    for layer in layers:
        h = disc_block(h, layer)
    # (OC, N, OH, OW) -> (N, OC*OH*OW)  ==  disc_pred.view(len(disc_pred), -1)
    return jnp.transpose(h, (1, 0, 2, 3)).reshape(n, -1).astype(jnp.float32)


# ---------------------------------------------------------------------------
# Pure-JAX f32 reference (lax.conv) for a correctness check of the kernel path.
# ---------------------------------------------------------------------------
def reference_forward(x, ref_layers):
    h = x
    for L in ref_layers:
        y = lax.conv_general_dilated(h, L["w"], (L["s"], L["s"]), "VALID",
                                     dimension_numbers=("NCHW", "OIHW", "NCHW"))
        y = y * L["scale"][None, :, None, None] + L["shift"][None, :, None, None]
        if not L["final"]:
            y = jnp.where(y >= 0.0, y, 0.2 * y)
        h = y
    return h.reshape(h.shape[0], -1)


# ---------------------------------------------------------------------------
if __name__ == "__main__":
    key = jax.random.PRNGKey(0)
    pkey, xkey = jax.random.split(key)

    # 224x224 is the minimum spatial size that survives the 7 VALID strided convs
    # (224 -> 111 -> 55 -> 27 -> 13 -> 6 -> 3 -> 1).  hidden_dim kept small (8).
    N, C, H, W = 2, 1, 224, 224
    x = jax.random.normal(xkey, (N, C, H, W), jnp.float32)

    layers, ref_layers = init_params(pkey, im_chan=C, hidden_dim=8)
    fwd = jax.jit(functools.partial(discriminator_forward, layers=layers))

    out = jax.block_until_ready(fwd(x))
    assert out.shape == (N, 1), out.shape
    assert bool(jnp.all(jnp.isfinite(out)))

    ref = jax.block_until_ready(
        jax.jit(functools.partial(reference_forward, ref_layers=ref_layers))(x))
    max_err = float(jnp.max(jnp.abs(out - ref)))
    tol = 0.02 + 0.05 * float(jnp.max(jnp.abs(ref)))   # bf16-matmul vs f32-conv tolerance
    assert max_err < tol, (max_err, tol)

    print("KERNEL_OK")
</pallas_src>

<mosaic_0001>
module attributes {stable_mosaic.version = 11 : i64} {
  func.func @_fused_conv_kernel(%arg0: i32, %arg1: memref<16x16xbf16, #tpu.memory_space<vmem>>, %arg2: memref<16x2048xbf16, #tpu.memory_space<vmem>>, %arg3: memref<16x1xf32, #tpu.memory_space<vmem>>, %arg4: memref<16x2048xbf16, #tpu.memory_space<vmem>>) attributes {dimension_semantics = [#tpu.dimension_semantics<parallel>], iteration_bounds = array<i64: 13>, scalar_prefetch = 0 : i64, scratch_operands = 0 : i64, tpu.core_type = #tpu.core_type<tc>, window_params = [{pipeline_mode = #tpu.pipeline_mode<synchronous>, transform_indices = @transform_0, window_bounds = array<i64: 16, 16>}, {transform_indices = @transform_1, window_bounds = array<i64: 16, 2048>}, {pipeline_mode = #tpu.pipeline_mode<synchronous>, transform_indices = @transform_2, window_bounds = array<i64: 16, 1>}, {transform_indices = @transform_3, window_bounds = array<i64: 16, 2048>}]} {
    %c0 = arith.constant 0 : index
    %c0_0 = arith.constant 0 : index
    %0 = vector.load %arg1[%c0, %c0_0] : memref<16x16xbf16, #tpu.memory_space<vmem>>, vector<16x16xbf16>
    %c0_1 = arith.constant 0 : index
    %c0_2 = arith.constant 0 : index
    %1 = vector.load %arg2[%c0_1, %c0_2] : memref<16x2048xbf16, #tpu.memory_space<vmem>>, vector<16x2048xbf16>
    %cst = arith.constant dense<0.000000e+00> : vector<16x2048xf32>
    %2 = tpu.matmul %0, %1, %cst {dimension_numbers = #tpu.dot_dimension_numbers<[1], [0], [0], [1], [0, 0, 1, 1], [], []>} : vector<16x16xbf16>, vector<16x2048xbf16>, vector<16x2048xf32> -> vector<16x2048xf32>
    %c0_3 = arith.constant 0 : index
    %c0_4 = arith.constant 0 : index
    %3 = vector.load %arg3[%c0_3, %c0_4] : memref<16x1xf32, #tpu.memory_space<vmem>>, vector<16x1xf32>
    %4 = vector.broadcast %3 : vector<16x1xf32> to vector<16x2048xf32>
    %5 = arith.addf %2, %4 : vector<16x2048xf32>
    %cst_5 = arith.constant 0.000000e+00 : f32
    %6 = vector.broadcast %cst_5 : f32 to vector<16x2048xf32>
    %7 = arith.cmpf oge, %5, %6 : vector<16x2048xf32>
    %cst_6 = arith.constant 2.000000e-01 : f32
    %8 = vector.broadcast %cst_6 : f32 to vector<16x2048xf32>
    %9 = arith.mulf %8, %5 : vector<16x2048xf32>
    %10 = arith.select %7, %5, %9 : vector<16x2048xi1>, vector<16x2048xf32>
    %11 = arith.truncf %10 : vector<16x2048xf32> to vector<16x2048xbf16>
    %c0_7 = arith.constant 0 : index
    %c0_8 = arith.constant 0 : index
    %12 = vector.load %arg4[%c0_7, %c0_8] : memref<16x2048xbf16, #tpu.memory_space<vmem>>, vector<16x2048xbf16>
    tpu.vector_store %arg4[%c0_7, %c0_8], %11 {strides = array<i32>} : memref<16x2048xbf16, #tpu.memory_space<vmem>>, vector<16x2048xbf16>,
    return
  }
  func.func @transform_0(%arg0: i32) -> (i32, i32) {
    %c0_i32 = arith.constant 0 : i32
    %c0_i32_0 = arith.constant 0 : i32
    %c0_i32_1 = arith.constant 0 : i32
    return %c0_i32, %c0_i32_0 : i32, i32
  }
  func.func @transform_1(%arg0: i32) -> (i32, i32) {
    %c0_i32 = arith.constant 0 : i32
    %c0_i32_0 = arith.constant 0 : i32
    return %c0_i32, %arg0 : i32, i32
  }
  func.func @transform_2(%arg0: i32) -> (i32, i32) {
    %c0_i32 = arith.constant 0 : i32
    %c0_i32_0 = arith.constant 0 : i32
    %c0_i32_1 = arith.constant 0 : i32
    return %c0_i32, %c0_i32_0 : i32, i32
  }
  func.func @transform_3(%arg0: i32) -> (i32, i32) {
    %c0_i32 = arith.constant 0 : i32
    %c0_i32_0 = arith.constant 0 : i32
    return %c0_i32, %arg0 : i32, i32
  }
}

module attributes {stable_mosaic.version = 11 : i64} {
  func.func @_fused_conv_kernel(%arg0: i32, %arg1: memref<16x72xbf16, #tpu.memory_space<vmem>>, %arg2: memref<72x2048xbf16, #tpu.memory_space<vmem>>, %arg3: memref<16x1xf32, #tpu.memory_space<vmem>>, %arg4: memref<16x2048xbf16, #tpu.memory_space<vmem>>) attributes {dimension_semantics = [#tpu.dimension_semantics<parallel>], iteration_bounds = array<i64: 3>, scalar_prefetch = 0 : i64, scratch_operands = 0 : i64, tpu.core_type = #tpu.core_type<tc>, window_params = [{pipeline_mode = #tpu.pipeline_mode<synchronous>, transform_indices = @transform_0, window_bounds = array<i64: 16, 72>}, {transform_indices = @transform_1, window_bounds = array<i64: 72, 2048>}, {pipeline_mode = #tpu.pipeline_mode<synchronous>, transform_indices = @transform_2, window_bounds = array<i64: 16, 1>}, {transform_indices = @transform_3, window_bounds = array<i64: 16, 2048>}]} {
    %c0 = arith.constant 0 : index
    %c0_0 = arith.constant 0 : index
    %0 = vector.load %arg1[%c0, %c0_0] : memref<16x72xbf16, #tpu.memory_space<vmem>>, vector<16x72xbf16>
    %c0_1 = arith.constant 0 : index
    %c0_2 = arith.constant 0 : index
    %1 = vector.load %arg2[%c0_1, %c0_2] : memref<72x2048xbf16, #tpu.memory_space<vmem>>, vector<72x2048xbf16>
    %cst = arith.constant dense<0.000000e+00> : vector<16x2048xf32>
    %2 = tpu.matmul %0, %1, %cst {dimension_numbers = #tpu.dot_dimension_numbers<[1], [0], [0], [1], [0, 0, 1, 1], [], []>} : vector<16x72xbf16>, vector<72x2048xbf16>, vector<16x2048xf32> -> vector<16x2048xf32>
    %c0_3 = arith.constant 0 : index
    %c0_4 = arith.constant 0 : index
    %3 = vector.load %arg3[%c0_3, %c0_4] : memref<16x1xf32, #tpu.memory_space<vmem>>, vector<16x1xf32>
    %4 = vector.broadcast %3 : vector<16x1xf32> to vector<16x2048xf32>
    %5 = arith.addf %2, %4 : vector<16x2048xf32>
    %cst_5 = arith.constant 0.000000e+00 : f32
    %6 = vector.broadcast %cst_5 : f32 to vector<16x2048xf32>
    %7 = arith.cmpf oge, %5, %6 : vector<16x2048xf32>
    %cst_6 = arith.constant 2.000000e-01 : f32
    %8 = vector.broadcast %cst_6 : f32 to vector<16x2048xf32>
    %9 = arith.mulf %8, %5 : vector<16x2048xf32>
    %10 = arith.select %7, %5, %9 : vector<16x2048xi1>, vector<16x2048xf32>
    %11 = arith.truncf %10 : vector<16x2048xf32> to vector<16x2048xbf16>
    %c0_7 = arith.constant 0 : index
    %c0_8 = arith.constant 0 : index
    %12 = vector.load %arg4[%c0_7, %c0_8] : memref<16x2048xbf16, #tpu.memory_space<vmem>>, vector<16x2048xbf16>
    tpu.vector_store %arg4[%c0_7, %c0_8], %11 {strides = array<i32>} : memref<16x2048xbf16, #tpu.memory_space<vmem>>, vector<16x2048xbf16>,
    return
  }
  func.func @transform_0(%arg0: i32) -> (i32, i32) {
    %c0_i32 = arith.constant 0 : i32
    %c0_i32_0 = arith.constant 0 : i32
    %c0_i32_1 = arith.constant 0 : i32
    return %c0_i32, %c0_i32_0 : i32, i32
  }
  func.func @transform_1(%arg0: i32) -> (i32, i32) {
    %c0_i32 = arith.constant 0 : i32
    %c0_i32_0 = arith.constant 0 : i32
    return %c0_i32, %arg0 : i32, i32
  }
  func.func @transform_2(%arg0: i32) -> (i32, i32) {
    %c0_i32 = arith.constant 0 : i32
    %c0_i32_0 = arith.constant 0 : i32
    %c0_i32_1 = arith.constant 0 : i32
    return %c0_i32, %c0_i32_0 : i32, i32
  }
  func.func @transform_3(%arg0: i32) -> (i32, i32) {
    %c0_i32 = arith.constant 0 : i32
    %c0_i32_0 = arith.constant 0 : i32
    return %c0_i32, %arg0 : i32, i32
  }
}

module attributes {stable_mosaic.version = 11 : i64} {
  func.func @_fused_conv_kernel(%arg0: i32, %arg1: memref<32x144xbf16, #tpu.memory_space<vmem>>, %arg2: memref<144x768xbf16, #tpu.memory_space<vmem>>, %arg3: memref<32x1xf32, #tpu.memory_space<vmem>>, %arg4: memref<32x768xbf16, #tpu.memory_space<vmem>>) attributes {dimension_semantics = [#tpu.dimension_semantics<parallel>], iteration_bounds = array<i64: 2>, scalar_prefetch = 0 : i64, scratch_operands = 0 : i64, tpu.core_type = #tpu.core_type<tc>, window_params = [{pipeline_mode = #tpu.pipeline_mode<synchronous>, transform_indices = @transform_0, window_bounds = array<i64: 32, 144>}, {transform_indices = @transform_1, window_bounds = array<i64: 144, 768>}, {pipeline_mode = #tpu.pipeline_mode<synchronous>, transform_indices = @transform_2, window_bounds = array<i64: 32, 1>}, {transform_indices = @transform_3, window_bounds = array<i64: 32, 768>}]} {
    %c0 = arith.constant 0 : index
    %c0_0 = arith.constant 0 : index
    %0 = vector.load %arg1[%c0, %c0_0] : memref<32x144xbf16, #tpu.memory_space<vmem>>, vector<32x144xbf16>
    %c0_1 = arith.constant 0 : index
    %c0_2 = arith.constant 0 : index
    %1 = vector.load %arg2[%c0_1, %c0_2] : memref<144x768xbf16, #tpu.memory_space<vmem>>, vector<144x768xbf16>
    %cst = arith.constant dense<0.000000e+00> : vector<32x768xf32>
    %2 = tpu.matmul %0, %1, %cst {dimension_numbers = #tpu.dot_dimension_numbers<[1], [0], [0], [1], [0, 0, 1, 1], [], []>} : vector<32x144xbf16>, vector<144x768xbf16>, vector<32x768xf32> -> vector<32x768xf32>
    %c0_3 = arith.constant 0 : index
    %c0_4 = arith.constant 0 : index
    %3 = vector.load %arg3[%c0_3, %c0_4] : memref<32x1xf32, #tpu.memory_space<vmem>>, vector<32x1xf32>
    %4 = vector.broadcast %3 : vector<32x1xf32> to vector<32x768xf32>
    %5 = arith.addf %2, %4 : vector<32x768xf32>
    %cst_5 = arith.constant 0.000000e+00 : f32
    %6 = vector.broadcast %cst_5 : f32 to vector<32x768xf32>
    %7 = arith.cmpf oge, %5, %6 : vector<32x768xf32>
    %cst_6 = arith.constant 2.000000e-01 : f32
    %8 = vector.broadcast %cst_6 : f32 to vector<32x768xf32>
    %9 = arith.mulf %8, %5 : vector<32x768xf32>
    %10 = arith.select %7, %5, %9 : vector<32x768xi1>, vector<32x768xf32>
    %11 = arith.truncf %10 : vector<32x768xf32> to vector<32x768xbf16>
    %c0_7 = arith.constant 0 : index
    %c0_8 = arith.constant 0 : index
    %12 = vector.load %arg4[%c0_7, %c0_8] : memref<32x768xbf16, #tpu.memory_space<vmem>>, vector<32x768xbf16>
    tpu.vector_store %arg4[%c0_7, %c0_8], %11 {strides = array<i32>} : memref<32x768xbf16, #tpu.memory_space<vmem>>, vector<32x768xbf16>,
    return
  }
  func.func @transform_0(%arg0: i32) -> (i32, i32) {
    %c0_i32 = arith.constant 0 : i32
    %c0_i32_0 = arith.constant 0 : i32
    %c0_i32_1 = arith.constant 0 : i32
    return %c0_i32, %c0_i32_0 : i32, i32
  }
  func.func @transform_1(%arg0: i32) -> (i32, i32) {
    %c0_i32 = arith.constant 0 : i32
    %c0_i32_0 = arith.constant 0 : i32
    return %c0_i32, %arg0 : i32, i32
  }
  func.func @transform_2(%arg0: i32) -> (i32, i32) {
    %c0_i32 = arith.constant 0 : i32
    %c0_i32_0 = arith.constant 0 : i32
    %c0_i32_1 = arith.constant 0 : i32
    return %c0_i32, %c0_i32_0 : i32, i32
  }
  func.func @transform_3(%arg0: i32) -> (i32, i32) {
    %c0_i32 = arith.constant 0 : i32
    %c0_i32_0 = arith.constant 0 : i32
    return %c0_i32, %arg0 : i32, i32
  }
}

module attributes {stable_mosaic.version = 11 : i64} {
  func.func @_fused_conv_kernel(%arg0: i32, %arg1: memref<32x288xbf16, #tpu.memory_space<vmem>>, %arg2: memref<288x256xbf16, #tpu.memory_space<vmem>>, %arg3: memref<32x1xf32, #tpu.memory_space<vmem>>, %arg4: memref<32x256xbf16, #tpu.memory_space<vmem>>) attributes {dimension_semantics = [#tpu.dimension_semantics<parallel>], iteration_bounds = array<i64: 2>, scalar_prefetch = 0 : i64, scratch_operands = 0 : i64, tpu.core_type = #tpu.core_type<tc>, window_params = [{pipeline_mode = #tpu.pipeline_mode<synchronous>, transform_indices = @transform_0, window_bounds = array<i64: 32, 288>}, {transform_indices = @transform_1, window_bounds = array<i64: 288, 256>}, {pipeline_mode = #tpu.pipeline_mode<synchronous>, transform_indices = @transform_2, window_bounds = array<i64: 32, 1>}, {transform_indices = @transform_3, window_bounds = array<i64: 32, 256>}]} {
    %c0 = arith.constant 0 : index
    %c0_0 = arith.constant 0 : index
    %0 = vector.load %arg1[%c0, %c0_0] : memref<32x288xbf16, #tpu.memory_space<vmem>>, vector<32x288xbf16>
    %c0_1 = arith.constant 0 : index
    %c0_2 = arith.constant 0 : index
    %1 = vector.load %arg2[%c0_1, %c0_2] : memref<288x256xbf16, #tpu.memory_space<vmem>>, vector<288x256xbf16>
    %cst = arith.constant dense<0.000000e+00> : vector<32x256xf32>
    %2 = tpu.matmul %0, %1, %cst {dimension_numbers = #tpu.dot_dimension_numbers<[1], [0], [0], [1], [0, 0, 1, 1], [], []>} : vector<32x288xbf16>, vector<288x256xbf16>, vector<32x256xf32> -> vector<32x256xf32>
    %c0_3 = arith.constant 0 : index
    %c0_4 = arith.constant 0 : index
    %3 = vector.load %arg3[%c0_3, %c0_4] : memref<32x1xf32, #tpu.memory_space<vmem>>, vector<32x1xf32>
    %4 = vector.broadcast %3 : vector<32x1xf32> to vector<32x256xf32>
    %5 = arith.addf %2, %4 : vector<32x256xf32>
    %cst_5 = arith.constant 0.000000e+00 : f32
    %6 = vector.broadcast %cst_5 : f32 to vector<32x256xf32>
    %7 = arith.cmpf oge, %5, %6 : vector<32x256xf32>
    %cst_6 = arith.constant 2.000000e-01 : f32
    %8 = vector.broadcast %cst_6 : f32 to vector<32x256xf32>
    %9 = arith.mulf %8, %5 : vector<32x256xf32>
    %10 = arith.select %7, %5, %9 : vector<32x256xi1>, vector<32x256xf32>
    %11 = arith.truncf %10 : vector<32x256xf32> to vector<32x256xbf16>
    %c0_7 = arith.constant 0 : index
    %c0_8 = arith.constant 0 : index
    %12 = vector.load %arg4[%c0_7, %c0_8] : memref<32x256xbf16, #tpu.memory_space<vmem>>, vector<32x256xbf16>
    tpu.vector_store %arg4[%c0_7, %c0_8], %11 {strides = array<i32>} : memref<32x256xbf16, #tpu.memory_space<vmem>>, vector<32x256xbf16>,
    return
  }
  func.func @transform_0(%arg0: i32) -> (i32, i32) {
    %c0_i32 = arith.constant 0 : i32
    %c0_i32_0 = arith.constant 0 : i32
    %c0_i32_1 = arith.constant 0 : i32
    return %c0_i32, %c0_i32_0 : i32, i32
  }
  func.func @transform_1(%arg0: i32) -> (i32, i32) {
    %c0_i32 = arith.constant 0 : i32
    %c0_i32_0 = arith.constant 0 : i32
    return %c0_i32, %arg0 : i32, i32
  }
  func.func @transform_2(%arg0: i32) -> (i32, i32) {
    %c0_i32 = arith.constant 0 : i32
    %c0_i32_0 = arith.constant 0 : i32
    %c0_i32_1 = arith.constant 0 : i32
    return %c0_i32, %c0_i32_0 : i32, i32
  }
  func.func @transform_3(%arg0: i32) -> (i32, i32) {
    %c0_i32 = arith.constant 0 : i32
    %c0_i32_0 = arith.constant 0 : i32
    return %c0_i32, %arg0 : i32, i32
  }
}

module attributes {stable_mosaic.version = 11 : i64} {
  func.func @_fused_conv_kernel(%arg0: i32, %arg1: memref<64x288xbf16, #tpu.memory_space<vmem>>, %arg2: memref<288x128xbf16, #tpu.memory_space<vmem>>, %arg3: memref<64x1xf32, #tpu.memory_space<vmem>>, %arg4: memref<64x128xbf16, #tpu.memory_space<vmem>>) attributes {dimension_semantics = [#tpu.dimension_semantics<parallel>], iteration_bounds = array<i64: 1>, scalar_prefetch = 0 : i64, scratch_operands = 0 : i64, tpu.core_type = #tpu.core_type<tc>, window_params = [{pipeline_mode = #tpu.pipeline_mode<synchronous>, transform_indices = @transform_0, window_bounds = array<i64: 64, 288>}, {transform_indices = @transform_1, window_bounds = array<i64: 288, 128>}, {pipeline_mode = #tpu.pipeline_mode<synchronous>, transform_indices = @transform_2, window_bounds = array<i64: 64, 1>}, {transform_indices = @transform_3, window_bounds = array<i64: 64, 128>}]} {
    %c0 = arith.constant 0 : index
    %c0_0 = arith.constant 0 : index
    %0 = vector.load %arg1[%c0, %c0_0] : memref<64x288xbf16, #tpu.memory_space<vmem>>, vector<64x288xbf16>
    %c0_1 = arith.constant 0 : index
    %c0_2 = arith.constant 0 : index
    %1 = vector.load %arg2[%c0_1, %c0_2] : memref<288x128xbf16, #tpu.memory_space<vmem>>, vector<288x128xbf16>
    %cst = arith.constant dense<0.000000e+00> : vector<64x128xf32>
    %2 = tpu.matmul %0, %1, %cst {dimension_numbers = #tpu.dot_dimension_numbers<[1], [0], [0], [1], [0, 0, 1, 1], [], []>} : vector<64x288xbf16>, vector<288x128xbf16>, vector<64x128xf32> -> vector<64x128xf32>
    %c0_3 = arith.constant 0 : index
    %c0_4 = arith.constant 0 : index
    %3 = vector.load %arg3[%c0_3, %c0_4] : memref<64x1xf32, #tpu.memory_space<vmem>>, vector<64x1xf32>
    %4 = vector.broadcast %3 : vector<64x1xf32> to vector<64x128xf32>
    %5 = arith.addf %2, %4 : vector<64x128xf32>
    %cst_5 = arith.constant 0.000000e+00 : f32
    %6 = vector.broadcast %cst_5 : f32 to vector<64x128xf32>
    %7 = arith.cmpf oge, %5, %6 : vector<64x128xf32>
    %cst_6 = arith.constant 2.000000e-01 : f32
    %8 = vector.broadcast %cst_6 : f32 to vector<64x128xf32>
    %9 = arith.mulf %8, %5 : vector<64x128xf32>
    %10 = arith.select %7, %5, %9 : vector<64x128xi1>, vector<64x128xf32>
    %11 = arith.truncf %10 : vector<64x128xf32> to vector<64x128xbf16>
    %c0_7 = arith.constant 0 : index
    %c0_8 = arith.constant 0 : index
    %12 = vector.load %arg4[%c0_7, %c0_8] : memref<64x128xbf16, #tpu.memory_space<vmem>>, vector<64x128xbf16>
    tpu.vector_store %arg4[%c0_7, %c0_8], %11 {strides = array<i32>} : memref<64x128xbf16, #tpu.memory_space<vmem>>, vector<64x128xbf16>,
    return
  }
  func.func @transform_0(%arg0: i32) -> (i32, i32) {
    %c0_i32 = arith.constant 0 : i32
    %c0_i32_0 = arith.constant 0 : i32
    %c0_i32_1 = arith.constant 0 : i32
    return %c0_i32, %c0_i32_0 : i32, i32
  }
  func.func @transform_1(%arg0: i32) -> (i32, i32) {
    %c0_i32 = arith.constant 0 : i32
    %c0_i32_0 = arith.constant 0 : i32
    return %c0_i32, %arg0 : i32, i32
  }
  func.func @transform_2(%arg0: i32) -> (i32, i32) {
    %c0_i32 = arith.constant 0 : i32
    %c0_i32_0 = arith.constant 0 : i32
    %c0_i32_1 = arith.constant 0 : i32
    return %c0_i32, %c0_i32_0 : i32, i32
  }
  func.func @transform_3(%arg0: i32) -> (i32, i32) {
    %c0_i32 = arith.constant 0 : i32
    %c0_i32_0 = arith.constant 0 : i32
    return %c0_i32, %arg0 : i32, i32
  }
}

</mosaic_0001>

<bundles_post_ra>
// kernel: discriminator_forward.5
= control target key start
LH: loop header
LB: loop body
LE: loop exit
PB: predicated region body
PF: predicated region fallthrough
CT: control target
= control target key end

     0   :  { %s2630_s12 = smov 0   ;;  %s2632_s13 = smov 0   ;;  %s3496_s0 = inlined_call_operand.vmem [shape: bf16[16,16], index: 0, kind: input, shape index: {}]   ;;  %s3497_s1 = inlined_call_operand.vmem [shape: bf16[16,24642], index: 1, kind: input, shape index: {}]   ;;  %s3498_s2 = inlined_call_operand.vmem [shape: f32[16,1], index: 2, kind: input, shape index: {}]   ;;  %s3499_s3 = inlined_call_operand.vmem [shape: bf16[16,24642], index: 3, kind: output, shape index: {}]  }
   0x1   :  { %s2634_s14 = smov 0  }
   0x2 LB: > { %s2646_s15 = sadd.s32 4294967295, %s2475_s14   ;;  %s2649_s16 = sadd.s32 1, %s2475_s14   ;;  %s2475_s14 = sphi %s2634_s14, %s3525_s14   ;;  %s2471_s13 = sphi %s2632_s13, %s3524_s13   ;;  %s2467_s12 = sphi %s2630_s12, %s3523_s12  }
   0x3   : > { %s38_s17 = ssub.s32 %s2475_s14, %s2649_s16  ;;  %s41_s18 = sadd.s32 1, %s2471_s13 }
   0x4   : > { %p39_p0 = scmp.eq.s32.totalorder %s38_s17, 0  ;;  %p48_p1 = scmp.ne.s32.totalorder %s2471_s13, %s2467_s12 }
   0x5   : > { %p49_p2 = scmp.eq.s32.totalorder %s2475_s14, 0  ;;  %p99_p3 = scmp.eq.s32.totalorder %s2646_s15, 12 }
   0x6   : > { %s2659_s19 = scalar_select %p39_p0, %s2471_s13, %s41_s18  }
   0x7   : > { %p50_p4 = por %p49_p2, %p48_p1  ;;  %p2661_p5 = por %p99_p3, %p48_p1 }
   0x8   : > { %p1911_p6 = scmp.ge.s32.totalorder %s2475_s14, 13 }
   0xa   : > { %127 = sbr.rel (%p1911_p6) target bundleno = 166 (0xa6), region = 24 }
  0x11   : > { %130 = sbr.rel (!%p50_p4) target bundleno = 166 (0xa6), region = 28  ;;  %s132_s21 = sand.u32 (%p50_p4), 1, %s2471_s13  }
  0x12   : > { %s1913_s22 = sshll.u32 (%p50_p4), %s2475_s14, 4  ;;  %s1912_s23 = sshll.u32 (%p50_p4), %s132_s21, 7 }
  0x13   : > { %s136_s24 = ssub.s32 (%p50_p4), 193, %s1913_s22  ;;  %s2012_s25 = sshll.u32 (%p50_p4), %s2475_s14, 6 }
  0x14   : > { %p137_p7 = scmp.lt.s32.totalorder (%p50_p4), %s136_s24, 16  ;;  %s2672_s28 = scalar_lea.vmem (%p50_p4), %s3497_s1, %s2012_s25  }
  0x15   : > { %s2676_s4 = scalar_lea.vmem (%p50_p4), [#allocation2], %s1912_s23  }
  0x18   : > { %s3527_s24 = smov (!%p137_p7, %s136_s24), 16 }
  0x19   : > { %s1914_s29 = sshll.u32 %s3527_s24, 7  ;;  %s2674_s30 = sshll.u32 %s3527_s24, 2 }
  0x1a   : > { %p1918_p8 = scmp.eq.s32.totalorder %s1914_s29, 0 }
  0x1b   : > { %p147_p9 = scmp.lt.u32.totalorder (!%p1918_p8), %s2674_s30, 8 }
  0x1c   : > { %146 = sbr.rel (%p1918_p8) target bundleno = 166 (0xa6), region = 32 }
  0x23   : > { %150 = sbr.rel (%p147_p9) target bundleno = 157 (0x9d), region = 36  ;;  %s2680_s5 = sand.u32 (!%p147_p9), 7, %s2674_s30  }
  0x24   : > { %p168_p10 = scmp.eq.s32.totalorder (!%p147_p9), %s2680_s5, 0  ;;  %p1919_p11 = scmp.ne.s32.totalorder (!%p147_p9), %s2680_s5, 0 }
  0x2a   : > { %171 = sbr.rel (%p1919_p11) target bundleno = 97 (0x61), region = 51  ;;  %s172_s6 = sshrl.u32 (!%p1919_p11), %s2674_s30, 3 }
  0x2b   : > { %s2687_s7 = sshrl.u32 (!%p1919_p11), %s172_s6, 5 }
  0x2c   : > { %p1920_p12 = scmp.le.s32.totalorder (!%p1919_p11), %s2687_s7, 0 }
  0x31   : > { %1781 = sbr.rel (%p1920_p12) target bundleno = 77 (0x4d), region = 229  ;;  %s3501_s8 = smov (!%p1920_p12), %s2676_s4 }
  0x32   : > { %s3502_s9 = smov (!%p1920_p12), %s2672_s28  ;;  %s2696_s10 = smov (!%p1920_p12), 0  }
  0x33   : > { %s2698_s11 = smov (!%p1920_p12), 0  }
  0x38 LB: >> { %v185_v0 = vld [vmem:[%s2483_s9] sm:$0xff]  ;;  %v187_v1 = vld [vmem:[%s2483_s9 + $0x8] sm:$0xff]  ;;  %v189_v2 = vld [vmem:[%s2483_s9 + $0x10] sm:$0xff]  ;;  %s313_s17 = sadd.s32 1, %s2487_s10  ;;  %s179_s11 = sadd.s32 1, %s2491_s11   ;;  %s2491_s11 = sphi %s2698_s11, %s179_s11   ;;  %s2487_s10 = sphi %s2696_s10, %s3505_s10   ;;  %s2483_s9 = sphi %s3502_s9, %s3504_s9   ;;  %s2479_s8 = sphi %s3501_s8, %s3503_s8  }
  0x39   : >> { %186 = vst [vmem:[%s2479_s8] sm:$0xff] %v185_v0  ;;  %188 = vst [vmem:[%s2479_s8 + $0x8] sm:$0xff] %v187_v1  ;;  %v191_v3 = vld [vmem:[%s2483_s9 + $0x18] sm:$0xff]  ;;  %v193_v4 = vld [vmem:[%s2483_s9 + $0x20] sm:$0xff]  ;;  %p314_p13 = scmp.ge.s32.totalorder %s313_s17, %s2687_s7  ;;  %p178_p0 = scmp.ge.s32.totalorder %s179_s11, %s2687_s7 }
  0x3a   : >> { %190 = vst [vmem:[%s2479_s8 + $0x10] sm:$0xff] %v189_v2  ;;  %v195_v5 = vld [vmem:[%s2483_s9 + $0x28] sm:$0xff]  ;;  %192 = vst [vmem:[%s2479_s8 + $0x18] sm:$0xff] %v191_v3  ;;  %v197_v6 = vld [vmem:[%s2483_s9 + $0x30] sm:$0xff] }
  0x3b   : >> { %194 = vst [vmem:[%s2479_s8 + $0x20] sm:$0xff] %v193_v4  ;;  %196 = vst [vmem:[%s2479_s8 + $0x28] sm:$0xff] %v195_v5  ;;  %v199_v7 = vld [vmem:[%s2483_s9 + $0x38] sm:$0xff]  ;;  %v249_v8 = vld [vmem:[%s2483_s9 + $0x304] sm:$0xff]  ;;  %s3529_s17 = smov (%p314_p13, %s313_s17), 0 }
  0x3c   : >> { %198 = vst [vmem:[%s2479_s8 + $0x30] sm:$0xff] %v197_v6  ;;  %200 = vst [vmem:[%s2479_s8 + $0x38] sm:$0xff] %v199_v7  ;;  %v251_v9 = vld [vmem:[%s2483_s9 + $0x30c] sm:$0xff]  ;;  %v253_v10 = vld [vmem:[%s2483_s9 + $0x314] sm:$0xff]  ;;  %s1921_s18 = sshll.u32 %s3529_s17, 8  ;;  %s3505_s10 = smov %s3529_s17 }
  0x3d   : >> { %250 = vst [vmem:[%s2479_s8 + $0x40] sm:$0xff] %v249_v8  ;;  %v255_v11 = vld [vmem:[%s2483_s9 + $0x31c] sm:$0xff]  ;;  %252 = vst [vmem:[%s2479_s8 + $0x48] sm:$0xff] %v251_v9  ;;  %v257_v12 = vld [vmem:[%s2483_s9 + $0x324] sm:$0xff]  ;;  %s2769_s21 = scalar_lea.vmem %s2672_s28, %s1921_s18   ;;  %s2772_s22 = scalar_lea.vmem %s2676_s4, %s1921_s18 [#allocation2]  }
  0x3e   : >> { %254 = vst [vmem:[%s2479_s8 + $0x50] sm:$0xff] %v253_v10  ;;  %256 = vst [vmem:[%s2479_s8 + $0x58] sm:$0xff] %v255_v11  ;;  %v259_v13 = vld [vmem:[%s2483_s9 + $0x32c] sm:$0xff]  ;;  %v261_v14 = vld [vmem:[%s2483_s9 + $0x334] sm:$0xff] }
  0x3f   : >> { %258 = vst [vmem:[%s2479_s8 + $0x60] sm:$0xff] %v257_v12  ;;  %260 = vst [vmem:[%s2479_s8 + $0x68] sm:$0xff] %v259_v13  ;;  %v263_v15 = vld [vmem:[%s2483_s9 + $0x33c] sm:$0xff]  ;;  %v265_v16 = vld [vmem:[%s2483_s9 + $0x344] sm:$0xff] }
  0x40   : >> { %262 = vst [vmem:[%s2479_s8 + $0x70] sm:$0xff] %v261_v14  ;;  %v267_v17 = vld [vmem:[%s2483_s9 + $0x34c] sm:$0xff]  ;;  %264 = vst [vmem:[%s2479_s8 + $0x78] sm:$0xff] %v263_v15  ;;  %v269_v18 = vld [vmem:[%s2483_s9 + $0x354] sm:$0xff] }
  0x41   : >> { %266 = vst [vmem:[%s2479_s8 + $0x80] sm:$0xff] %v265_v16  ;;  %268 = vst [vmem:[%s2479_s8 + $0x88] sm:$0xff] %v267_v17  ;;  %v271_v19 = vld [vmem:[%s2483_s9 + $0x35c] sm:$0xff]  ;;  %v273_v20 = vld [vmem:[%s2483_s9 + $0x364] sm:$0xff] }
  0x42   : >> { %270 = vst [vmem:[%s2479_s8 + $0x90] sm:$0xff] %v269_v18  ;;  %272 = vst [vmem:[%s2479_s8 + $0x98] sm:$0xff] %v271_v19  ;;  %v275_v21 = vld [vmem:[%s2483_s9 + $0x36c] sm:$0xff]  ;;  %v277_v22 = vld [vmem:[%s2483_s9 + $0x374] sm:$0xff] }
  0x43   : >> { %274 = vst [vmem:[%s2479_s8 + $0xa0] sm:$0xff] %v273_v20  ;;  %v279_v23 = vld [vmem:[%s2483_s9 + $0x37c] sm:$0xff]  ;;  %276 = vst [vmem:[%s2479_s8 + $0xa8] sm:$0xff] %v275_v21  ;;  %v281_v24 = vld [vmem:[%s2483_s9 + $0x384] sm:$0xff] }
  0x44   : >> { %278 = vst [vmem:[%s2479_s8 + $0xb0] sm:$0xff] %v277_v22  ;;  %280 = vst [vmem:[%s2479_s8 + $0xb8] sm:$0xff] %v279_v23  ;;  %v283_v25 = vld [vmem:[%s2483_s9 + $0x38c] sm:$0xff]  ;;  %v285_v26 = vld [vmem:[%s2483_s9 + $0x394] sm:$0xff] }
  0x45   : >> { %282 = vst [vmem:[%s2479_s8 + $0xc0] sm:$0xff] %v281_v24  ;;  %284 = vst [vmem:[%s2479_s8 + $0xc8] sm:$0xff] %v283_v25  ;;  %v287_v27 = vld [vmem:[%s2483_s9 + $0x39c] sm:$0xff]  ;;  %v289_v28 = vld [vmem:[%s2483_s9 + $0x3a4] sm:$0xff] }
  0x46   : >> { %286 = vst [vmem:[%s2479_s8 + $0xd0] sm:$0xff] %v285_v26  ;;  %v291_v29 = vld [vmem:[%s2483_s9 + $0x3ac] sm:$0xff]  ;;  %288 = vst [vmem:[%s2479_s8 + $0xd8] sm:$0xff] %v287_v27  ;;  %v293_v30 = vld [vmem:[%s2483_s9 + $0x3b4] sm:$0xff]  ;;  %181 = sbr.rel (!%p178_p0) target bundleno = 56 (0x38), region = 235 }
  0x47   : >> { %290 = vst [vmem:[%s2479_s8 + $0xe0] sm:$0xff] %v289_v28  ;;  %292 = vst [vmem:[%s2479_s8 + $0xe8] sm:$0xff] %v291_v29  ;;  %v295_v31 = vld [vmem:[%s2483_s9 + $0x3bc] sm:$0xff]  ;;  %v297_v32 = vld [vmem:[%s2483_s9 + $0x3c4] sm:$0xff] }
  0x48   : >> { %294 = vst [vmem:[%s2479_s8 + $0xf0] sm:$0xff] %v293_v30  ;;  %296 = vst [vmem:[%s2479_s8 + $0xf8] sm:$0xff] %v295_v31  ;;  %v299_v33 = vld [vmem:[%s2483_s9 + $0x3cc] sm:$0xff]  ;;  %v301_v34 = vld [vmem:[%s2483_s9 + $0x3d4] sm:$0xff] }
  0x49   : >> { %298 = vst [vmem:[%s2479_s8 + $0x100] sm:$0xff] %v297_v32  ;;  %v303_v35 = vld [vmem:[%s2483_s9 + $0x3dc] sm:$0xff]  ;;  %300 = vst [vmem:[%s2479_s8 + $0x108] sm:$0xff] %v299_v33  ;;  %v305_v36 = vld [vmem:[%s2483_s9 + $0x3e4] sm:$0xff] }
  0x4a   : >> { %302 = vst [vmem:[%s2479_s8 + $0x110] sm:$0xff] %v301_v34  ;;  %304 = vst [vmem:[%s2479_s8 + $0x118] sm:$0xff] %v303_v35  ;;  %v307_v37 = vld [vmem:[%s2483_s9 + $0x3ec] sm:$0xff]  ;;  %v309_v38 = vld [vmem:[%s2483_s9 + $0x3f4] sm:$0xff] }
  0x4b   : >> { %306 = vst [vmem:[%s2479_s8 + $0x120] sm:$0xff] %v305_v36  ;;  %308 = vst [vmem:[%s2479_s8 + $0x128] sm:$0xff] %v307_v37  ;;  %v311_v39 = vld [vmem:[%s2483_s9 + $0x3fc] sm:$0xff]  ;;  %s3504_s9 = smov %s2769_s21 }
  0x4c   : >> { %310 = vst [vmem:[%s2479_s8 + $0x130] sm:$0xff] %v309_v38  ;;  %312 = vst [vmem:[%s2479_s8 + $0x138] sm:$0xff] %v311_v39  ;;  %s3503_s8 = smov %s2772_s22 }
  0x4d PF: > { %s2818_s23 = sand.u32 31, %s172_s6   ;;  %s2013_s24 = sshll.u32 %s2687_s7, 12 }
  0x4e   : > { %s324_s25 = sshra.s32 %s2013_s24, 4  ;;  %p1926_p1 = scmp.le.s32.totalorder %s2818_s23, 0 }
  0x4f   : > { %s2822_s26 = scalar_lea.vmem %s2672_s28, %s324_s25   ;;  %s328_s27 = scalar_lea.vmem %s2676_s4, %s324_s25 [#allocation2]  }
  0x50   : > { %1795 = sbr.rel (%p1926_p1) target bundleno = 97 (0x61), region = 240  ;;  %s2493_s29 = smov (!%p1926_p1), %s328_s27  }
  0x51   : > { %s2497_s11 = smov (!%p1926_p1), %s2822_s26   ;;  %s2501_s17 = smov (!%p1926_p1), 0  }
  0x52   : > { %s2505_s8 = smov (!%p1926_p1), 0  }
  0x57 LB: >> { %v340_v40 = vld [vmem:[%s2499_s11] sm:$0xff]  ;;  %s344_s6 = sadd.s32 1, %s2503_s17  ;;  %s334_s8 = sadd.s32 1, %s2507_s8   ;;  %s2507_s8 = sphi %s2505_s8, %s334_s8   ;;  %s2503_s17 = sphi %s2501_s17, %s2502_s17   ;;  %s2499_s11 = sphi %s2497_s11, %s349_s11   ;;  %s2495_s29 = sphi %s2493_s29, %s350_s29  }
  0x58   : >> { %v342_v41 = vld [vmem:[%s2499_s11 + $0x304] sm:$0xff]  ;;  %341 = vst [vmem:[%s2495_s29] sm:$0xff] %v340_v40  ;;  %p345_p2 = scmp.ge.s32.totalorder %s344_s6, %s2818_s23  ;;  %p333_p3 = scmp.ge.s32.totalorder %s334_s8, %s2818_s23 }
  0x59   : >> { %343 = vst [vmem:[%s2495_s29 + $0x40] sm:$0xff] %v342_v41 }
  0x5a   : >> { %s3531_s6 = smov (%p345_p2, %s344_s6), 0  ;;  %336 = sbr.rel (!%p333_p3) target bundleno = 87 (0x57), region = 246 }
  0x5b   : >> { %s1927_s7 = sshll.u32 %s3531_s6, 3  ;;  %s2502_s17 = smov %s3531_s6  }
  0x5c   : >> { %s349_s11 = scalar_lea.vmem %s2822_s26, %s1927_s7   ;;  %s350_s29 = scalar_lea.vmem %s328_s27, %s1927_s7 [#allocation2]  }
  0x61 PF: > { %353 = sbr.rel (%p168_p10) target bundleno = 157 (0x9d), region = 69  ;;  %s355_s9 = ssub.s32 (!%p168_p10), %s2674_s30, %s2680_s5 }
  0x62   : > { %s359_s10 = sshrl.u32 (!%p168_p10), %s2674_s30, 3  ;;  %s2836_s18 = scalar_lea.vmem (!%p168_p10), %s2672_s28, %s355_s9 }
  0x63   : > { %s2839_s21 = scalar_lea.vmem (!%p168_p10), %s2676_s4, %s355_s9 [#allocation2]  ;;  %s2843_s22 = sshrl.u32 (!%p168_p10), %s359_s10, 5 }
  0x64   : > { %p1929_p4 = scmp.le.s32.totalorder (!%p168_p10), %s2843_s22, 0 }
  0x68   : > { %1809 = sbr.rel (%p1929_p4) target bundleno = 132 (0x84), region = 251  ;;  %s3506_s23 = smov (!%p1929_p4), %s2676_s4 }
  0x69   : > { %s3507_s24 = smov (!%p1929_p4), %s2672_s28  ;;  %s2852_s25 = smov (!%p1929_p4), 0  }
  0x6a   : > { %s2854_s26 = smov (!%p1929_p4), 0  }
  0x6f LB: >> { %v372_v42 = vld [vmem:[%s2515_s24] sm:$0xff]  ;;  %v374_v43 = vld [vmem:[%s2515_s24 + $0x8] sm:$0xff]  ;;  %v376_v44 = vld [vmem:[%s2515_s24 + $0x10] sm:$0xff]  ;;  %s500_s27 = sadd.s32 1, %s2519_s25  ;;  %s366_s26 = sadd.s32 1, %s2523_s26   ;;  %s2523_s26 = sphi %s2854_s26, %s366_s26   ;;  %s2519_s25 = sphi %s2852_s25, %s3510_s25   ;;  %s2515_s24 = sphi %s3507_s24, %s3509_s24   ;;  %s2511_s23 = sphi %s3506_s23, %s3508_s23  }
  0x70   : >> { %373 = vst [vmem:[%s2511_s23] sm:$0xff] %v372_v42  ;;  %375 = vst [vmem:[%s2511_s23 + $0x8] sm:$0xff] %v374_v43  ;;  %v378_v45 = vld [vmem:[%s2515_s24 + $0x18] sm:$0xff]  ;;  %v380_v46 = vld [vmem:[%s2515_s24 + $0x20] sm:$0xff]  ;;  %p501_p6 = scmp.ge.s32.totalorder %s500_s27, %s2843_s22  ;;  %p365_p7 = scmp.ge.s32.totalorder %s366_s26, %s2843_s22 }
  0x71   : >> { %377 = vst [vmem:[%s2511_s23 + $0x10] sm:$0xff] %v376_v44  ;;  %v382_v47 = vld [vmem:[%s2515_s24 + $0x28] sm:$0xff]  ;;  %379 = vst [vmem:[%s2511_s23 + $0x18] sm:$0xff] %v378_v45  ;;  %v384_v48 = vld [vmem:[%s2515_s24 + $0x30] sm:$0xff] }
  0x72   : >> { %381 = vst [vmem:[%s2511_s23 + $0x20] sm:$0xff] %v380_v46  ;;  %383 = vst [vmem:[%s2511_s23 + $0x28] sm:$0xff] %v382_v47  ;;  %v386_v49 = vld [vmem:[%s2515_s24 + $0x38] sm:$0xff]  ;;  %v436_v50 = vld [vmem:[%s2515_s24 + $0x304] sm:$0xff]  ;;  %s3533_s27 = smov (%p501_p6, %s500_s27), 0 }
  0x73   : >> { %385 = vst [vmem:[%s2511_s23 + $0x30] sm:$0xff] %v384_v48  ;;  %387 = vst [vmem:[%s2511_s23 + $0x38] sm:$0xff] %v386_v49  ;;  %v438_v51 = vld [vmem:[%s2515_s24 + $0x30c] sm:$0xff]  ;;  %v440_v52 = vld [vmem:[%s2515_s24 + $0x314] sm:$0xff]  ;;  %s1930_s29 = sshll.u32 %s3533_s27, 8  ;;  %s3510_s25 = smov %s3533_s27 }
  0x74   : >> { %437 = vst [vmem:[%s2511_s23 + $0x40] sm:$0xff] %v436_v50  ;;  %v442_v53 = vld [vmem:[%s2515_s24 + $0x31c] sm:$0xff]  ;;  %439 = vst [vmem:[%s2511_s23 + $0x48] sm:$0xff] %v438_v51  ;;  %v444_v54 = vld [vmem:[%s2515_s24 + $0x324] sm:$0xff]  ;;  %s2925_s11 = scalar_lea.vmem %s2672_s28, %s1930_s29   ;;  %s2928_s17 = scalar_lea.vmem %s2676_s4, %s1930_s29 [#allocation2]  }
  0x75   : >> { %441 = vst [vmem:[%s2511_s23 + $0x50] sm:$0xff] %v440_v52  ;;  %443 = vst [vmem:[%s2511_s23 + $0x58] sm:$0xff] %v442_v53  ;;  %v446_v55 = vld [vmem:[%s2515_s24 + $0x32c] sm:$0xff]  ;;  %v448_v56 = vld [vmem:[%s2515_s24 + $0x334] sm:$0xff] }
  0x76   : >> { %445 = vst [vmem:[%s2511_s23 + $0x60] sm:$0xff] %v444_v54  ;;  %447 = vst [vmem:[%s2511_s23 + $0x68] sm:$0xff] %v446_v55  ;;  %v450_v57 = vld [vmem:[%s2515_s24 + $0x33c] sm:$0xff]  ;;  %v452_v58 = vld [vmem:[%s2515_s24 + $0x344] sm:$0xff] }
  0x77   : >> { %449 = vst [vmem:[%s2511_s23 + $0x70] sm:$0xff] %v448_v56  ;;  %v454_v59 = vld [vmem:[%s2515_s24 + $0x34c] sm:$0xff]  ;;  %451 = vst [vmem:[%s2511_s23 + $0x78] sm:$0xff] %v450_v57  ;;  %v456_v60 = vld [vmem:[%s2515_s24 + $0x354] sm:$0xff] }
  0x78   : >> { %453 = vst [vmem:[%s2511_s23 + $0x80] sm:$0xff] %v452_v58  ;;  %455 = vst [vmem:[%s2511_s23 + $0x88] sm:$0xff] %v454_v59  ;;  %v458_v61 = vld [vmem:[%s2515_s24 + $0x35c] sm:$0xff]  ;;  %v460_v62 = vld [vmem:[%s2515_s24 + $0x364] sm:$0xff] }
  0x79   : >> { %457 = vst [vmem:[%s2511_s23 + $0x90] sm:$0xff] %v456_v60  ;;  %459 = vst [vmem:[%s2511_s23 + $0x98] sm:$0xff] %v458_v61  ;;  %v462_v63 = vld [vmem:[%s2515_s24 + $0x36c] sm:$0xff]  ;;  %v464_v0 = vld [vmem:[%s2515_s24 + $0x374] sm:$0xff] }
  0x7a   : >> { %461 = vst [vmem:[%s2511_s23 + $0xa0] sm:$0xff] %v460_v62  ;;  %v466_v1 = vld [vmem:[%s2515_s24 + $0x37c] sm:$0xff]  ;;  %463 = vst [vmem:[%s2511_s23 + $0xa8] sm:$0xff] %v462_v63  ;;  %v468_v2 = vld [vmem:[%s2515_s24 + $0x384] sm:$0xff] }
  0x7b   : >> { %465 = vst [vmem:[%s2511_s23 + $0xb0] sm:$0xff] %v464_v0  ;;  %467 = vst [vmem:[%s2511_s23 + $0xb8] sm:$0xff] %v466_v1  ;;  %v470_v3 = vld [vmem:[%s2515_s24 + $0x38c] sm:$0xff]  ;;  %v472_v4 = vld [vmem:[%s2515_s24 + $0x394] sm:$0xff] }
  0x7c   : >> { %469 = vst [vmem:[%s2511_s23 + $0xc0] sm:$0xff] %v468_v2  ;;  %471 = vst [vmem:[%s2511_s23 + $0xc8] sm:$0xff] %v470_v3  ;;  %v474_v5 = vld [vmem:[%s2515_s24 + $0x39c] sm:$0xff]  ;;  %v476_v6 = vld [vmem:[%s2515_s24 + $0x3a4] sm:$0xff] }
  0x7d   : >> { %473 = vst [vmem:[%s2511_s23 + $0xd0] sm:$0xff] %v472_v4  ;;  %v478_v7 = vld [vmem:[%s2515_s24 + $0x3ac] sm:$0xff]  ;;  %475 = vst [vmem:[%s2511_s23 + $0xd8] sm:$0xff] %v474_v5  ;;  %v480_v8 = vld [vmem:[%s2515_s24 + $0x3b4] sm:$0xff]  ;;  %368 = sbr.rel (!%p365_p7) target bundleno = 111 (0x6f), region = 257 }
  0x7e   : >> { %477 = vst [vmem:[%s2511_s23 + $0xe0] sm:$0xff] %v476_v6  ;;  %479 = vst [vmem:[%s2511_s23 + $0xe8] sm:$0xff] %v478_v7  ;;  %v482_v9 = vld [vmem:[%s2515_s24 + $0x3bc] sm:$0xff]  ;;  %v484_v10 = vld [vmem:[%s2515_s24 + $0x3c4] sm:$0xff] }
  0x7f   : >> { %481 = vst [vmem:[%s2511_s23 + $0xf0] sm:$0xff] %v480_v8  ;;  %483 = vst [vmem:[%s2511_s23 + $0xf8] sm:$0xff] %v482_v9  ;;  %v486_v11 = vld [vmem:[%s2515_s24 + $0x3cc] sm:$0xff]  ;;  %v488_v12 = vld [vmem:[%s2515_s24 + $0x3d4] sm:$0xff] }
  0x80   : >> { %485 = vst [vmem:[%s2511_s23 + $0x100] sm:$0xff] %v484_v10  ;;  %v490_v13 = vld [vmem:[%s2515_s24 + $0x3dc] sm:$0xff]  ;;  %487 = vst [vmem:[%s2511_s23 + $0x108] sm:$0xff] %v486_v11  ;;  %v492_v14 = vld [vmem:[%s2515_s24 + $0x3e4] sm:$0xff] }
  0x81   : >> { %489 = vst [vmem:[%s2511_s23 + $0x110] sm:$0xff] %v488_v12  ;;  %491 = vst [vmem:[%s2511_s23 + $0x118] sm:$0xff] %v490_v13  ;;  %v494_v15 = vld [vmem:[%s2515_s24 + $0x3ec] sm:$0xff]  ;;  %v496_v16 = vld [vmem:[%s2515_s24 + $0x3f4] sm:$0xff] }
  0x82   : >> { %493 = vst [vmem:[%s2511_s23 + $0x120] sm:$0xff] %v492_v14  ;;  %495 = vst [vmem:[%s2511_s23 + $0x128] sm:$0xff] %v494_v15  ;;  %v498_v17 = vld [vmem:[%s2515_s24 + $0x3fc] sm:$0xff]  ;;  %s3509_s24 = smov %s2925_s11 }
  0x83   : >> { %497 = vst [vmem:[%s2511_s23 + $0x130] sm:$0xff] %v496_v16  ;;  %499 = vst [vmem:[%s2511_s23 + $0x138] sm:$0xff] %v498_v17  ;;  %s3508_s23 = smov %s2928_s17 }
  0x84 PF: > { %s2974_s8 = sand.u32 31, %s359_s10   ;;  %s2015_s6 = sshll.u32 %s2843_s22, 12 }
  0x85   : > { %s511_s7 = sshra.s32 %s2015_s6, 4  ;;  %p1935_p8 = scmp.le.s32.totalorder %s2974_s8, 0 }
  0x86   : > { %s2978_s9 = scalar_lea.vmem %s2672_s28, %s511_s7   ;;  %s515_s29 = scalar_lea.vmem %s2676_s4, %s511_s7 [#allocation2]  }
  0x87   : > { %1823 = sbr.rel (%p1935_p8) target bundleno = 152 (0x98), region = 262  ;;  %s2525_s27 = smov (!%p1935_p8), %s515_s29  }
  0x88   : > { %s2529_s26 = smov (!%p1935_p8), %s2978_s9   ;;  %s2533_s11 = smov (!%p1935_p8), 0  }
  0x89   : > { %s2537_s23 = smov (!%p1935_p8), 0  }
  0x8e LB: >> { %v527_v18 = vld [vmem:[%s2531_s26] sm:$0xff]  ;;  %s531_s10 = sadd.s32 1, %s2535_s11  ;;  %s521_s23 = sadd.s32 1, %s2539_s23   ;;  %s2539_s23 = sphi %s2537_s23, %s521_s23   ;;  %s2535_s11 = sphi %s2533_s11, %s2534_s11   ;;  %s2531_s26 = sphi %s2529_s26, %s536_s26   ;;  %s2527_s27 = sphi %s2525_s27, %s537_s27  }
  0x8f   : >> { %v529_v19 = vld [vmem:[%s2531_s26 + $0x304] sm:$0xff]  ;;  %528 = vst [vmem:[%s2527_s27] sm:$0xff] %v527_v18  ;;  %p532_p9 = scmp.ge.s32.totalorder %s531_s10, %s2974_s8  ;;  %p520_p10 = scmp.ge.s32.totalorder %s521_s23, %s2974_s8 }
  0x90   : >> { %530 = vst [vmem:[%s2527_s27 + $0x40] sm:$0xff] %v529_v19 }
  0x91   : >> { %s3535_s10 = smov (%p532_p9, %s531_s10), 0  ;;  %523 = sbr.rel (!%p520_p10) target bundleno = 142 (0x8e), region = 268 }
  0x92   : >> { %s1936_s22 = sshll.u32 %s3535_s10, 3  ;;  %s2534_s11 = smov %s3535_s10  }
  0x93   : >> { %s536_s26 = scalar_lea.vmem %s2978_s9, %s1936_s22   ;;  %s537_s27 = scalar_lea.vmem %s515_s29, %s1936_s22 [#allocation2]  }
  0x98 PF: > { %s2605_s24 = smov 0  }
  0x99   : > { %s538_s25 = sshllo.u32 %s2605_s24, %s2680_s5 }
  0x9a   : > { %v547_v20 = vld [vmem:[%s2836_s18] sm:%s538_s25] }
  0x9b   : > { %v549_v21 = vld [vmem:[%s2836_s18 + $0x304] sm:%s538_s25]  ;;  %548 = vst [vmem:[%s2839_s21] sm:%s538_s25] %v547_v20 }
  0x9c   : > { %550 = vst [vmem:[%s2839_s21 + $0x40] sm:%s538_s25] %v549_v21 }
  0x9d PF: > { %p1938_p11 = scmp.ge.u32.totalorder %s2674_s30, 8 }
  0x9e   : > { %s2606_s17 = smov (!%p1938_p11), 0  }
  0x9f   : > { %153 = sbr.rel (%p1938_p11) target bundleno = 166 (0xa6), region = 40  ;;  %s154_s8 = sshllo.u32 (!%p1938_p11), %s2606_s17, %s2674_s30 }
  0xa0   : > { %v163_v22 = vld [vmem:[%s2672_s28] sm:%s154_s8] (!%p1938_p11) }
  0xa1   : > { %v165_v23 = vld [vmem:[%s2672_s28 + $0x304] sm:%s154_s8] (!%p1938_p11)  ;;  %164 = vst [vmem:[%s2676_s4] sm:%s154_s8] (!%p1938_p11), %v163_v22 }
  0xa2   : > { %166 = vst [vmem:[%s2676_s4 + $0x40] sm:%s154_s8] (!%p1938_p11), %v165_v23 }
  0xa6 PF: > { %p1939_p12 = scmp.ge.s32.totalorder %s2475_s14, 1  ;;  %p553_p13 = scmp.lt.s32.totalorder %s2475_s14, 14 }
  0xa8   : > { %p554_p0 = pnand %p1939_p12, %p553_p13 }
  0xa9   : > { %s560_s5 = sand.u32 (!%p554_p0), 1, %s2467_s12   ;;  %v2607_v24 = vmov (!%p554_p0), 0   ;;  %v611_v25 = vld [vmem:[%s3498_s2] sm:$0xff] (!%p554_p0)  ;;  %v612_v43 = vld [vmem:[%s3498_s2 + $0x8] sm:$0xff] (!%p554_p0)  ;;  %vm708_vm0 = vcmask (!%p554_p0), 130048  }
  0xaa   : > { %557 = sbr.rel (%p554_p0) target bundleno = 600 (0x258), region = 94  ;;  %s3000_s18 = sshll.u32 (!%p554_p0), %s560_s5, 7  ;;  %744 = vmatprep.mubr.bf16.mxu0 (!%p554_p0), %v2607_v24  ;;  %787 = vmatprep.mubr.bf16.mxu1 (!%p554_p0), %v2607_v24  ;;  %v2324_v36 = vld [vmem:[%s3496_s0] sm:$0xff] (!%p554_p0)  }
  0xab   : > { %2323 = vset.pattern.permute.xlu0 (!%p554_p0), %v2607_v24  ;;  %s3009_s4 = scalar_lea.vmem (!%p554_p0), [#allocation2], %s3000_s18  ;;  %s3060_s7 = scalar_lea.vmem (!%p554_p0), [#allocation3], %s3000_s18  }
  0xac   : > { %v595_v26 = vld [vmem:[%s3009_s4] sm:$0xff] (!%p554_p0)  ;;  %v596_v28 = vld [vmem:[%s3009_s4 + $0x8] sm:$0xff] (!%p554_p0)  ;;  %615 = vperm.xlu0 (!%p554_p0), %2323, %v611_v25   ;;  %v597_v32 = vld [vmem:[%s3009_s4 + $0x10] sm:$0xff] (!%p554_p0) }
  0xad   : > { %v603_v27 = vld [vmem:[%s3009_s4 + $0x40] sm:$0xff] (!%p554_p0)  ;;  %v604_v30 = vld [vmem:[%s3009_s4 + $0x48] sm:$0xff] (!%p554_p0)  ;;  %v605_v33 = vld [vmem:[%s3009_s4 + $0x50] sm:$0xff] (!%p554_p0) }
  0xae   : > { %v1944_v29 = vcombine.high (!%p554_p0), %v595_v26, %v603_v27  ;;  %v1943_v31 = vcombine.low (!%p554_p0), %v595_v26, %v603_v27  ;;  %v1946_v34 = vcombine.high (!%p554_p0), %v596_v28, %v604_v30  ;;  %v1945_v35 = vcombine.low (!%p554_p0), %v596_v28, %v604_v30  ;;  %v598_v38 = vld [vmem:[%s3009_s4 + $0x18] sm:$0xff] (!%p554_p0)  ;;  %v599_v41 = vld [vmem:[%s3009_s4 + $0x20] sm:$0xff] (!%p554_p0)  ;;  %v600_v45 = vld [vmem:[%s3009_s4 + $0x28] sm:$0xff] (!%p554_p0) }
  0xaf   : > { %v1948_v37 = vcombine.high (!%p554_p0), %v597_v32, %v605_v33  ;;  %v606_v39 = vld [vmem:[%s3009_s4 + $0x58] sm:$0xff] (!%p554_p0)  ;;  %v607_v42 = vld [vmem:[%s3009_s4 + $0x60] sm:$0xff] (!%p554_p0)  ;;  %v1947_v44 = vcombine.low (!%p554_p0), %v597_v32, %v605_v33  ;;  %v608_v46 = vld [vmem:[%s3009_s4 + $0x68] sm:$0xff] (!%p554_p0) }
  0xb0   : > { %712 = vmatprep.subr.bf16.mxu0 (!%p554_p0), %v1944_v29  ;;  %v1950_v40 = vcombine.high (!%p554_p0), %v598_v38, %v606_v39  ;;  %755 = vmatprep.subr.bf16.mxu1 (!%p554_p0), %v1946_v34  ;;  %v1949_v47 = vcombine.low (!%p554_p0), %v598_v38, %v606_v39  ;;  %v1952_v48 = vcombine.high (!%p554_p0), %v599_v41, %v607_v42  ;;  %v601_v50 = vld [vmem:[%s3009_s4 + $0x30] sm:$0xff] (!%p554_p0)  ;;  %v602_v53 = vld [vmem:[%s3009_s4 + $0x38] sm:$0xff] (!%p554_p0) }
  0xb1   : > { %713 = vmatpush1.bf16.msra.mxu0 %v1943_v31  ;;  %756 = vmatpush1.bf16.msra.mxu1 %v1945_v35  ;;  %v1954_v49 = vcombine.high %v600_v45, %v608_v46  ;;  %v609_v51 = vld [vmem:[%s3009_s4 + $0x70] sm:$0xff]  ;;  %v1951_v52 = vcombine.low %v599_v41, %v607_v42  ;;  %v610_v54 = vld [vmem:[%s3009_s4 + $0x78] sm:$0xff]  ;;  %v1953_v55 = vcombine.low %v600_v45, %v608_v46  ;;  %s1984_s9 = sshll.u32 (%p2661_p5), %s2646_s15, 4  ;;  %s2033_s29 = sshll.u32 (%p2661_p5), %s2646_s15, 6 }
  0xb2   : > { %798 = vmatprep.subr.bf16.mxu0 %v1948_v37  ;;  %841 = vmatprep.subr.bf16.mxu1 %v1950_v40  ;;  %v1956_v56 = vcombine.high %v601_v50, %v609_v51  ;;  %v1958_v57 = vcombine.high %v602_v53, %v610_v54  ;;  %v1955_v58 = vcombine.low %v601_v50, %v609_v51  ;;  %s1272_s27 = ssub.s32 (%p2661_p5), 193, %s1984_s9  ;;  %s3109_s23 = scalar_lea.vmem (%p2661_p5), %s3499_s3, %s2033_s29  }
  0xb3   : > { %620 = vperm.xlu0 %2323, %v612_v43   ;;  %v1957_v59 = vcombine.low %v602_v53, %v610_v54  ;;  %p1273_p1 = scmp.lt.s32.totalorder (%p2661_p5), %s1272_s27, 16 }
  0xb4   : > { %1959 = vmatmul.mubr.msk.bf16.vlgmr.msra.gmra.mrb[0].mxu0 %vm708_vm0, %v2324_v36  ;;  %1960 = vmatmul.mubr.msk.bf16.vlgmr.msra.gmra.mrb[0].mxu1 %vm708_vm0, %v2324_v36 }
  0xb5   : > { %799 = vmatpush1.bf16.msra.mxu0 %v1947_v44  ;;  %842 = vmatpush1.bf16.msra.mxu1 %v1949_v47 }
  0xb6   : > { %830 = vmatprep.mubr.bf16.mxu0 %v2607_v24  ;;  %873 = vmatprep.mubr.bf16.mxu1 %v2607_v24 }
  0xb7   : > { %884 = vmatprep.subr.bf16.mxu0 %v1952_v48  ;;  %927 = vmatprep.subr.bf16.mxu1 %v1954_v49 }
  0xbc   : > { %1961 = vmatmul.mubr.msk.bf16.vlgmr.msra.gmra.mrb[4].mxu0 %vm708_vm0, %v2324_v36  ;;  %1962 = vmatmul.mubr.msk.bf16.vlgmr.msra.gmra.mrb[4].mxu1 %vm708_vm0, %v2324_v36 }
  0xbd   : > { %885 = vmatpush1.bf16.msra.mxu0 %v1951_v52  ;;  %928 = vmatpush1.bf16.msra.mxu1 %v1953_v55 }
  0xbe   : > { %916 = vmatprep.mubr.bf16.mxu0 %v2607_v24  ;;  %959 = vmatprep.mubr.bf16.mxu1 %v2607_v24 }
  0xbf   : > { %970 = vmatprep.subr.bf16.mxu0 %v1956_v56  ;;  %1013 = vmatprep.subr.bf16.mxu1 %v1958_v57 }
  0xc4   : > { %1963 = vmatmul.mubr.msk.bf16.vlgmr.msra.gmra.mrb[8].mxu0 %vm708_vm0, %v2324_v36  ;;  %1964 = vmatmul.mubr.msk.bf16.vlgmr.msra.gmra.mrb[8].mxu1 %vm708_vm0, %v2324_v36 }
  0xc5   : > { %971 = vmatpush1.bf16.msra.mxu0 %v1955_v58  ;;  %1014 = vmatpush1.bf16.msra.mxu1 %v1957_v59 }
  0xc6   : > { %1002 = vmatprep.mubr.bf16.mxu0 %v2607_v24  ;;  %1045 = vmatprep.mubr.bf16.mxu1 %v2607_v24 }
  0xcc   : > { %1965 = vmatmul.mubr.msk.bf16.vlgmr.msra.gmra.mrb[12].mxu0 %vm708_vm0, %v2324_v36  ;;  %1966 = vmatmul.mubr.msk.bf16.vlgmr.msra.gmra.mrb[12].mxu1 %vm708_vm0, %v2324_v36 }
 0x12b   : > { %v3047_v60 = vpop.permute.xlu0 %615 }
 0x132   : > { %v3049_v62 = vpop.permute.xlu0 %620 }
 0x187   : > { %v746_v61 = vpop.f32.mrb[0].mxu0  ;;  %v789_v0 = vpop.f32.mrb[0].mxu1 }
 0x188   : > { %v747_v63 = vadd.f32 %v746_v61, %v3047_v60  ;;  %v748_v1 = vpop.f32.mrb[1].mxu0  ;;  %v790_v2 = vadd.f32 %v789_v0, %v3047_v60  ;;  %v791_v4 = vpop.f32.mrb[1].mxu1 }
 0x189   : > { %v749_v3 = vadd.f32 %v748_v1, %v3047_v60  ;;  %v750_v5 = vpop.f32.mrb[2].mxu0  ;;  %v792_v7 = vadd.f32 %v791_v4, %v3047_v60  ;;  %v793_v9 = vpop.f32.mrb[2].mxu1 }
 0x18a   : > { %vm1056_vm1 = vcmp.ge.f32.partialorder %v747_v63, 0.0  ;;  %v1088_v6 = vmul.f32 0.2, %v747_v63  ;;  %v751_v8 = vadd.f32 %v750_v5, %v3049_v62  ;;  %v752_v10 = vpop.f32.mrb[3].mxu0  ;;  %vm1058_vm2 = vcmp.ge.f32.partialorder %v790_v2, 0.0  ;;  %v795_v15 = vpop.f32.mrb[3].mxu1 }
 0x18b   : > { %v1090_v11 = vmul.f32 0.2, %v790_v2  ;;  %vm1057_vm3 = vcmp.ge.f32.partialorder %v749_v3, 0.0  ;;  %v1089_v12 = vmul.f32 0.2, %v749_v3  ;;  %vm1059_vm4 = vcmp.ge.f32.partialorder %v792_v7, 0.0 }
 0x18c   : > { %v1120_v13 = vsel %vm1056_vm1, %v747_v63, %v1088_v6  ;;  %v1091_v14 = vmul.f32 0.2, %v792_v7  ;;  %vm1072_vm5 = vcmp.ge.f32.partialorder %v751_v8, 0.0  ;;  %v1104_v18 = vmul.f32 0.2, %v751_v8 }
 0x18d   : > { %v1122_v16 = vsel %vm1058_vm2, %v790_v2, %v1090_v11  ;;  %v1121_v17 = vsel %vm1057_vm3, %v749_v3, %v1089_v12  ;;  %v794_v19 = vadd.f32 %v793_v9, %v3049_v62  ;;  %v753_v22 = vadd.f32 %v752_v10, %v3049_v62 }
 0x18e   : > { %v2017_v20 = vpack.c.bf16 %v1121_v17, %v1120_v13  ;;  %v1123_v21 = vsel %vm1059_vm4, %v792_v7, %v1091_v14  ;;  %v796_v23 = vadd.f32 %v795_v15, %v3049_v62  ;;  %v1136_v25 = vsel %vm1072_vm5, %v751_v8, %v1104_v18 }
 0x18f   : > { %v2018_v24 = vpack.c.bf16 %v1123_v21, %v1122_v16  ;;  %vm1074_vm6 = vcmp.ge.f32.partialorder %v794_v19, 0.0  ;;  %v1106_v26 = vmul.f32 0.2, %v794_v19  ;;  %v832_v27 = vpop.f32.mrb[4].mxu0  ;;  %vm1073_vm7 = vcmp.ge.f32.partialorder %v753_v22, 0.0  ;;  %v875_v32 = vpop.f32.mrb[4].mxu1 }
 0x190   : > { %1248 = vst [vmem:[%s3060_s7] sm:$0xff] %v2017_v20  ;;  %v1105_v28 = vmul.f32 0.2, %v753_v22  ;;  %vm1075_vm8 = vcmp.ge.f32.partialorder %v796_v23, 0.0  ;;  %v1107_v29 = vmul.f32 0.2, %v796_v23  ;;  %v833_v31 = vadd.f32 %v832_v27, %v3047_v60  ;;  %v834_v33 = vpop.f32.mrb[5].mxu0 }
 0x191   : > { %1249 = vst [vmem:[%s3060_s7 + $0x8] sm:$0xff] %v2018_v24  ;;  %v1138_v30 = vsel %vm1074_vm6, %v794_v19, %v1106_v26  ;;  %v876_v36 = vadd.f32 %v875_v32, %v3047_v60  ;;  %v835_v37 = vadd.f32 %v834_v33, %v3047_v60  ;;  %v877_v38 = vpop.f32.mrb[5].mxu1  ;;  %v836_v39 = vpop.f32.mrb[6].mxu0 }
 0x192   : > { %v1137_v34 = vsel %vm1073_vm7, %v753_v22, %v1105_v28  ;;  %v1139_v35 = vsel %vm1075_vm8, %v796_v23, %v1107_v29  ;;  %vm1060_vm9 = vcmp.ge.f32.partialorder %v833_v31, 0.0  ;;  %v1092_v42 = vmul.f32 0.2, %v833_v31  ;;  %v879_v43 = vpop.f32.mrb[6].mxu1  ;;  %v838_v44 = vpop.f32.mrb[7].mxu0 }
 0x193   : > { %v2025_v40 = vpack.c.bf16 %v1137_v34, %v1136_v25  ;;  %v2026_v41 = vpack.c.bf16 %v1139_v35, %v1138_v30  ;;  %vm1062_vm10 = vcmp.ge.f32.partialorder %v876_v36, 0.0  ;;  %v1094_v45 = vmul.f32 0.2, %v876_v36  ;;  %v881_v51 = vpop.f32.mrb[7].mxu1 }
 0x194   : > { %vm1061_vm11 = vcmp.ge.f32.partialorder %v835_v37, 0.0  ;;  %v1093_v46 = vmul.f32 0.2, %v835_v37  ;;  %v1124_v47 = vsel %vm1060_vm9, %v833_v31, %v1092_v42  ;;  %v878_v48 = vadd.f32 %v877_v38, %v3047_v60 }
 0x195   : > { %1256 = vst [vmem:[%s3060_s7 + $0x40] sm:$0xff] %v2025_v40  ;;  %1257 = vst [vmem:[%s3060_s7 + $0x48] sm:$0xff] %v2026_v41  ;;  %v837_v49 = vadd.f32 %v836_v39, %v3049_v62  ;;  %v880_v50 = vadd.f32 %v879_v43, %v3049_v62  ;;  %v1126_v52 = vsel %vm1062_vm10, %v876_v36, %v1094_v45 }
 0x196   : > { %v1125_v53 = vsel %vm1061_vm11, %v835_v37, %v1093_v46  ;;  %v839_v54 = vadd.f32 %v838_v44, %v3049_v62  ;;  %v882_v55 = vadd.f32 %v881_v51, %v3049_v62  ;;  %vm1063_vm12 = vcmp.ge.f32.partialorder %v878_v48, 0.0 }
 0x197   : > { %v2019_v56 = vpack.c.bf16 %v1125_v53, %v1124_v47  ;;  %v1095_v57 = vmul.f32 0.2, %v878_v48  ;;  %vm1076_vm13 = vcmp.ge.f32.partialorder %v837_v49, 0.0  ;;  %v918_v58 = vpop.f32.mrb[8].mxu0  ;;  %v1108_v59 = vmul.f32 0.2, %v837_v49 }
 0x198   : > { %vm1078_vm14 = vcmp.ge.f32.partialorder %v880_v50, 0.0  ;;  %v1110_v61 = vmul.f32 0.2, %v880_v50  ;;  %vm1077_vm15 = vcmp.ge.f32.partialorder %v839_v54, 0.0  ;;  %v1109_v0 = vmul.f32 0.2, %v839_v54 }
 0x199   : > { %1250 = vst [vmem:[%s3060_s7 + $0x10] sm:$0xff] %v2019_v56  ;;  %v1127_v63 = vsel %vm1063_vm12, %v878_v48, %v1095_v57  ;;  %vm1079_vm0 = vcmp.ge.f32.partialorder %v882_v55, 0.0  ;;  %v1111_v1 = vmul.f32 0.2, %v882_v55  ;;  %v961_v2 = vpop.f32.mrb[8].mxu1  ;;  %v1140_v4 = vsel %vm1076_vm13, %v837_v49, %v1108_v59  ;;  %v920_v7 = vpop.f32.mrb[9].mxu0 }
 0x19a   : > { %v2020_v3 = vpack.c.bf16 %v1127_v63, %v1126_v52  ;;  %v1142_v5 = vsel %vm1078_vm14, %v880_v50, %v1110_v61  ;;  %v919_v6 = vadd.f32 %v918_v58, %v3047_v60  ;;  %v963_v8 = vpop.f32.mrb[9].mxu1  ;;  %v1141_v9 = vsel %vm1077_vm15, %v839_v54, %v1109_v0  ;;  %v922_v13 = vpop.f32.mrb[10].mxu0 }
 0x19b   : > { %v1143_v10 = vsel %vm1079_vm0, %v882_v55, %v1111_v1  ;;  %v962_v11 = vadd.f32 %v961_v2, %v3047_v60  ;;  %v921_v12 = vadd.f32 %v920_v7, %v3047_v60  ;;  %v965_v14 = vpop.f32.mrb[10].mxu1  ;;  %v2027_v15 = vpack.c.bf16 %v1141_v9, %v1140_v4  ;;  %v924_v18 = vpop.f32.mrb[11].mxu0 }
 0x19c   : > { %1251 = vst [vmem:[%s3060_s7 + $0x18] sm:$0xff] %v2020_v3  ;;  %v2028_v16 = vpack.c.bf16 %v1143_v10, %v1142_v5  ;;  %vm1064_vm1 = vcmp.ge.f32.partialorder %v919_v6, 0.0  ;;  %v1096_v17 = vmul.f32 0.2, %v919_v6  ;;  %v967_v19 = vpop.f32.mrb[11].mxu1  ;;  %v964_v23 = vadd.f32 %v963_v8, %v3047_v60 }
 0x19d   : > { %vm1066_vm2 = vcmp.ge.f32.partialorder %v962_v11, 0.0  ;;  %v1098_v20 = vmul.f32 0.2, %v962_v11  ;;  %vm1065_vm3 = vcmp.ge.f32.partialorder %v921_v12, 0.0  ;;  %v1097_v21 = vmul.f32 0.2, %v921_v12 }
 0x19e   : > { %1258 = vst [vmem:[%s3060_s7 + $0x50] sm:$0xff] %v2027_v15  ;;  %1259 = vst [vmem:[%s3060_s7 + $0x58] sm:$0xff] %v2028_v16  ;;  %v1128_v22 = vsel %vm1064_vm1, %v919_v6, %v1096_v17  ;;  %v923_v24 = vadd.f32 %v922_v13, %v3049_v62  ;;  %v966_v25 = vadd.f32 %v965_v14, %v3049_v62  ;;  %vm1067_vm4 = vcmp.ge.f32.partialorder %v964_v23, 0.0 }
 0x19f   : > { %v1130_v26 = vsel %vm1066_vm2, %v962_v11, %v1098_v20  ;;  %v1129_v27 = vsel %vm1065_vm3, %v921_v12, %v1097_v21  ;;  %v925_v28 = vadd.f32 %v924_v18, %v3049_v62  ;;  %v968_v29 = vadd.f32 %v967_v19, %v3049_v62  ;;  %v1004_v30 = vpop.f32.mrb[12].mxu0  ;;  %v1047_v33 = vpop.f32.mrb[12].mxu1 }
 0x1a0   : > { %v2021_v31 = vpack.c.bf16 %v1129_v27, %v1128_v22  ;;  %v1099_v32 = vmul.f32 0.2, %v964_v23  ;;  %vm1080_vm5 = vcmp.ge.f32.partialorder %v923_v24, 0.0  ;;  %v1006_v34 = vpop.f32.mrb[13].mxu0  ;;  %v1112_v35 = vmul.f32 0.2, %v923_v24 }
 0x1a1   : > { %vm1082_vm6 = vcmp.ge.f32.partialorder %v966_v25, 0.0  ;;  %v1114_v36 = vmul.f32 0.2, %v966_v25  ;;  %vm1081_vm7 = vcmp.ge.f32.partialorder %v925_v28, 0.0  ;;  %v1113_v38 = vmul.f32 0.2, %v925_v28 }
 0x1a2   : > { %1252 = vst [vmem:[%s3060_s7 + $0x20] sm:$0xff] %v2021_v31  ;;  %v1131_v37 = vsel %vm1067_vm4, %v964_v23, %v1099_v32  ;;  %vm1083_vm8 = vcmp.ge.f32.partialorder %v968_v29, 0.0  ;;  %v1115_v39 = vmul.f32 0.2, %v968_v29  ;;  %v1049_v40 = vpop.f32.mrb[13].mxu1  ;;  %v1144_v42 = vsel %vm1080_vm5, %v923_v24, %v1112_v35  ;;  %v1008_v45 = vpop.f32.mrb[14].mxu0 }
 0x1a3   : > { %v2022_v41 = vpack.c.bf16 %v1131_v37, %v1130_v26  ;;  %v1146_v43 = vsel %vm1082_vm6, %v966_v25, %v1114_v36  ;;  %v1005_v44 = vadd.f32 %v1004_v30, %v3047_v60  ;;  %v1051_v46 = vpop.f32.mrb[14].mxu1  ;;  %v1145_v47 = vsel %vm1081_vm7, %v925_v28, %v1113_v38  ;;  %v1010_v51 = vpop.f32.mrb[15].mxu0 }
 0x1a4   : > { %v1147_v48 = vsel %vm1083_vm8, %v968_v29, %v1115_v39  ;;  %v1048_v49 = vadd.f32 %v1047_v33, %v3047_v60  ;;  %v1007_v50 = vadd.f32 %v1006_v34, %v3047_v60  ;;  %v1053_v52 = vpop.f32.mrb[15].mxu1  ;;  %v2029_v53 = vpack.c.bf16 %v1145_v47, %v1144_v42 }
 0x1a5   : > { %1253 = vst [vmem:[%s3060_s7 + $0x28] sm:$0xff] %v2022_v41  ;;  %v2030_v54 = vpack.c.bf16 %v1147_v48, %v1146_v43  ;;  %vm1068_vm9 = vcmp.ge.f32.partialorder %v1005_v44, 0.0  ;;  %v1100_v55 = vmul.f32 0.2, %v1005_v44  ;;  %v1050_v59 = vadd.f32 %v1049_v40, %v3047_v60 }
 0x1a6   : > { %vm1070_vm10 = vcmp.ge.f32.partialorder %v1048_v49, 0.0  ;;  %v1102_v56 = vmul.f32 0.2, %v1048_v49  ;;  %vm1069_vm11 = vcmp.ge.f32.partialorder %v1007_v50, 0.0  ;;  %v1101_v57 = vmul.f32 0.2, %v1007_v50 }
 0x1a7   : > { %1260 = vst [vmem:[%s3060_s7 + $0x60] sm:$0xff] %v2029_v53  ;;  %1261 = vst [vmem:[%s3060_s7 + $0x68] sm:$0xff] %v2030_v54  ;;  %v1132_v58 = vsel %vm1068_vm9, %v1005_v44, %v1100_v55  ;;  %v1009_v61 = vadd.f32 %v1008_v45, %v3049_v62  ;;  %v1052_v63 = vadd.f32 %v1051_v46, %v3049_v62  ;;  %vm1071_vm12 = vcmp.ge.f32.partialorder %v1050_v59, 0.0 }
 0x1a8   : > { %v1134_v0 = vsel %vm1070_vm10, %v1048_v49, %v1102_v56  ;;  %v1133_v1 = vsel %vm1069_vm11, %v1007_v50, %v1101_v57  ;;  %v1011_v2 = vadd.f32 %v1010_v51, %v3049_v62  ;;  %v1054_v3 = vadd.f32 %v1053_v52, %v3049_v62 }
 0x1a9   : > { %v2023_v4 = vpack.c.bf16 %v1133_v1, %v1132_v58  ;;  %v1103_v5 = vmul.f32 0.2, %v1050_v59  ;;  %vm1084_vm13 = vcmp.ge.f32.partialorder %v1009_v61, 0.0  ;;  %v1116_v6 = vmul.f32 0.2, %v1009_v61 }
 0x1aa   : > { %vm1086_vm14 = vcmp.ge.f32.partialorder %v1052_v63, 0.0  ;;  %v1118_v7 = vmul.f32 0.2, %v1052_v63  ;;  %vm1085_vm15 = vcmp.ge.f32.partialorder %v1011_v2, 0.0  ;;  %v1117_v8 = vmul.f32 0.2, %v1011_v2 }
 0x1ab   : > { %1254 = vst [vmem:[%s3060_s7 + $0x30] sm:$0xff] %v2023_v4  ;;  %v1135_v60 = vsel %vm1071_vm12, %v1050_v59, %v1103_v5  ;;  %vm1087_vm0 = vcmp.ge.f32.partialorder %v1054_v3, 0.0  ;;  %v1119_v9 = vmul.f32 0.2, %v1054_v3  ;;  %v1148_v11 = vsel %vm1084_vm13, %v1009_v61, %v1116_v6  ;;  %1270 = sbr.rel (!%p2661_p5) target bundleno = 600 (0x258), region = 102 }
 0x1ac   : > { %v2024_v10 = vpack.c.bf16 %v1135_v60, %v1134_v0  ;;  %v1150_v12 = vsel %vm1086_vm14, %v1052_v63, %v1118_v7  ;;  %v1149_v62 = vsel %vm1085_vm15, %v1011_v2, %v1117_v8 }
 0x1ad   : > { %v1151_v13 = vsel %vm1087_vm0, %v1054_v3, %v1119_v9  ;;  %v2031_v14 = vpack.c.bf16 %v1149_v62, %v1148_v11 }
 0x1ae   : > { %1255 = vst [vmem:[%s3060_s7 + $0x38] sm:$0xff] %v2024_v10  ;;  %v2032_v15 = vpack.c.bf16 %v1151_v13, %v1150_v12 }
 0x1af   : > { %1262 = vst [vmem:[%s3060_s7 + $0x70] sm:$0xff] %v2031_v14 }
 0x1b0   : > { %1263 = vst [vmem:[%s3060_s7 + $0x78] sm:$0xff] %v2032_v15 }
 0x1b2   : > { %s3537_s27 = smov (!%p1273_p1, %s1272_s27), 16 }
 0x1b3   : > { %s1985_s10 = sshll.u32 %s3537_s27, 7  ;;  %s3111_s22 = sshll.u32 %s3537_s27, 2 }
 0x1b4   : > { %p1989_p2 = scmp.eq.s32.totalorder %s1985_s10, 0 }
 0x1b5   : > { %p1283_p3 = scmp.lt.u32.totalorder (!%p1989_p2), %s3111_s22, 8 }
 0x1b6   : > { %1282 = sbr.rel (%p1989_p2) target bundleno = 600 (0x258), region = 106 }
 0x1bd   : > { %1286 = sbr.rel (%p1283_p3) target bundleno = 591 (0x24f), region = 110  ;;  %s3115_s20 = sand.u32 (!%p1283_p3), 7, %s3111_s22  }
 0x1be   : > { %p1304_p5 = scmp.eq.s32.totalorder (!%p1283_p3), %s3115_s20, 0  ;;  %p1990_p4 = scmp.ne.s32.totalorder (!%p1283_p3), %s3115_s20, 0 }
 0x1c4   : > { %1307 = sbr.rel (%p1990_p4) target bundleno = 519 (0x207), region = 125  ;;  %s1308_s15 = sshrl.u32 (!%p1990_p4), %s3111_s22, 3 }
 0x1c5   : > { %s3122_s24 = sshrl.u32 (!%p1990_p4), %s1308_s15, 5 }
 0x1c6   : > { %p1991_p6 = scmp.le.s32.totalorder (!%p1990_p4), %s3122_s24, 0 }
 0x1cb   : > { %1837 = sbr.rel (%p1991_p6) target bundleno = 499 (0x1f3), region = 273  ;;  %s3511_s25 = smov (!%p1991_p6), %s3109_s23 }
 0x1cc   : > { %s3512_s17 = smov (!%p1991_p6), %s3060_s7  ;;  %s3131_s8 = smov (!%p1991_p6), 0  }
 0x1cd   : > { %s3133_s5 = smov (!%p1991_p6), 0  }
 0x1d2 LB: >> { %v1321_v16 = vld [vmem:[%s2547_s17] sm:$0xff]  ;;  %v1323_v17 = vld [vmem:[%s2547_s17 + $0x8] sm:$0xff]  ;;  %v1325_v18 = vld [vmem:[%s2547_s17 + $0x10] sm:$0xff]  ;;  %s1449_s18 = sadd.s32 1, %s2551_s8  ;;  %s1315_s5 = sadd.s32 1, %s2555_s5   ;;  %s2555_s5 = sphi %s3133_s5, %s1315_s5   ;;  %s2551_s8 = sphi %s3131_s8, %s3516_s8   ;;  %s2547_s17 = sphi %s3512_s17, %s3515_s17   ;;  %s2543_s25 = sphi %s3511_s25, %s3514_s25  }
 0x1d3   : >> { %1322 = vst [vmem:[%s2543_s25] sm:$0xff] %v1321_v16  ;;  %1324 = vst [vmem:[%s2543_s25 + $0x8] sm:$0xff] %v1323_v17  ;;  %v1327_v19 = vld [vmem:[%s2547_s17 + $0x18] sm:$0xff]  ;;  %v1329_v20 = vld [vmem:[%s2547_s17 + $0x20] sm:$0xff]  ;;  %p3155_p7 = scmp.ge.s32.totalorder %s1449_s18, %s3122_s24  ;;  %p1314_p8 = scmp.ge.s32.totalorder %s1315_s5, %s3122_s24 }
 0x1d4   : >> { %1326 = vst [vmem:[%s2543_s25 + $0x10] sm:$0xff] %v1325_v18  ;;  %v1331_v21 = vld [vmem:[%s2547_s17 + $0x28] sm:$0xff]  ;;  %1328 = vst [vmem:[%s2543_s25 + $0x18] sm:$0xff] %v1327_v19  ;;  %v1333_v22 = vld [vmem:[%s2547_s17 + $0x30] sm:$0xff] }
 0x1d5   : >> { %1330 = vst [vmem:[%s2543_s25 + $0x20] sm:$0xff] %v1329_v20  ;;  %1332 = vst [vmem:[%s2543_s25 + $0x28] sm:$0xff] %v1331_v21  ;;  %v1335_v23 = vld [vmem:[%s2547_s17 + $0x38] sm:$0xff]  ;;  %v1337_v24 = vld [vmem:[%s2547_s17 + $0x40] sm:$0xff]  ;;  %s3539_s18 = smov (%p3155_p7, %s1449_s18), 0 }
 0x1d6   : >> { %1334 = vst [vmem:[%s2543_s25 + $0x30] sm:$0xff] %v1333_v22  ;;  %1336 = vst [vmem:[%s2543_s25 + $0x38] sm:$0xff] %v1335_v23  ;;  %v1339_v25 = vld [vmem:[%s2547_s17 + $0x48] sm:$0xff]  ;;  %v1341_v26 = vld [vmem:[%s2547_s17 + $0x50] sm:$0xff]  ;;  %s1992_s30 = sshll.u32 %s3539_s18, 8  ;;  %s3516_s8 = smov %s3539_s18 }
 0x1d7   : >> { %1338 = vst [vmem:[%s2543_s25 + $0x40] sm:$0xff] %v1337_v24  ;;  %v1343_v27 = vld [vmem:[%s2547_s17 + $0x58] sm:$0xff]  ;;  %1386 = vst [vmem:[%s2543_s25 + $0x304] sm:$0xff] %v1337_v24  ;;  %v1345_v28 = vld [vmem:[%s2547_s17 + $0x60] sm:$0xff]  ;;  %s3205_s4 = scalar_lea.vmem %s3060_s7, %s1992_s30 [#allocation3]   ;;  %s3208_s12 = scalar_lea.vmem %s3109_s23, %s1992_s30  }
 0x1d8   : >> { %1340 = vst [vmem:[%s2543_s25 + $0x48] sm:$0xff] %v1339_v25  ;;  %1342 = vst [vmem:[%s2543_s25 + $0x50] sm:$0xff] %v1341_v26  ;;  %v1347_v29 = vld [vmem:[%s2547_s17 + $0x68] sm:$0xff]  ;;  %v1349_v30 = vld [vmem:[%s2547_s17 + $0x70] sm:$0xff] }
 0x1d9   : >> { %1344 = vst [vmem:[%s2543_s25 + $0x58] sm:$0xff] %v1343_v27  ;;  %1388 = vst [vmem:[%s2543_s25 + $0x30c] sm:$0xff] %v1339_v25  ;;  %v1351_v31 = vld [vmem:[%s2547_s17 + $0x78] sm:$0xff]  ;;  %v1353_v32 = vld [vmem:[%s2547_s17 + $0x80] sm:$0xff] }
 0x1da   : >> { %1390 = vst [vmem:[%s2543_s25 + $0x314] sm:$0xff] %v1341_v26  ;;  %1392 = vst [vmem:[%s2543_s25 + $0x31c] sm:$0xff] %v1343_v27  ;;  %v1355_v33 = vld [vmem:[%s2547_s17 + $0x88] sm:$0xff]  ;;  %v1357_v34 = vld [vmem:[%s2547_s17 + $0x90] sm:$0xff] }
 0x1db   : >> { %1346 = vst [vmem:[%s2543_s25 + $0x60] sm:$0xff] %v1345_v28  ;;  %1348 = vst [vmem:[%s2543_s25 + $0x68] sm:$0xff] %v1347_v29  ;;  %v1359_v35 = vld [vmem:[%s2547_s17 + $0x98] sm:$0xff]  ;;  %v1361_v36 = vld [vmem:[%s2547_s17 + $0xa0] sm:$0xff] }
 0x1dc   : >> { %1350 = vst [vmem:[%s2543_s25 + $0x70] sm:$0xff] %v1349_v30  ;;  %1394 = vst [vmem:[%s2543_s25 + $0x324] sm:$0xff] %v1345_v28  ;;  %v1363_v37 = vld [vmem:[%s2547_s17 + $0xa8] sm:$0xff]  ;;  %v1365_v38 = vld [vmem:[%s2547_s17 + $0xb0] sm:$0xff] }
 0x1dd   : >> { %1396 = vst [vmem:[%s2543_s25 + $0x32c] sm:$0xff] %v1347_v29  ;;  %1398 = vst [vmem:[%s2543_s25 + $0x334] sm:$0xff] %v1349_v30  ;;  %v1367_v39 = vld [vmem:[%s2547_s17 + $0xb8] sm:$0xff]  ;;  %v1369_v40 = vld [vmem:[%s2547_s17 + $0xc0] sm:$0xff] }
 0x1de   : >> { %1352 = vst [vmem:[%s2543_s25 + $0x78] sm:$0xff] %v1351_v31  ;;  %1354 = vst [vmem:[%s2543_s25 + $0x80] sm:$0xff] %v1353_v32  ;;  %v1371_v41 = vld [vmem:[%s2547_s17 + $0xc8] sm:$0xff]  ;;  %v1373_v42 = vld [vmem:[%s2547_s17 + $0xd0] sm:$0xff] }
 0x1df   : >> { %1356 = vst [vmem:[%s2543_s25 + $0x88] sm:$0xff] %v1355_v33  ;;  %1400 = vst [vmem:[%s2543_s25 + $0x33c] sm:$0xff] %v1351_v31  ;;  %v1375_v43 = vld [vmem:[%s2547_s17 + $0xd8] sm:$0xff]  ;;  %v1377_v44 = vld [vmem:[%s2547_s17 + $0xe0] sm:$0xff] }
 0x1e0   : >> { %1402 = vst [vmem:[%s2543_s25 + $0x344] sm:$0xff] %v1353_v32  ;;  %1404 = vst [vmem:[%s2543_s25 + $0x34c] sm:$0xff] %v1355_v33  ;;  %v1379_v45 = vld [vmem:[%s2547_s17 + $0xe8] sm:$0xff]  ;;  %v1381_v46 = vld [vmem:[%s2547_s17 + $0xf0] sm:$0xff] }
 0x1e1   : >> { %1358 = vst [vmem:[%s2543_s25 + $0x90] sm:$0xff] %v1357_v34  ;;  %1360 = vst [vmem:[%s2543_s25 + $0x98] sm:$0xff] %v1359_v35  ;;  %v1383_v47 = vld [vmem:[%s2547_s17 + $0xf8] sm:$0xff]  ;;  %v1433_v48 = vld [vmem:[%s2547_s17 + $0x100] sm:$0xff] }
 0x1e2   : >> { %1362 = vst [vmem:[%s2543_s25 + $0xa0] sm:$0xff] %v1361_v36  ;;  %1406 = vst [vmem:[%s2543_s25 + $0x354] sm:$0xff] %v1357_v34  ;;  %v1435_v49 = vld [vmem:[%s2547_s17 + $0x108] sm:$0xff]  ;;  %v1437_v50 = vld [vmem:[%s2547_s17 + $0x110] sm:$0xff] }
 0x1e3   : >> { %1408 = vst [vmem:[%s2543_s25 + $0x35c] sm:$0xff] %v1359_v35  ;;  %1410 = vst [vmem:[%s2543_s25 + $0x364] sm:$0xff] %v1361_v36  ;;  %v1439_v51 = vld [vmem:[%s2547_s17 + $0x118] sm:$0xff]  ;;  %v1441_v52 = vld [vmem:[%s2547_s17 + $0x120] sm:$0xff] }
 0x1e4   : >> { %1364 = vst [vmem:[%s2543_s25 + $0xa8] sm:$0xff] %v1363_v37  ;;  %1366 = vst [vmem:[%s2543_s25 + $0xb0] sm:$0xff] %v1365_v38  ;;  %v1443_v53 = vld [vmem:[%s2547_s17 + $0x128] sm:$0xff]  ;;  %v1445_v54 = vld [vmem:[%s2547_s17 + $0x130] sm:$0xff] }
 0x1e5   : >> { %1368 = vst [vmem:[%s2543_s25 + $0xb8] sm:$0xff] %v1367_v39  ;;  %1412 = vst [vmem:[%s2543_s25 + $0x36c] sm:$0xff] %v1363_v37  ;;  %v1447_v55 = vld [vmem:[%s2547_s17 + $0x138] sm:$0xff]  ;;  %s3515_s17 = smov %s3205_s4 }
 0x1e6   : >> { %1414 = vst [vmem:[%s2543_s25 + $0x374] sm:$0xff] %v1365_v38  ;;  %1416 = vst [vmem:[%s2543_s25 + $0x37c] sm:$0xff] %v1367_v39 }
 0x1e7   : >> { %1370 = vst [vmem:[%s2543_s25 + $0xc0] sm:$0xff] %v1369_v40  ;;  %1372 = vst [vmem:[%s2543_s25 + $0xc8] sm:$0xff] %v1371_v41 }
 0x1e8   : >> { %1374 = vst [vmem:[%s2543_s25 + $0xd0] sm:$0xff] %v1373_v42  ;;  %1418 = vst [vmem:[%s2543_s25 + $0x384] sm:$0xff] %v1369_v40 }
 0x1e9   : >> { %1420 = vst [vmem:[%s2543_s25 + $0x38c] sm:$0xff] %v1371_v41  ;;  %1422 = vst [vmem:[%s2543_s25 + $0x394] sm:$0xff] %v1373_v42 }
 0x1ea   : >> { %1376 = vst [vmem:[%s2543_s25 + $0xd8] sm:$0xff] %v1375_v43  ;;  %1378 = vst [vmem:[%s2543_s25 + $0xe0] sm:$0xff] %v1377_v44 }
 0x1eb   : >> { %1380 = vst [vmem:[%s2543_s25 + $0xe8] sm:$0xff] %v1379_v45  ;;  %1424 = vst [vmem:[%s2543_s25 + $0x39c] sm:$0xff] %v1375_v43 }
 0x1ec   : >> { %1426 = vst [vmem:[%s2543_s25 + $0x3a4] sm:$0xff] %v1377_v44  ;;  %1428 = vst [vmem:[%s2543_s25 + $0x3ac] sm:$0xff] %v1379_v45  ;;  %1317 = sbr.rel (!%p1314_p8) target bundleno = 466 (0x1d2), region = 279 }
 0x1ed   : >> { %1382 = vst [vmem:[%s2543_s25 + $0xf0] sm:$0xff] %v1381_v46  ;;  %1384 = vst [vmem:[%s2543_s25 + $0xf8] sm:$0xff] %v1383_v47 }
 0x1ee   : >> { %1430 = vst [vmem:[%s2543_s25 + $0x3b4] sm:$0xff] %v1381_v46  ;;  %1432 = vst [vmem:[%s2543_s25 + $0x3bc] sm:$0xff] %v1383_v47 }
 0x1ef   : >> { %1434 = vst [vmem:[%s2543_s25 + $0x3c4] sm:$0xff] %v1433_v48  ;;  %1436 = vst [vmem:[%s2543_s25 + $0x3cc] sm:$0xff] %v1435_v49 }
 0x1f0   : >> { %1438 = vst [vmem:[%s2543_s25 + $0x3d4] sm:$0xff] %v1437_v50  ;;  %1440 = vst [vmem:[%s2543_s25 + $0x3dc] sm:$0xff] %v1439_v51 }
 0x1f1   : >> { %1442 = vst [vmem:[%s2543_s25 + $0x3e4] sm:$0xff] %v1441_v52  ;;  %1444 = vst [vmem:[%s2543_s25 + $0x3ec] sm:$0xff] %v1443_v53 }
 0x1f2   : >> { %1446 = vst [vmem:[%s2543_s25 + $0x3f4] sm:$0xff] %v1445_v54  ;;  %1448 = vst [vmem:[%s2543_s25 + $0x3fc] sm:$0xff] %v1447_v55  ;;  %s3514_s25 = smov %s3208_s12 }
 0x1f3 PF: > { %s3280_s14 = sand.u32 31, %s1308_s15   ;;  %s2034_s21 = sshll.u32 %s3122_s24, 12 }
 0x1f4   : > { %s1460_s6 = sshra.s32 %s2034_s21, 4  ;;  %p1997_p9 = scmp.le.s32.totalorder %s3280_s14, 0 }
 0x1f5   : > { %s3284_s9 = scalar_lea.vmem %s3060_s7, %s1460_s6 [#allocation3]   ;;  %s1464_s29 = scalar_lea.vmem %s3109_s23, %s1460_s6  }
 0x1f6   : > { %1851 = sbr.rel (%p1997_p9) target bundleno = 519 (0x207), region = 284  ;;  %s2557_s27 = smov (!%p1997_p9), %s1464_s29  }
 0x1f7   : > { %s2561_s26 = smov (!%p1997_p9), %s3284_s9   ;;  %s2565_s11 = smov (!%p1997_p9), 0  }
 0x1f8   : > { %s2569_s10 = smov (!%p1997_p9), 0  }
 0x1fd LB: >> { %v1476_v56 = vld [vmem:[%s2563_s26] sm:$0xff]  ;;  %s1480_s15 = sadd.s32 1, %s2567_s11  ;;  %s1470_s10 = sadd.s32 1, %s2571_s10   ;;  %s2571_s10 = sphi %s2569_s10, %s1470_s10   ;;  %s2567_s11 = sphi %s2565_s11, %s2566_s11   ;;  %s2563_s26 = sphi %s2561_s26, %s1485_s26   ;;  %s2559_s27 = sphi %s2557_s27, %s1486_s27  }
 0x1fe   : >> { %v1478_v57 = vld [vmem:[%s2563_s26 + $0x40] sm:$0xff]  ;;  %1477 = vst [vmem:[%s2559_s27] sm:$0xff] %v1476_v56  ;;  %p1481_p10 = scmp.ge.s32.totalorder %s1480_s15, %s3280_s14  ;;  %p1469_p11 = scmp.ge.s32.totalorder %s1470_s10, %s3280_s14 }
 0x1ff   : >> { %1479 = vst [vmem:[%s2559_s27 + $0x304] sm:$0xff] %v1478_v57 }
 0x200   : >> { %s3541_s15 = smov (%p1481_p10, %s1480_s15), 0  ;;  %1472 = sbr.rel (!%p1469_p11) target bundleno = 509 (0x1fd), region = 290 }
 0x201   : >> { %s1998_s24 = sshll.u32 %s3541_s15, 3  ;;  %s2566_s11 = smov %s3541_s15  }
 0x202   : >> { %s1485_s26 = scalar_lea.vmem %s3284_s9, %s1998_s24 [#allocation3]   ;;  %s1486_s27 = scalar_lea.vmem %s1464_s29, %s1998_s24  }
 0x207 PF: > { %1489 = sbr.rel (%p1304_p5) target bundleno = 591 (0x24f), region = 143  ;;  %s1491_s25 = ssub.s32 (!%p1304_p5), %s3111_s22, %s3115_s20 }
 0x208   : > { %s1495_s17 = sshrl.u32 (!%p1304_p5), %s3111_s22, 3  ;;  %s3298_s8 = scalar_lea.vmem (!%p1304_p5), %s3060_s7, %s1491_s25 [#allocation3] }
 0x209   : > { %s3301_s5 = scalar_lea.vmem (!%p1304_p5), %s3109_s23, %s1491_s25  ;;  %s3305_s18 = sshrl.u32 (!%p1304_p5), %s1495_s17, 5 }
 0x20a   : > { %p2000_p12 = scmp.le.s32.totalorder (!%p1304_p5), %s3305_s18, 0 }
 0x20e   : > { %1865 = sbr.rel (%p2000_p12) target bundleno = 566 (0x236), region = 295  ;;  %s3517_s28 = smov (!%p2000_p12), %s3109_s23 }
 0x20f   : > { %s3518_s30 = smov (!%p2000_p12), %s3060_s7  ;;  %s3314_s4 = smov (!%p2000_p12), 0  }
 0x210   : > { %s3316_s12 = smov (!%p2000_p12), 0  }
 0x215 LB: >> { %v1508_v58 = vld [vmem:[%s2579_s30] sm:$0xff]  ;;  %v1510_v59 = vld [vmem:[%s2579_s30 + $0x8] sm:$0xff]  ;;  %v1512_v61 = vld [vmem:[%s2579_s30 + $0x10] sm:$0xff]  ;;  %s1636_s14 = sadd.s32 1, %s2583_s4  ;;  %s1502_s12 = sadd.s32 1, %s2587_s12   ;;  %s2587_s12 = sphi %s3316_s12, %s1502_s12   ;;  %s2583_s4 = sphi %s3314_s4, %s3522_s4   ;;  %s2579_s30 = sphi %s3518_s30, %s3521_s30   ;;  %s2575_s28 = sphi %s3517_s28, %s3520_s28  }
 0x216   : >> { %1509 = vst [vmem:[%s2575_s28] sm:$0xff] %v1508_v58  ;;  %1511 = vst [vmem:[%s2575_s28 + $0x8] sm:$0xff] %v1510_v59  ;;  %v1514_v63 = vld [vmem:[%s2579_s30 + $0x18] sm:$0xff]  ;;  %v1516_v0 = vld [vmem:[%s2579_s30 + $0x20] sm:$0xff]  ;;  %p3338_p13 = scmp.ge.s32.totalorder %s1636_s14, %s3305_s18  ;;  %p1501_p0 = scmp.ge.s32.totalorder %s1502_s12, %s3305_s18 }
 0x217   : >> { %1513 = vst [vmem:[%s2575_s28 + $0x10] sm:$0xff] %v1512_v61  ;;  %v1518_v1 = vld [vmem:[%s2579_s30 + $0x28] sm:$0xff]  ;;  %1515 = vst [vmem:[%s2575_s28 + $0x18] sm:$0xff] %v1514_v63  ;;  %v1520_v2 = vld [vmem:[%s2579_s30 + $0x30] sm:$0xff] }
 0x218   : >> { %1517 = vst [vmem:[%s2575_s28 + $0x20] sm:$0xff] %v1516_v0  ;;  %1519 = vst [vmem:[%s2575_s28 + $0x28] sm:$0xff] %v1518_v1  ;;  %v1522_v3 = vld [vmem:[%s2579_s30 + $0x38] sm:$0xff]  ;;  %v1524_v4 = vld [vmem:[%s2579_s30 + $0x40] sm:$0xff]  ;;  %s3543_s14 = smov (%p3338_p13, %s1636_s14), 0 }
 0x219   : >> { %1521 = vst [vmem:[%s2575_s28 + $0x30] sm:$0xff] %v1520_v2  ;;  %1523 = vst [vmem:[%s2575_s28 + $0x38] sm:$0xff] %v1522_v3  ;;  %v1526_v5 = vld [vmem:[%s2579_s30 + $0x48] sm:$0xff]  ;;  %v1528_v6 = vld [vmem:[%s2579_s30 + $0x50] sm:$0xff]  ;;  %s2001_s6 = sshll.u32 %s3543_s14, 8  ;;  %s3522_s4 = smov %s3543_s14 }
 0x21a   : >> { %1525 = vst [vmem:[%s2575_s28 + $0x40] sm:$0xff] %v1524_v4  ;;  %v1530_v7 = vld [vmem:[%s2579_s30 + $0x58] sm:$0xff]  ;;  %1573 = vst [vmem:[%s2575_s28 + $0x304] sm:$0xff] %v1524_v4  ;;  %v1532_v60 = vld [vmem:[%s2579_s30 + $0x60] sm:$0xff]  ;;  %s3388_s9 = scalar_lea.vmem %s3060_s7, %s2001_s6 [#allocation3]   ;;  %s3391_s29 = scalar_lea.vmem %s3109_s23, %s2001_s6  }
 0x21b   : >> { %1527 = vst [vmem:[%s2575_s28 + $0x48] sm:$0xff] %v1526_v5  ;;  %1529 = vst [vmem:[%s2575_s28 + $0x50] sm:$0xff] %v1528_v6  ;;  %v1534_v8 = vld [vmem:[%s2579_s30 + $0x68] sm:$0xff]  ;;  %v1536_v9 = vld [vmem:[%s2579_s30 + $0x70] sm:$0xff] }
 0x21c   : >> { %1531 = vst [vmem:[%s2575_s28 + $0x58] sm:$0xff] %v1530_v7  ;;  %1575 = vst [vmem:[%s2575_s28 + $0x30c] sm:$0xff] %v1526_v5  ;;  %v1538_v10 = vld [vmem:[%s2579_s30 + $0x78] sm:$0xff]  ;;  %v1540_v11 = vld [vmem:[%s2579_s30 + $0x80] sm:$0xff] }
 0x21d   : >> { %1577 = vst [vmem:[%s2575_s28 + $0x314] sm:$0xff] %v1528_v6  ;;  %1579 = vst [vmem:[%s2575_s28 + $0x31c] sm:$0xff] %v1530_v7  ;;  %v1542_v12 = vld [vmem:[%s2579_s30 + $0x88] sm:$0xff]  ;;  %v1544_v62 = vld [vmem:[%s2579_s30 + $0x90] sm:$0xff] }
 0x21e   : >> { %1533 = vst [vmem:[%s2575_s28 + $0x60] sm:$0xff] %v1532_v60  ;;  %1535 = vst [vmem:[%s2575_s28 + $0x68] sm:$0xff] %v1534_v8  ;;  %v1546_v13 = vld [vmem:[%s2579_s30 + $0x98] sm:$0xff]  ;;  %v1548_v14 = vld [vmem:[%s2579_s30 + $0xa0] sm:$0xff] }
 0x21f   : >> { %1537 = vst [vmem:[%s2575_s28 + $0x70] sm:$0xff] %v1536_v9  ;;  %1581 = vst [vmem:[%s2575_s28 + $0x324] sm:$0xff] %v1532_v60  ;;  %v1550_v15 = vld [vmem:[%s2579_s30 + $0xa8] sm:$0xff]  ;;  %v1552_v16 = vld [vmem:[%s2579_s30 + $0xb0] sm:$0xff] }
 0x220   : >> { %1583 = vst [vmem:[%s2575_s28 + $0x32c] sm:$0xff] %v1534_v8  ;;  %1585 = vst [vmem:[%s2575_s28 + $0x334] sm:$0xff] %v1536_v9  ;;  %v1554_v17 = vld [vmem:[%s2579_s30 + $0xb8] sm:$0xff]  ;;  %v1556_v18 = vld [vmem:[%s2579_s30 + $0xc0] sm:$0xff] }
 0x221   : >> { %1539 = vst [vmem:[%s2575_s28 + $0x78] sm:$0xff] %v1538_v10  ;;  %1541 = vst [vmem:[%s2575_s28 + $0x80] sm:$0xff] %v1540_v11  ;;  %v1558_v19 = vld [vmem:[%s2579_s30 + $0xc8] sm:$0xff]  ;;  %v1560_v20 = vld [vmem:[%s2579_s30 + $0xd0] sm:$0xff] }
 0x222   : >> { %1543 = vst [vmem:[%s2575_s28 + $0x88] sm:$0xff] %v1542_v12  ;;  %1587 = vst [vmem:[%s2575_s28 + $0x33c] sm:$0xff] %v1538_v10  ;;  %v1562_v21 = vld [vmem:[%s2579_s30 + $0xd8] sm:$0xff]  ;;  %v1564_v22 = vld [vmem:[%s2579_s30 + $0xe0] sm:$0xff] }
 0x223   : >> { %1589 = vst [vmem:[%s2575_s28 + $0x344] sm:$0xff] %v1540_v11  ;;  %1591 = vst [vmem:[%s2575_s28 + $0x34c] sm:$0xff] %v1542_v12  ;;  %v1566_v23 = vld [vmem:[%s2579_s30 + $0xe8] sm:$0xff]  ;;  %v1568_v24 = vld [vmem:[%s2579_s30 + $0xf0] sm:$0xff] }
 0x224   : >> { %1545 = vst [vmem:[%s2575_s28 + $0x90] sm:$0xff] %v1544_v62  ;;  %1547 = vst [vmem:[%s2575_s28 + $0x98] sm:$0xff] %v1546_v13  ;;  %v1570_v25 = vld [vmem:[%s2579_s30 + $0xf8] sm:$0xff]  ;;  %v1620_v26 = vld [vmem:[%s2579_s30 + $0x100] sm:$0xff] }
 0x225   : >> { %1549 = vst [vmem:[%s2575_s28 + $0xa0] sm:$0xff] %v1548_v14  ;;  %1593 = vst [vmem:[%s2575_s28 + $0x354] sm:$0xff] %v1544_v62  ;;  %v1622_v27 = vld [vmem:[%s2579_s30 + $0x108] sm:$0xff]  ;;  %v1624_v28 = vld [vmem:[%s2579_s30 + $0x110] sm:$0xff] }
 0x226   : >> { %1595 = vst [vmem:[%s2575_s28 + $0x35c] sm:$0xff] %v1546_v13  ;;  %1597 = vst [vmem:[%s2575_s28 + $0x364] sm:$0xff] %v1548_v14  ;;  %v1626_v29 = vld [vmem:[%s2579_s30 + $0x118] sm:$0xff]  ;;  %v1628_v30 = vld [vmem:[%s2579_s30 + $0x120] sm:$0xff] }
 0x227   : >> { %1551 = vst [vmem:[%s2575_s28 + $0xa8] sm:$0xff] %v1550_v15  ;;  %1553 = vst [vmem:[%s2575_s28 + $0xb0] sm:$0xff] %v1552_v16  ;;  %v1630_v31 = vld [vmem:[%s2579_s30 + $0x128] sm:$0xff]  ;;  %v1632_v32 = vld [vmem:[%s2579_s30 + $0x130] sm:$0xff] }
 0x228   : >> { %1555 = vst [vmem:[%s2575_s28 + $0xb8] sm:$0xff] %v1554_v17  ;;  %1599 = vst [vmem:[%s2575_s28 + $0x36c] sm:$0xff] %v1550_v15  ;;  %v1634_v33 = vld [vmem:[%s2579_s30 + $0x138] sm:$0xff]  ;;  %s3521_s30 = smov %s3388_s9 }
 0x229   : >> { %1601 = vst [vmem:[%s2575_s28 + $0x374] sm:$0xff] %v1552_v16  ;;  %1603 = vst [vmem:[%s2575_s28 + $0x37c] sm:$0xff] %v1554_v17 }
 0x22a   : >> { %1557 = vst [vmem:[%s2575_s28 + $0xc0] sm:$0xff] %v1556_v18  ;;  %1559 = vst [vmem:[%s2575_s28 + $0xc8] sm:$0xff] %v1558_v19 }
 0x22b   : >> { %1561 = vst [vmem:[%s2575_s28 + $0xd0] sm:$0xff] %v1560_v20  ;;  %1605 = vst [vmem:[%s2575_s28 + $0x384] sm:$0xff] %v1556_v18 }
 0x22c   : >> { %1607 = vst [vmem:[%s2575_s28 + $0x38c] sm:$0xff] %v1558_v19  ;;  %1609 = vst [vmem:[%s2575_s28 + $0x394] sm:$0xff] %v1560_v20 }
 0x22d   : >> { %1563 = vst [vmem:[%s2575_s28 + $0xd8] sm:$0xff] %v1562_v21  ;;  %1565 = vst [vmem:[%s2575_s28 + $0xe0] sm:$0xff] %v1564_v22 }
 0x22e   : >> { %1567 = vst [vmem:[%s2575_s28 + $0xe8] sm:$0xff] %v1566_v23  ;;  %1611 = vst [vmem:[%s2575_s28 + $0x39c] sm:$0xff] %v1562_v21 }
 0x22f   : >> { %1613 = vst [vmem:[%s2575_s28 + $0x3a4] sm:$0xff] %v1564_v22  ;;  %1615 = vst [vmem:[%s2575_s28 + $0x3ac] sm:$0xff] %v1566_v23  ;;  %1504 = sbr.rel (!%p1501_p0) target bundleno = 533 (0x215), region = 301 }
 0x230   : >> { %1569 = vst [vmem:[%s2575_s28 + $0xf0] sm:$0xff] %v1568_v24  ;;  %1571 = vst [vmem:[%s2575_s28 + $0xf8] sm:$0xff] %v1570_v25 }
 0x231   : >> { %1617 = vst [vmem:[%s2575_s28 + $0x3b4] sm:$0xff] %v1568_v24  ;;  %1619 = vst [vmem:[%s2575_s28 + $0x3bc] sm:$0xff] %v1570_v25 }
 0x232   : >> { %1621 = vst [vmem:[%s2575_s28 + $0x3c4] sm:$0xff] %v1620_v26  ;;  %1623 = vst [vmem:[%s2575_s28 + $0x3cc] sm:$0xff] %v1622_v27 }
 0x233   : >> { %1625 = vst [vmem:[%s2575_s28 + $0x3d4] sm:$0xff] %v1624_v28  ;;  %1627 = vst [vmem:[%s2575_s28 + $0x3dc] sm:$0xff] %v1626_v29 }
 0x234   : >> { %1629 = vst [vmem:[%s2575_s28 + $0x3e4] sm:$0xff] %v1628_v30  ;;  %1631 = vst [vmem:[%s2575_s28 + $0x3ec] sm:$0xff] %v1630_v31 }
 0x235   : >> { %1633 = vst [vmem:[%s2575_s28 + $0x3f4] sm:$0xff] %v1632_v32  ;;  %1635 = vst [vmem:[%s2575_s28 + $0x3fc] sm:$0xff] %v1634_v33  ;;  %s3520_s28 = smov %s3391_s29 }
 0x236 PF: > { %s3463_s27 = sand.u32 31, %s1495_s17   ;;  %s2036_s26 = sshll.u32 %s3305_s18, 12 }
 0x237   : > { %s1647_s11 = sshra.s32 %s2036_s26, 4  ;;  %p2006_p1 = scmp.le.s32.totalorder %s3463_s27, 0 }
 0x238   : > { %s3467_s10 = scalar_lea.vmem %s3060_s7, %s1647_s11 [#allocation3]   ;;  %s1651_s15 = scalar_lea.vmem %s3109_s23, %s1647_s11  }
 0x239   : > { %1879 = sbr.rel (%p2006_p1) target bundleno = 586 (0x24a), region = 306  ;;  %s2589_s24 = smov (!%p2006_p1), %s1651_s15  }
 0x23a   : > { %s2593_s25 = smov (!%p2006_p1), %s3467_s10   ;;  %s2597_s12 = smov (!%p2006_p1), 0  }
 0x23b   : > { %s2601_s28 = smov (!%p2006_p1), 0  }
 0x240 LB: >> { %v1663_v34 = vld [vmem:[%s2595_s25] sm:$0xff]  ;;  %s1667_s17 = sadd.s32 1, %s2599_s12  ;;  %s1657_s28 = sadd.s32 1, %s2603_s28   ;;  %s2603_s28 = sphi %s2601_s28, %s1657_s28   ;;  %s2599_s12 = sphi %s2597_s12, %s2598_s12   ;;  %s2595_s25 = sphi %s2593_s25, %s1672_s25   ;;  %s2591_s24 = sphi %s2589_s24, %s1673_s24  }
 0x241   : >> { %v1665_v35 = vld [vmem:[%s2595_s25 + $0x40] sm:$0xff]  ;;  %1664 = vst [vmem:[%s2591_s24] sm:$0xff] %v1663_v34  ;;  %p1668_p2 = scmp.ge.s32.totalorder %s1667_s17, %s3463_s27  ;;  %p1656_p3 = scmp.ge.s32.totalorder %s1657_s28, %s3463_s27 }
 0x242   : >> { %1666 = vst [vmem:[%s2591_s24 + $0x304] sm:$0xff] %v1665_v35 }
 0x243   : >> { %s3545_s17 = smov (%p1668_p2, %s1667_s17), 0  ;;  %1659 = sbr.rel (!%p1656_p3) target bundleno = 576 (0x240), region = 312 }
 0x244   : >> { %s2007_s18 = sshll.u32 %s3545_s17, 3  ;;  %s2598_s12 = smov %s3545_s17  }
 0x245   : >> { %s1672_s25 = scalar_lea.vmem %s3467_s10, %s2007_s18 [#allocation3]   ;;  %s1673_s24 = scalar_lea.vmem %s1651_s15, %s2007_s18  }
 0x24a PF: > { %s2608_s30 = smov 0  }
 0x24b   : > { %s1674_s4 = sshllo.u32 %s2608_s30, %s3115_s20 }
 0x24c   : > { %v1683_v36 = vld [vmem:[%s3298_s8] sm:%s1674_s4] }
 0x24d   : > { %v1685_v37 = vld [vmem:[%s3298_s8 + $0x40] sm:%s1674_s4]  ;;  %1684 = vst [vmem:[%s3301_s5] sm:%s1674_s4] %v1683_v36 }
 0x24e   : > { %1686 = vst [vmem:[%s3301_s5 + $0x304] sm:%s1674_s4] %v1685_v37 }
 0x24f PF: > { %p2009_p5 = scmp.ge.u32.totalorder %s3111_s22, 8 }
 0x250   : > { %s2609_s14 = smov (!%p2009_p5), 0  }
 0x251   : > { %1289 = sbr.rel (%p2009_p5) target bundleno = 600 (0x258), region = 114  ;;  %s1290_s21 = sshllo.u32 (!%p2009_p5), %s2609_s14, %s3111_s22 }
 0x252   : > { %v1299_v38 = vld [vmem:[%s3060_s7] sm:%s1290_s21] (!%p2009_p5) }
 0x253   : > { %v1301_v39 = vld [vmem:[%s3060_s7 + $0x40] sm:%s1290_s21] (!%p2009_p5)  ;;  %1300 = vst [vmem:[%s3109_s23] sm:%s1290_s21] (!%p2009_p5), %v1299_v38 }
 0x254   : > { %1302 = vst [vmem:[%s3109_s23 + $0x304] sm:%s1290_s21] (!%p2009_p5), %v1301_v39 }
 0x258 PF: > { %p10_p4 = scmp.ge.s32.totalorder %s2649_s16, 15   ;;  %s3523_s12 = smov %s2471_s13 }
 0x259   : > { %s3524_s13 = smov %s2659_s19  ;;  %s3525_s14 = smov %s2649_s16 }
 0x25a   :  { %12 = sbr.rel (!%p10_p4) target bundleno = 2 (0x2), region = 323 }

// kernel: discriminator_forward.6
= control target key start
LH: loop header
LB: loop body
LE: loop exit
PB: predicated region body
PF: predicated region fallthrough
CT: control target
= control target key end

     0   :  { %s1733_s12 = smov 0   ;;  %s1735_s13 = smov 0   ;;  %s2141_s0 = inlined_call_operand.vmem [shape: bf16[16,72], index: 0, kind: input, shape index: {}]   ;;  %s2142_s1 = inlined_call_operand.vmem [shape: bf16[72,6050], index: 1, kind: input, shape index: {}]   ;;  %s2143_s2 = inlined_call_operand.vmem [shape: f32[16,1], index: 2, kind: input, shape index: {}]   ;;  %s2144_s3 = inlined_call_operand.vmem [shape: bf16[16,6050], index: 3, kind: output, shape index: {}]  }
   0x1   :  { %s1737_s14 = smov 0  }
   0x2 LB: > { %s1499_s15 = sadd.s32 4294967295, %s1710_s14   ;;  %s1750_s16 = sadd.s32 1, %s1710_s14   ;;  %s1710_s14 = sphi %s1737_s14, %s2148_s14   ;;  %s1706_s13 = sphi %s1735_s13, %s2147_s13   ;;  %s1702_s12 = sphi %s1733_s12, %s2146_s12  }
   0x3   : > { %s38_s17 = ssub.s32 %s1710_s14, %s1750_s16  ;;  %s41_s18 = sadd.s32 1, %s1706_s13 }
   0x4   : > { %p39_p0 = scmp.eq.s32.totalorder %s38_s17, 0  ;;  %p48_p1 = scmp.ne.s32.totalorder %s1706_s13, %s1702_s12 }
   0x5   : > { %p49_p2 = scmp.eq.s32.totalorder %s1710_s14, 0  ;;  %p99_p3 = scmp.eq.s32.totalorder %s1499_s15, 2 }
   0x6   : > { %s1761_s19 = scalar_select %p39_p0, %s1706_s13, %s41_s18  }
   0x7   : > { %p50_p4 = por %p49_p2, %p48_p1  ;;  %p1763_p5 = por %p99_p3, %p48_p1 }
   0x8   : > { %p1502_p6 = scmp.ge.s32.totalorder %s1710_s14, 3 }
   0xa   : > { %127 = sbr.rel (%p1502_p6) target bundleno = 58 (0x3a), region = 24 }
  0x11   : > { %130 = sbr.rel (!%p50_p4) target bundleno = 58 (0x3a), region = 28  ;;  %s132_s21 = sand.u32 (%p50_p4), 1, %s1706_s13  }
  0x12   : > { %s1625_s22 = sshll.u32 (%p50_p4), %s1710_s14, 6  ;;  %s1643_s23 = smul.u32 (%p50_p4), 576, %s132_s21 }
  0x13   : > { %s1773_s26 = scalar_lea.vmem (%p50_p4), %s2142_s1, %s1625_s22 }
  0x14   : > { %v150_v0 = vld [vmem:[%s1773_s26] sm:$0xff] (%p50_p4)  ;;  %v152_v1 = vld [vmem:[%s1773_s26 + $0x8] sm:$0xff] (%p50_p4)  ;;  %v154_v2 = vld [vmem:[%s1773_s26 + $0x10] sm:$0xff] (%p50_p4)  ;;  %s1781_s27 = scalar_lea.vmem (%p50_p4), [#allocation2], %s1643_s23 }
  0x15   : > { %v156_v3 = vld [vmem:[%s1773_s26 + $0x18] sm:$0xff] (%p50_p4)  ;;  %v158_v4 = vld [vmem:[%s1773_s26 + $0x20] sm:$0xff] (%p50_p4)  ;;  %v160_v5 = vld [vmem:[%s1773_s26 + $0x28] sm:$0xff] (%p50_p4)  ;;  %151 = vst [vmem:[%s1781_s27] sm:$0xff] (%p50_p4), %v150_v0 }
  0x16   : > { %153 = vst [vmem:[%s1781_s27 + $0x8] sm:$0xff] (%p50_p4), %v152_v1  ;;  %155 = vst [vmem:[%s1781_s27 + $0x10] sm:$0xff] (%p50_p4), %v154_v2  ;;  %v162_v6 = vld [vmem:[%s1773_s26 + $0x30] sm:$0xff] (%p50_p4)  ;;  %v164_v7 = vld [vmem:[%s1773_s26 + $0x38] sm:$0xff] (%p50_p4) }
  0x17   : > { %157 = vst [vmem:[%s1781_s27 + $0x18] sm:$0xff] (%p50_p4), %v156_v3  ;;  %159 = vst [vmem:[%s1781_s27 + $0x20] sm:$0xff] (%p50_p4), %v158_v4  ;;  %v166_v8 = vld [vmem:[%s1773_s26 + $0xc0] sm:$0xff] (%p50_p4)  ;;  %v168_v9 = vld [vmem:[%s1773_s26 + $0xc8] sm:$0xff] (%p50_p4) }
  0x18   : > { %161 = vst [vmem:[%s1781_s27 + $0x28] sm:$0xff] %v160_v5  ;;  %163 = vst [vmem:[%s1781_s27 + $0x30] sm:$0xff] %v162_v6  ;;  %v170_v10 = vld [vmem:[%s1773_s26 + $0xd0] sm:$0xff]  ;;  %v172_v11 = vld [vmem:[%s1773_s26 + $0xd8] sm:$0xff] }
  0x19   : > { %165 = vst [vmem:[%s1781_s27 + $0x38] sm:$0xff] %v164_v7  ;;  %167 = vst [vmem:[%s1781_s27 + $0x40] sm:$0xff] %v166_v8  ;;  %v174_v12 = vld [vmem:[%s1773_s26 + $0xe0] sm:$0xff]  ;;  %v176_v13 = vld [vmem:[%s1773_s26 + $0xe8] sm:$0xff] }
  0x1a   : > { %169 = vst [vmem:[%s1781_s27 + $0x48] sm:$0xff] %v168_v9  ;;  %171 = vst [vmem:[%s1781_s27 + $0x50] sm:$0xff] %v170_v10  ;;  %v178_v14 = vld [vmem:[%s1773_s26 + $0xf0] sm:$0xff]  ;;  %v180_v15 = vld [vmem:[%s1773_s26 + $0xf8] sm:$0xff] }
  0x1b   : > { %173 = vst [vmem:[%s1781_s27 + $0x58] sm:$0xff] %v172_v11  ;;  %175 = vst [vmem:[%s1781_s27 + $0x60] sm:$0xff] %v174_v12  ;;  %v182_v16 = vld [vmem:[%s1773_s26 + $0x180] sm:$0xff]  ;;  %v184_v17 = vld [vmem:[%s1773_s26 + $0x188] sm:$0xff] }
  0x1c   : > { %177 = vst [vmem:[%s1781_s27 + $0x68] sm:$0xff] %v176_v13  ;;  %179 = vst [vmem:[%s1781_s27 + $0x70] sm:$0xff] %v178_v14  ;;  %v186_v18 = vld [vmem:[%s1773_s26 + $0x190] sm:$0xff]  ;;  %v188_v19 = vld [vmem:[%s1773_s26 + $0x198] sm:$0xff] }
  0x1d   : > { %181 = vst [vmem:[%s1781_s27 + $0x78] sm:$0xff] %v180_v15  ;;  %183 = vst [vmem:[%s1781_s27 + $0x80] sm:$0xff] %v182_v16  ;;  %v190_v20 = vld [vmem:[%s1773_s26 + $0x1a0] sm:$0xff]  ;;  %v192_v21 = vld [vmem:[%s1773_s26 + $0x1a8] sm:$0xff] }
  0x1e   : > { %185 = vst [vmem:[%s1781_s27 + $0x88] sm:$0xff] %v184_v17  ;;  %187 = vst [vmem:[%s1781_s27 + $0x90] sm:$0xff] %v186_v18  ;;  %v194_v22 = vld [vmem:[%s1773_s26 + $0x1b0] sm:$0xff]  ;;  %v196_v23 = vld [vmem:[%s1773_s26 + $0x1b8] sm:$0xff] }
  0x1f   : > { %189 = vst [vmem:[%s1781_s27 + $0x98] sm:$0xff] %v188_v19  ;;  %191 = vst [vmem:[%s1781_s27 + $0xa0] sm:$0xff] %v190_v20  ;;  %v198_v24 = vld [vmem:[%s1773_s26 + $0x240] sm:$0xff]  ;;  %v200_v25 = vld [vmem:[%s1773_s26 + $0x248] sm:$0xff] }
  0x20   : > { %193 = vst [vmem:[%s1781_s27 + $0xa8] sm:$0xff] %v192_v21  ;;  %195 = vst [vmem:[%s1781_s27 + $0xb0] sm:$0xff] %v194_v22  ;;  %v202_v26 = vld [vmem:[%s1773_s26 + $0x250] sm:$0xff]  ;;  %v204_v27 = vld [vmem:[%s1773_s26 + $0x258] sm:$0xff] }
  0x21   : > { %197 = vst [vmem:[%s1781_s27 + $0xb8] sm:$0xff] %v196_v23  ;;  %199 = vst [vmem:[%s1781_s27 + $0xc0] sm:$0xff] %v198_v24  ;;  %v206_v28 = vld [vmem:[%s1773_s26 + $0x260] sm:$0xff]  ;;  %v208_v29 = vld [vmem:[%s1773_s26 + $0x268] sm:$0xff] }
  0x22   : > { %201 = vst [vmem:[%s1781_s27 + $0xc8] sm:$0xff] %v200_v25  ;;  %203 = vst [vmem:[%s1781_s27 + $0xd0] sm:$0xff] %v202_v26  ;;  %v210_v30 = vld [vmem:[%s1773_s26 + $0x270] sm:$0xff]  ;;  %v212_v31 = vld [vmem:[%s1773_s26 + $0x278] sm:$0xff] }
  0x23   : > { %205 = vst [vmem:[%s1781_s27 + $0xd8] sm:$0xff] %v204_v27  ;;  %207 = vst [vmem:[%s1781_s27 + $0xe0] sm:$0xff] %v206_v28  ;;  %v214_v32 = vld [vmem:[%s1773_s26 + $0x300] sm:$0xff]  ;;  %v216_v33 = vld [vmem:[%s1773_s26 + $0x308] sm:$0xff] }
  0x24   : > { %209 = vst [vmem:[%s1781_s27 + $0xe8] sm:$0xff] %v208_v29  ;;  %211 = vst [vmem:[%s1781_s27 + $0xf0] sm:$0xff] %v210_v30  ;;  %v218_v34 = vld [vmem:[%s1773_s26 + $0x310] sm:$0xff]  ;;  %v220_v35 = vld [vmem:[%s1773_s26 + $0x318] sm:$0xff] }
  0x25   : > { %213 = vst [vmem:[%s1781_s27 + $0xf8] sm:$0xff] %v212_v31  ;;  %215 = vst [vmem:[%s1781_s27 + $0x100] sm:$0xff] %v214_v32  ;;  %v222_v36 = vld [vmem:[%s1773_s26 + $0x320] sm:$0xff]  ;;  %v224_v37 = vld [vmem:[%s1773_s26 + $0x328] sm:$0xff] }
  0x26   : > { %217 = vst [vmem:[%s1781_s27 + $0x108] sm:$0xff] %v216_v33  ;;  %219 = vst [vmem:[%s1781_s27 + $0x110] sm:$0xff] %v218_v34  ;;  %v226_v38 = vld [vmem:[%s1773_s26 + $0x330] sm:$0xff]  ;;  %v228_v39 = vld [vmem:[%s1773_s26 + $0x338] sm:$0xff] }
  0x27   : > { %221 = vst [vmem:[%s1781_s27 + $0x118] sm:$0xff] %v220_v35  ;;  %223 = vst [vmem:[%s1781_s27 + $0x120] sm:$0xff] %v222_v36  ;;  %v230_v40 = vld [vmem:[%s1773_s26 + $0x3c0] sm:$0xff]  ;;  %v232_v41 = vld [vmem:[%s1773_s26 + $0x3c8] sm:$0xff] }
  0x28   : > { %225 = vst [vmem:[%s1781_s27 + $0x128] sm:$0xff] %v224_v37  ;;  %227 = vst [vmem:[%s1781_s27 + $0x130] sm:$0xff] %v226_v38  ;;  %v234_v42 = vld [vmem:[%s1773_s26 + $0x3d0] sm:$0xff]  ;;  %v236_v43 = vld [vmem:[%s1773_s26 + $0x3d8] sm:$0xff] }
  0x29   : > { %229 = vst [vmem:[%s1781_s27 + $0x138] sm:$0xff] %v228_v39  ;;  %231 = vst [vmem:[%s1781_s27 + $0x140] sm:$0xff] %v230_v40  ;;  %v238_v44 = vld [vmem:[%s1773_s26 + $0x3e0] sm:$0xff]  ;;  %v240_v45 = vld [vmem:[%s1773_s26 + $0x3e8] sm:$0xff] }
  0x2a   : > { %233 = vst [vmem:[%s1781_s27 + $0x148] sm:$0xff] %v232_v41  ;;  %235 = vst [vmem:[%s1781_s27 + $0x150] sm:$0xff] %v234_v42  ;;  %v242_v46 = vld [vmem:[%s1773_s26 + $0x3f0] sm:$0xff]  ;;  %v244_v47 = vld [vmem:[%s1773_s26 + $0x3f8] sm:$0xff] }
  0x2b   : > { %237 = vst [vmem:[%s1781_s27 + $0x158] sm:$0xff] %v236_v43  ;;  %239 = vst [vmem:[%s1781_s27 + $0x160] sm:$0xff] %v238_v44  ;;  %v246_v48 = vld [vmem:[%s1773_s26 + $0x480] sm:$0xff]  ;;  %v248_v49 = vld [vmem:[%s1773_s26 + $0x488] sm:$0xff] }
  0x2c   : > { %241 = vst [vmem:[%s1781_s27 + $0x168] sm:$0xff] %v240_v45  ;;  %243 = vst [vmem:[%s1781_s27 + $0x170] sm:$0xff] %v242_v46  ;;  %v250_v50 = vld [vmem:[%s1773_s26 + $0x490] sm:$0xff]  ;;  %v252_v51 = vld [vmem:[%s1773_s26 + $0x498] sm:$0xff] }
  0x2d   : > { %245 = vst [vmem:[%s1781_s27 + $0x178] sm:$0xff] %v244_v47  ;;  %247 = vst [vmem:[%s1781_s27 + $0x180] sm:$0xff] %v246_v48  ;;  %v254_v52 = vld [vmem:[%s1773_s26 + $0x4a0] sm:$0xff]  ;;  %v256_v53 = vld [vmem:[%s1773_s26 + $0x4a8] sm:$0xff] }
  0x2e   : > { %249 = vst [vmem:[%s1781_s27 + $0x188] sm:$0xff] %v248_v49  ;;  %251 = vst [vmem:[%s1781_s27 + $0x190] sm:$0xff] %v250_v50  ;;  %v258_v54 = vld [vmem:[%s1773_s26 + $0x4b0] sm:$0xff]  ;;  %v260_v55 = vld [vmem:[%s1773_s26 + $0x4b8] sm:$0xff] }
  0x2f   : > { %253 = vst [vmem:[%s1781_s27 + $0x198] sm:$0xff] %v252_v51  ;;  %255 = vst [vmem:[%s1781_s27 + $0x1a0] sm:$0xff] %v254_v52  ;;  %v262_v56 = vld [vmem:[%s1773_s26 + $0x540] sm:$0xff]  ;;  %v264_v57 = vld [vmem:[%s1773_s26 + $0x548] sm:$0xff] }
  0x30   : > { %257 = vst [vmem:[%s1781_s27 + $0x1a8] sm:$0xff] %v256_v53  ;;  %259 = vst [vmem:[%s1781_s27 + $0x1b0] sm:$0xff] %v258_v54  ;;  %v266_v58 = vld [vmem:[%s1773_s26 + $0x550] sm:$0xff]  ;;  %v268_v59 = vld [vmem:[%s1773_s26 + $0x558] sm:$0xff] }
  0x31   : > { %261 = vst [vmem:[%s1781_s27 + $0x1b8] sm:$0xff] %v260_v55  ;;  %263 = vst [vmem:[%s1781_s27 + $0x1c0] sm:$0xff] %v262_v56  ;;  %v270_v60 = vld [vmem:[%s1773_s26 + $0x560] sm:$0xff]  ;;  %v272_v61 = vld [vmem:[%s1773_s26 + $0x568] sm:$0xff] }
  0x32   : > { %265 = vst [vmem:[%s1781_s27 + $0x1c8] sm:$0xff] %v264_v57  ;;  %267 = vst [vmem:[%s1781_s27 + $0x1d0] sm:$0xff] %v266_v58  ;;  %v274_v62 = vld [vmem:[%s1773_s26 + $0x570] sm:$0xff]  ;;  %v276_v63 = vld [vmem:[%s1773_s26 + $0x578] sm:$0xff] }
  0x33   : > { %269 = vst [vmem:[%s1781_s27 + $0x1d8] sm:$0xff] %v268_v59  ;;  %271 = vst [vmem:[%s1781_s27 + $0x1e0] sm:$0xff] %v270_v60  ;;  %v278_v0 = vld [vmem:[%s1773_s26 + $0x600] sm:$0xff]  ;;  %v280_v1 = vld [vmem:[%s1773_s26 + $0x608] sm:$0xff] }
  0x34   : > { %273 = vst [vmem:[%s1781_s27 + $0x1e8] sm:$0xff] %v272_v61  ;;  %275 = vst [vmem:[%s1781_s27 + $0x1f0] sm:$0xff] %v274_v62  ;;  %v282_v2 = vld [vmem:[%s1773_s26 + $0x610] sm:$0xff]  ;;  %v284_v3 = vld [vmem:[%s1773_s26 + $0x618] sm:$0xff] }
  0x35   : > { %277 = vst [vmem:[%s1781_s27 + $0x1f8] sm:$0xff] %v276_v63  ;;  %279 = vst [vmem:[%s1781_s27 + $0x200] sm:$0xff] %v278_v0  ;;  %v286_v4 = vld [vmem:[%s1773_s26 + $0x620] sm:$0xff]  ;;  %v288_v5 = vld [vmem:[%s1773_s26 + $0x628] sm:$0xff] }
  0x36   : > { %281 = vst [vmem:[%s1781_s27 + $0x208] sm:$0xff] %v280_v1  ;;  %283 = vst [vmem:[%s1781_s27 + $0x210] sm:$0xff] %v282_v2  ;;  %v290_v6 = vld [vmem:[%s1773_s26 + $0x630] sm:$0xff]  ;;  %v292_v7 = vld [vmem:[%s1773_s26 + $0x638] sm:$0xff] }
  0x37   : > { %285 = vst [vmem:[%s1781_s27 + $0x218] sm:$0xff] %v284_v3  ;;  %287 = vst [vmem:[%s1781_s27 + $0x220] sm:$0xff] %v286_v4 }
  0x38   : > { %289 = vst [vmem:[%s1781_s27 + $0x228] sm:$0xff] %v288_v5  ;;  %291 = vst [vmem:[%s1781_s27 + $0x230] sm:$0xff] %v290_v6 }
  0x39   : > { %293 = vst [vmem:[%s1781_s27 + $0x238] sm:$0xff] %v292_v7 }
  0x3a PF: > { %p1505_p7 = scmp.ge.s32.totalorder %s1710_s14, 1  ;;  %p298_p8 = scmp.lt.s32.totalorder %s1710_s14, 4 }
  0x3c   : > { %p299_p9 = pnand %p1505_p7, %p298_p8 }
  0x3d   : > { %s305_s28 = sand.u32 (!%p299_p9), 1, %s1702_s12   ;;  %v1712_v8 = vmov (!%p299_p9), 0   ;;  %v404_v9 = vld [vmem:[%s2143_s2] sm:$0xff] (!%p299_p9)  ;;  %v405_v10 = vld [vmem:[%s2143_s2 + $0x8] sm:$0xff] (!%p299_p9)  ;;  %vm785_vm0 = vcmask (!%p299_p9), 1043456   ;;  %vm781_vm1 = vcmask (!%p299_p9), 588800  }
  0x3e   : > { %302 = sbr.rel (%p299_p9) target bundleno = 384 (0x180), region = 51  ;;  %866 = vmatprep.mubr.bf16.mxu0 (!%p299_p9), %v1712_v8  ;;  %909 = vmatprep.mubr.bf16.mxu1 (!%p299_p9), %v1712_v8  ;;  %v1968_v59 = vld [vmem:[%s2141_s0] sm:$0xff] (!%p299_p9)   ;;  %s1506_s10 = sshll.u32 (!%p299_p9), %s305_s28, 7 }
  0x3f   : > { %s1644_s29 = smul.u32 (!%p299_p9), 576, %s305_s28  ;;  %1670 = vset.pattern.permute.xlu0 (!%p299_p9), %v1712_v8  ;;  %s2066_s11 = scalar_lea.vmem (!%p299_p9), [#allocation3], %s1506_s10 }
  0x40   : > { %408 = vperm.xlu0 (!%p299_p9), %1670, %v404_v9  }
  0x41   : > { %s1935_s7 = scalar_lea.vmem (!%p299_p9), [#allocation2], %s1644_s29 }
  0x42   : > { %v332_v11 = vld [vmem:[%s1935_s7] sm:$0xff] (!%p299_p9)  ;;  %v333_v13 = vld [vmem:[%s1935_s7 + $0x8] sm:$0xff] (!%p299_p9)  ;;  %v334_v49 = vld [vmem:[%s1935_s7 + $0x10] sm:$0xff] (!%p299_p9) }
  0x43   : > { %v340_v12 = vld [vmem:[%s1935_s7 + $0x40] sm:$0xff] (!%p299_p9)  ;;  %v341_v15 = vld [vmem:[%s1935_s7 + $0x48] sm:$0xff] (!%p299_p9)  ;;  %v342_v50 = vld [vmem:[%s1935_s7 + $0x50] sm:$0xff] (!%p299_p9) }
  0x44   : > { %v1509_v14 = vcombine.high (!%p299_p9), %v332_v11, %v340_v12  ;;  %v1508_v16 = vcombine.low (!%p299_p9), %v332_v11, %v340_v12  ;;  %v348_v17 = vld [vmem:[%s1935_s7 + $0x80] sm:$0xff] (!%p299_p9)  ;;  %v1511_v19 = vcombine.high (!%p299_p9), %v333_v13, %v341_v15  ;;  %v1510_v20 = vcombine.low (!%p299_p9), %v333_v13, %v341_v15  ;;  %v349_v22 = vld [vmem:[%s1935_s7 + $0x88] sm:$0xff] (!%p299_p9)  ;;  %413 = vperm.xlu0 (!%p299_p9), %1670, %v405_v10   ;;  %v335_v51 = vld [vmem:[%s1935_s7 + $0x18] sm:$0xff] (!%p299_p9) }
  0x45   : > { %v356_v18 = vld [vmem:[%s1935_s7 + $0xc0] sm:$0xff]  ;;  %v357_v23 = vld [vmem:[%s1935_s7 + $0xc8] sm:$0xff]  ;;  %v343_v52 = vld [vmem:[%s1935_s7 + $0x58] sm:$0xff]  ;;  %v1513_v54 = vcombine.high %v334_v49, %v342_v50  ;;  %v1512_v62 = vcombine.low %v334_v49, %v342_v50  ;;  %s1642_s12 = sshll.u32 (%p1763_p5), %s1499_s15, 6 }
  0x46   : > { %v1525_v21 = vcombine.high %v348_v17, %v356_v18  ;;  %v364_v24 = vld [vmem:[%s1935_s7 + $0x100] sm:$0xff]  ;;  %834 = vmatprep.subr.bf16.mxu0 %v1509_v14  ;;  %v1527_v25 = vcombine.high %v349_v22, %v357_v23  ;;  %v365_v27 = vld [vmem:[%s1935_s7 + $0x108] sm:$0xff]  ;;  %877 = vmatprep.subr.bf16.mxu1 %v1511_v19  ;;  %v1524_v29 = vcombine.low %v348_v17, %v356_v18  ;;  %v350_v57 = vld [vmem:[%s1935_s7 + $0x90] sm:$0xff]  ;;  %s1395_s20 = scalar_lea.vmem (%p1763_p5), %s2144_s3, %s1642_s12 }
  0x47   : > { %v372_v26 = vld [vmem:[%s1935_s7 + $0x140] sm:$0xff]  ;;  %v373_v28 = vld [vmem:[%s1935_s7 + $0x148] sm:$0xff]  ;;  %835 = vmatpush1.bf16.msra.mxu0 %v1508_v16  ;;  %878 = vmatpush1.bf16.msra.mxu1 %v1510_v20  ;;  %v1526_v30 = vcombine.low %v349_v22, %v357_v23  ;;  %v1515_v56 = vcombine.high %v335_v51, %v343_v52  ;;  %v358_v58 = vld [vmem:[%s1935_s7 + $0xd0] sm:$0xff]  ;;  %v1514_v63 = vcombine.low %v335_v51, %v343_v52 }
  0x48   : > { %836 = vmatprep.subr.bf16.mxu0 %v1525_v21  ;;  %v1541_v31 = vcombine.high %v364_v24, %v372_v26  ;;  %879 = vmatprep.subr.bf16.mxu1 %v1527_v25  ;;  %v1543_v32 = vcombine.high %v365_v27, %v373_v28  ;;  %v380_v33 = vld [vmem:[%s1935_s7 + $0x180] sm:$0xff]  ;;  %v381_v35 = vld [vmem:[%s1935_s7 + $0x188] sm:$0xff]  ;;  %v1540_v37 = vcombine.low %v364_v24, %v372_v26  ;;  %v351_v60 = vld [vmem:[%s1935_s7 + $0x98] sm:$0xff] }
  0x49   : > { %v388_v34 = vld [vmem:[%s1935_s7 + $0x1c0] sm:$0xff]  ;;  %v389_v36 = vld [vmem:[%s1935_s7 + $0x1c8] sm:$0xff]  ;;  %v1542_v38 = vcombine.low %v365_v27, %v373_v28  ;;  %v359_v61 = vld [vmem:[%s1935_s7 + $0xd8] sm:$0xff]  ;;  %v1529_v0 = vcombine.high %v350_v57, %v358_v58  ;;  %v1528_v6 = vcombine.low %v350_v57, %v358_v58 }
  0x4a   : > { %v1557_v39 = vcombine.high %v380_v33, %v388_v34  ;;  %v1559_v40 = vcombine.high %v381_v35, %v389_v36  ;;  %v396_v41 = vld [vmem:[%s1935_s7 + $0x200] sm:$0xff]  ;;  %v397_v42 = vld [vmem:[%s1935_s7 + $0x208] sm:$0xff]  ;;  %v1556_v43 = vcombine.low %v380_v33, %v388_v34  ;;  %v1558_v44 = vcombine.low %v381_v35, %v389_v36  ;;  %v366_v2 = vld [vmem:[%s1935_s7 + $0x110] sm:$0xff] }
  0x4b   : > { %837 = vmatpush1.bf16.msra.mxu0 %v1524_v29  ;;  %880 = vmatpush1.bf16.msra.mxu1 %v1526_v30  ;;  %v1573_v45 = vcombine.high %v396_v41, %v396_v41  ;;  %v1572_v46 = vcombine.low %v396_v41, %v396_v41  ;;  %v1575_v47 = vcombine.high %v397_v42, %v397_v42  ;;  %v374_v3 = vld [vmem:[%s1935_s7 + $0x150] sm:$0xff]  ;;  %v367_v4 = vld [vmem:[%s1935_s7 + $0x118] sm:$0xff]  ;;  %v336_v27 = vld [vmem:[%s1935_s7 + $0x20] sm:$0xff] }
  0x4c   : > { %838 = vmatprep.subr.bf16.mxu0 %v1541_v31  ;;  %881 = vmatprep.subr.bf16.mxu1 %v1543_v32  ;;  %v1574_v48 = vcombine.low %v397_v42, %v397_v42  ;;  %v1531_v1 = vcombine.high %v351_v60, %v359_v61  ;;  %v375_v5 = vld [vmem:[%s1935_s7 + $0x158] sm:$0xff]  ;;  %v1530_v7 = vcombine.low %v351_v60, %v359_v61  ;;  %v382_v11 = vld [vmem:[%s1935_s7 + $0x190] sm:$0xff]  ;;  %v344_v28 = vld [vmem:[%s1935_s7 + $0x60] sm:$0xff] }
  0x4d   : > { %v787_v53 = vsel %vm785_vm0, %v1572_v46, 0  ;;  %v1545_v9 = vcombine.high %v366_v2, %v374_v3  ;;  %v1547_v10 = vcombine.high %v367_v4, %v375_v5  ;;  %v390_v12 = vld [vmem:[%s1935_s7 + $0x1d0] sm:$0xff]  ;;  %v383_v13 = vld [vmem:[%s1935_s7 + $0x198] sm:$0xff]  ;;  %v1544_v15 = vcombine.low %v366_v2, %v374_v3  ;;  %v337_v29 = vld [vmem:[%s1935_s7 + $0x28] sm:$0xff] }
  0x4e   : > { %v793_v55 = vsel %vm785_vm0, %v1574_v48, 0  ;;  %v391_v14 = vld [vmem:[%s1935_s7 + $0x1d8] sm:$0xff]  ;;  %v1546_v16 = vcombine.low %v367_v4, %v375_v5  ;;  %v1561_v17 = vcombine.high %v382_v11, %v390_v12  ;;  %v398_v19 = vld [vmem:[%s1935_s7 + $0x210] sm:$0xff]  ;;  %v1560_v21 = vcombine.low %v382_v11, %v390_v12  ;;  %v345_v30 = vld [vmem:[%s1935_s7 + $0x68] sm:$0xff] }
  0x4f   : > { %839 = vmatpush1.bf16.msra.mxu0 %v1540_v37  ;;  %882 = vmatpush1.bf16.msra.mxu1 %v1542_v38  ;;  %v1563_v18 = vcombine.high %v383_v13, %v391_v14  ;;  %v399_v20 = vld [vmem:[%s1935_s7 + $0x218] sm:$0xff]  ;;  %v1562_v22 = vcombine.low %v383_v13, %v391_v14  ;;  %v1577_v23 = vcombine.high %v398_v19, %v398_v19  ;;  %v352_v35 = vld [vmem:[%s1935_s7 + $0xa0] sm:$0xff]  ;;  %v353_v37 = vld [vmem:[%s1935_s7 + $0xa8] sm:$0xff] }
  0x50   : > { %840 = vmatprep.subr.bf16.mxu0 %v1557_v39  ;;  %883 = vmatprep.subr.bf16.mxu1 %v1559_v40  ;;  %v1576_v24 = vcombine.low %v398_v19, %v398_v19  ;;  %v1579_v25 = vcombine.high %v399_v20, %v399_v20  ;;  %v1578_v26 = vcombine.low %v399_v20, %v399_v20  ;;  %v360_v36 = vld [vmem:[%s1935_s7 + $0xe0] sm:$0xff]  ;;  %v361_v38 = vld [vmem:[%s1935_s7 + $0xe8] sm:$0xff]  ;;  %v338_v4 = vld [vmem:[%s1935_s7 + $0x30] sm:$0xff] }
  0x51   : > { %v1517_v32 = vcombine.high %v336_v27, %v344_v28  ;;  %v1519_v34 = vcombine.high %v337_v29, %v345_v30  ;;  %v1516_v39 = vcombine.low %v336_v27, %v344_v28  ;;  %v1518_v40 = vcombine.low %v337_v29, %v345_v30  ;;  %v377_v46 = vld [vmem:[%s1935_s7 + $0x168] sm:$0xff]  ;;  %v384_v51 = vld [vmem:[%s1935_s7 + $0x1a0] sm:$0xff]  ;;  %v346_v5 = vld [vmem:[%s1935_s7 + $0x70] sm:$0xff] }
  0x52   : > { %v799_v31 = vsel %vm785_vm0, %v1576_v24, 0  ;;  %v805_v33 = vsel %vm785_vm0, %v1578_v26, 0  ;;  %v1533_v41 = vcombine.high %v352_v35, %v360_v36  ;;  %v1535_v42 = vcombine.high %v353_v37, %v361_v38  ;;  %v392_v52 = vld [vmem:[%s1935_s7 + $0x1e0] sm:$0xff]  ;;  %v401_v61 = vld [vmem:[%s1935_s7 + $0x228] sm:$0xff]  ;;  %v354_v13 = vld [vmem:[%s1935_s7 + $0xb0] sm:$0xff] }
  0x53   : > { %841 = vmatpush1.bf16.msra.mxu0 %v1556_v43  ;;  %884 = vmatpush1.bf16.msra.mxu1 %v1558_v44  ;;  %v368_v43 = vld [vmem:[%s1935_s7 + $0x120] sm:$0xff]  ;;  %v1534_v48 = vcombine.low %v353_v37, %v361_v38  ;;  %v1565_v57 = vcombine.high %v384_v51, %v392_v52  ;;  %v1583_v2 = vcombine.high %v401_v61, %v401_v61  ;;  %v362_v14 = vld [vmem:[%s1935_s7 + $0xf0] sm:$0xff]  ;;  %v379_v24 = vld [vmem:[%s1935_s7 + $0x178] sm:$0xff] }
  0x54   : > { %1588 = vmatprep.subr.msk.bf16.mxu0 %vm785_vm0, %v1573_v45  ;;  %1590 = vmatprep.subr.msk.bf16.mxu1 %vm785_vm0, %v1575_v47  ;;  %v376_v44 = vld [vmem:[%s1935_s7 + $0x160] sm:$0xff]  ;;  %v369_v45 = vld [vmem:[%s1935_s7 + $0x128] sm:$0xff]  ;;  %v1532_v47 = vcombine.low %v352_v35, %v360_v36  ;;  %v1582_v3 = vcombine.low %v401_v61, %v401_v61  ;;  %v1537_v19 = vcombine.high %v354_v13, %v362_v14  ;;  %v386_v29 = vld [vmem:[%s1935_s7 + $0x1b0] sm:$0xff] }
  0x55   : > { %v1549_v49 = vcombine.high %v368_v43, %v376_v44  ;;  %v1551_v50 = vcombine.high %v369_v45, %v377_v46  ;;  %v400_v60 = vld [vmem:[%s1935_s7 + $0x220] sm:$0xff]  ;;  %v394_v30 = vld [vmem:[%s1935_s7 + $0x1f0] sm:$0xff]  ;;  %v403_v38 = vld [vmem:[%s1935_s7 + $0x238] sm:$0xff] }
  0x56   : > { %v817_v11 = vsel %vm785_vm0, %v1582_v3, 0  ;;  %v1569_v35 = vcombine.high %v386_v29, %v394_v30  ;;  %v402_v37 = vld [vmem:[%s1935_s7 + $0x230] sm:$0xff] }
  0x57   : > { %843 = vmatpush1.bf16.msra.mxu0 %v787_v53  ;;  %886 = vmatpush1.bf16.msra.mxu1 %v793_v55  ;;  %v385_v53 = vld [vmem:[%s1935_s7 + $0x1a8] sm:$0xff]  ;;  %v1548_v55 = vcombine.low %v368_v43, %v376_v44  ;;  %v1587_v43 = vcombine.high %v403_v38, %v403_v38 }
  0x58   : > { %920 = vmatprep.subr.bf16.mxu0 %v1513_v54  ;;  %963 = vmatprep.subr.bf16.mxu1 %v1515_v56  ;;  %v393_v54 = vld [vmem:[%s1935_s7 + $0x1e8] sm:$0xff]  ;;  %v1550_v56 = vcombine.low %v369_v45, %v377_v46 }
  0x59   : > { %v1567_v58 = vcombine.high %v385_v53, %v393_v54 }
  0x5a   : > { %1589 = vmatmul.mubr.msk.bf16.vlgmr.msra.gmra.mrb[0].mxu0 %vm781_vm1, %v1968_v59  ;;  %1591 = vmatmul.mubr.msk.bf16.vlgmr.msra.gmra.mrb[0].mxu1 %vm781_vm1, %v1968_v59 }
  0x5b   : > { %921 = vmatpush1.bf16.msra.mxu0 %v1512_v62  ;;  %964 = vmatpush1.bf16.msra.mxu1 %v1514_v63  ;;  %v1564_v62 = vcombine.low %v384_v51, %v392_v52  ;;  %v1566_v63 = vcombine.low %v385_v53, %v393_v54 }
  0x5c   : > { %922 = vmatprep.subr.bf16.mxu0 %v1529_v0  ;;  %965 = vmatprep.subr.bf16.mxu1 %v1531_v1  ;;  %v1581_v0 = vcombine.high %v400_v60, %v400_v60  ;;  %v1580_v1 = vcombine.low %v400_v60, %v400_v60 }
  0x5d   : > { %952 = vmatprep.mubr.bf16.mxu0 %v1712_v8  ;;  %995 = vmatprep.mubr.bf16.mxu1 %v1712_v8 }
  0x5f   : > { %923 = vmatpush1.bf16.msra.mxu0 %v1528_v6  ;;  %966 = vmatpush1.bf16.msra.mxu1 %v1530_v7  ;;  %v339_v6 = vld [vmem:[%s1935_s7 + $0x38] sm:$0xff] }
  0x60   : > { %924 = vmatprep.subr.bf16.mxu0 %v1545_v9  ;;  %967 = vmatprep.subr.bf16.mxu1 %v1547_v10  ;;  %v347_v7 = vld [vmem:[%s1935_s7 + $0x78] sm:$0xff]  ;;  %v811_v9 = vsel %vm785_vm0, %v1580_v1, 0  ;;  %v1521_v10 = vcombine.high %v338_v4, %v346_v5 }
  0x61   : > { %v1523_v12 = vcombine.high %v339_v6, %v347_v7 }
  0x63   : > { %925 = vmatpush1.bf16.msra.mxu0 %v1544_v15  ;;  %968 = vmatpush1.bf16.msra.mxu1 %v1546_v16  ;;  %v355_v15 = vld [vmem:[%s1935_s7 + $0xb8] sm:$0xff] }
  0x64   : > { %926 = vmatprep.subr.bf16.mxu0 %v1561_v17  ;;  %969 = vmatprep.subr.bf16.mxu1 %v1563_v18  ;;  %v363_v16 = vld [vmem:[%s1935_s7 + $0xf8] sm:$0xff]  ;;  %v1520_v17 = vcombine.low %v338_v4, %v346_v5  ;;  %v1522_v18 = vcombine.low %v339_v6, %v347_v7 }
  0x65   : > { %v1539_v20 = vcombine.high %v355_v15, %v363_v16  ;;  %v1538_v26 = vcombine.low %v355_v15, %v363_v16 }
  0x67   : > { %927 = vmatpush1.bf16.msra.mxu0 %v1560_v21  ;;  %970 = vmatpush1.bf16.msra.mxu1 %v1562_v22  ;;  %v370_v21 = vld [vmem:[%s1935_s7 + $0x130] sm:$0xff] }
  0x68   : > { %1592 = vmatprep.subr.msk.bf16.mxu0 %vm785_vm0, %v1577_v23  ;;  %1594 = vmatprep.subr.msk.bf16.mxu1 %vm785_vm0, %v1579_v25  ;;  %v378_v22 = vld [vmem:[%s1935_s7 + $0x170] sm:$0xff]  ;;  %v371_v23 = vld [vmem:[%s1935_s7 + $0x138] sm:$0xff]  ;;  %v1536_v25 = vcombine.low %v354_v13, %v362_v14 }
  0x69   : > { %v1553_v27 = vcombine.high %v370_v21, %v378_v22  ;;  %v1555_v28 = vcombine.high %v371_v23, %v379_v24 }
  0x6b   : > { %929 = vmatpush1.bf16.msra.mxu0 %v799_v31  ;;  %972 = vmatpush1.bf16.msra.mxu1 %v805_v33  ;;  %v387_v31 = vld [vmem:[%s1935_s7 + $0x1b8] sm:$0xff]  ;;  %v1552_v33 = vcombine.low %v370_v21, %v378_v22 }
  0x6c   : > { %1006 = vmatprep.subr.bf16.mxu0 %v1517_v32  ;;  %1049 = vmatprep.subr.bf16.mxu1 %v1519_v34  ;;  %v395_v32 = vld [vmem:[%s1935_s7 + $0x1f8] sm:$0xff]  ;;  %v1554_v34 = vcombine.low %v371_v23, %v379_v24 }
  0x6d   : > { %v1571_v36 = vcombine.high %v387_v31, %v395_v32 }
  0x6e   : > { %1593 = vmatmul.mubr.msk.bf16.vlgmr.msra.gmra.mrb[4].mxu0 %vm781_vm1, %v1968_v59  ;;  %1595 = vmatmul.mubr.msk.bf16.vlgmr.msra.gmra.mrb[4].mxu1 %vm781_vm1, %v1968_v59 }
  0x6f   : > { %1007 = vmatpush1.bf16.msra.mxu0 %v1516_v39  ;;  %1050 = vmatpush1.bf16.msra.mxu1 %v1518_v40  ;;  %v1568_v39 = vcombine.low %v386_v29, %v394_v30  ;;  %v1570_v40 = vcombine.low %v387_v31, %v395_v32 }
  0x70   : > { %1008 = vmatprep.subr.bf16.mxu0 %v1533_v41  ;;  %1051 = vmatprep.subr.bf16.mxu1 %v1535_v42  ;;  %v1585_v41 = vcombine.high %v402_v37, %v402_v37  ;;  %v1584_v42 = vcombine.low %v402_v37, %v402_v37 }
  0x71   : > { %1038 = vmatprep.mubr.bf16.mxu0 %v1712_v8  ;;  %1081 = vmatprep.mubr.bf16.mxu1 %v1712_v8 }
  0x72   : > { %v823_v44 = vsel %vm785_vm0, %v1584_v42, 0 }
  0x73   : > { %1009 = vmatpush1.bf16.msra.mxu0 %v1532_v47  ;;  %1052 = vmatpush1.bf16.msra.mxu1 %v1534_v48 }
  0x74   : > { %1010 = vmatprep.subr.bf16.mxu0 %v1549_v49  ;;  %1053 = vmatprep.subr.bf16.mxu1 %v1551_v50 }
  0x77   : > { %1011 = vmatpush1.bf16.msra.mxu0 %v1548_v55  ;;  %1054 = vmatpush1.bf16.msra.mxu1 %v1550_v56 }
  0x78   : > { %1012 = vmatprep.subr.bf16.mxu0 %v1565_v57  ;;  %1055 = vmatprep.subr.bf16.mxu1 %v1567_v58 }
  0x7b   : > { %1013 = vmatpush1.bf16.msra.mxu0 %v1564_v62  ;;  %1056 = vmatpush1.bf16.msra.mxu1 %v1566_v63 }
  0x7c   : > { %1596 = vmatprep.subr.msk.bf16.mxu0 %vm785_vm0, %v1581_v0  ;;  %1598 = vmatprep.subr.msk.bf16.mxu1 %vm785_vm0, %v1583_v2 }
  0x7f   : > { %1015 = vmatpush1.bf16.msra.mxu0 %v811_v9  ;;  %1058 = vmatpush1.bf16.msra.mxu1 %v817_v11 }
  0x80   : > { %1092 = vmatprep.subr.bf16.mxu0 %v1521_v10  ;;  %1135 = vmatprep.subr.bf16.mxu1 %v1523_v12 }
  0x82   : > { %1597 = vmatmul.mubr.msk.bf16.vlgmr.msra.gmra.mrb[8].mxu0 %vm781_vm1, %v1968_v59  ;;  %1599 = vmatmul.mubr.msk.bf16.vlgmr.msra.gmra.mrb[8].mxu1 %vm781_vm1, %v1968_v59 }
  0x83   : > { %1093 = vmatpush1.bf16.msra.mxu0 %v1520_v17  ;;  %1136 = vmatpush1.bf16.msra.mxu1 %v1522_v18 }
  0x84   : > { %1094 = vmatprep.subr.bf16.mxu0 %v1537_v19  ;;  %1137 = vmatprep.subr.bf16.mxu1 %v1539_v20 }
  0x85   : > { %1124 = vmatprep.mubr.bf16.mxu0 %v1712_v8  ;;  %1167 = vmatprep.mubr.bf16.mxu1 %v1712_v8  ;;  %v1586_v8 = vcombine.low %v403_v38, %v403_v38 }
  0x87   : > { %1095 = vmatpush1.bf16.msra.mxu0 %v1536_v25  ;;  %1138 = vmatpush1.bf16.msra.mxu1 %v1538_v26  ;;  %v829_v45 = vsel %vm785_vm0, %v1586_v8, 0 }
  0x88   : > { %1096 = vmatprep.subr.bf16.mxu0 %v1553_v27  ;;  %1139 = vmatprep.subr.bf16.mxu1 %v1555_v28 }
  0x8b   : > { %1097 = vmatpush1.bf16.msra.mxu0 %v1552_v33  ;;  %1140 = vmatpush1.bf16.msra.mxu1 %v1554_v34 }
  0x8c   : > { %1098 = vmatprep.subr.bf16.mxu0 %v1569_v35  ;;  %1141 = vmatprep.subr.bf16.mxu1 %v1571_v36 }
  0x8f   : > { %1099 = vmatpush1.bf16.msra.mxu0 %v1568_v39  ;;  %1142 = vmatpush1.bf16.msra.mxu1 %v1570_v40 }
  0x90   : > { %1600 = vmatprep.subr.msk.bf16.mxu0 %vm785_vm0, %v1585_v41  ;;  %1602 = vmatprep.subr.msk.bf16.mxu1 %vm785_vm0, %v1587_v43 }
  0x93   : > { %1101 = vmatpush1.bf16.msra.mxu0 %v823_v44  ;;  %1144 = vmatpush1.bf16.msra.mxu1 %v829_v45 }
  0x96   : > { %1601 = vmatmul.mubr.msk.bf16.vlgmr.msra.gmra.mrb[12].mxu0 %vm781_vm1, %v1968_v59  ;;  %1603 = vmatmul.mubr.msk.bf16.vlgmr.msra.gmra.mrb[12].mxu1 %vm781_vm1, %v1968_v59 }
  0xbf   : > { %v2052_v46 = vpop.permute.xlu0 %408 }
  0xc3   : > { %v2054_v48 = vpop.permute.xlu0 %413 }
 0x12d   : > { %v868_v47 = vpop.f32.mrb[0].mxu0  ;;  %v911_v50 = vpop.f32.mrb[0].mxu1 }
 0x12e   : > { %v869_v49 = vadd.f32 %v868_v47, %v2052_v46  ;;  %v870_v51 = vpop.f32.mrb[1].mxu0  ;;  %v912_v52 = vadd.f32 %v911_v50, %v2052_v46  ;;  %v913_v54 = vpop.f32.mrb[1].mxu1 }
 0x12f   : > { %v871_v53 = vadd.f32 %v870_v51, %v2052_v46  ;;  %v872_v55 = vpop.f32.mrb[2].mxu0  ;;  %v914_v59 = vadd.f32 %v913_v54, %v2052_v46  ;;  %v915_v58 = vpop.f32.mrb[2].mxu1 }
 0x130   : > { %vm1178_vm2 = vcmp.ge.f32.partialorder %v869_v49, 0.0  ;;  %v1210_v56 = vmul.f32 0.2, %v869_v49  ;;  %v873_v57 = vadd.f32 %v872_v55, %v2054_v48  ;;  %v874_v60 = vpop.f32.mrb[3].mxu0  ;;  %vm1180_vm3 = vcmp.ge.f32.partialorder %v912_v52, 0.0  ;;  %v917_v1 = vpop.f32.mrb[3].mxu1 }
 0x131   : > { %v1212_v61 = vmul.f32 0.2, %v912_v52  ;;  %vm1179_vm4 = vcmp.ge.f32.partialorder %v871_v53, 0.0  ;;  %v1211_v62 = vmul.f32 0.2, %v871_v53  ;;  %vm1181_vm5 = vcmp.ge.f32.partialorder %v914_v59, 0.0 }
 0x132   : > { %v1242_v63 = vsel %vm1178_vm2, %v869_v49, %v1210_v56  ;;  %v1213_v0 = vmul.f32 0.2, %v914_v59  ;;  %vm1194_vm6 = vcmp.ge.f32.partialorder %v873_v57, 0.0  ;;  %v1226_v4 = vmul.f32 0.2, %v873_v57 }
 0x133   : > { %v1244_v2 = vsel %vm1180_vm3, %v912_v52, %v1212_v61  ;;  %v1243_v3 = vsel %vm1179_vm4, %v871_v53, %v1211_v62  ;;  %v916_v5 = vadd.f32 %v915_v58, %v2054_v48  ;;  %v875_v9 = vadd.f32 %v874_v60, %v2054_v48 }
 0x134   : > { %v1626_v6 = vpack.c.bf16 %v1243_v3, %v1242_v63  ;;  %v1245_v7 = vsel %vm1181_vm5, %v914_v59, %v1213_v0  ;;  %v918_v10 = vadd.f32 %v917_v1, %v2054_v48  ;;  %v1258_v12 = vsel %vm1194_vm6, %v873_v57, %v1226_v4 }
 0x135   : > { %v1627_v11 = vpack.c.bf16 %v1245_v7, %v1244_v2  ;;  %vm1196_vm7 = vcmp.ge.f32.partialorder %v916_v5, 0.0  ;;  %v1228_v13 = vmul.f32 0.2, %v916_v5  ;;  %vm1195_vm8 = vcmp.ge.f32.partialorder %v875_v9, 0.0 }
 0x136   : > { %1370 = vst [vmem:[%s2066_s11] sm:$0xff] %v1626_v6  ;;  %v1227_v14 = vmul.f32 0.2, %v875_v9  ;;  %vm1197_vm9 = vcmp.ge.f32.partialorder %v918_v10, 0.0  ;;  %v1229_v15 = vmul.f32 0.2, %v918_v10 }
 0x137   : > { %1371 = vst [vmem:[%s2066_s11 + $0x8] sm:$0xff] %v1627_v11  ;;  %v1260_v16 = vsel %vm1196_vm7, %v916_v5, %v1228_v13 }
 0x138   : > { %v1259_v17 = vsel %vm1195_vm8, %v875_v9, %v1227_v14  ;;  %v1261_v18 = vsel %vm1197_vm9, %v918_v10, %v1229_v15 }
 0x139   : > { %v1634_v19 = vpack.c.bf16 %v1259_v17, %v1258_v12  ;;  %v1635_v20 = vpack.c.bf16 %v1261_v18, %v1260_v16 }
 0x13b   : > { %1378 = vst [vmem:[%s2066_s11 + $0x40] sm:$0xff] %v1634_v19  ;;  %1379 = vst [vmem:[%s2066_s11 + $0x48] sm:$0xff] %v1635_v20 }
 0x141   : > { %v954_v21 = vpop.f32.mrb[4].mxu0  ;;  %v997_v23 = vpop.f32.mrb[4].mxu1 }
 0x142   : > { %v955_v22 = vadd.f32 %v954_v21, %v2052_v46  ;;  %v956_v24 = vpop.f32.mrb[5].mxu0  ;;  %v998_v25 = vadd.f32 %v997_v23, %v2052_v46  ;;  %v999_v27 = vpop.f32.mrb[5].mxu1 }
 0x143   : > { %v957_v26 = vadd.f32 %v956_v24, %v2052_v46  ;;  %v958_v28 = vpop.f32.mrb[6].mxu0  ;;  %v1000_v30 = vadd.f32 %v999_v27, %v2052_v46  ;;  %v1001_v32 = vpop.f32.mrb[6].mxu1 }
 0x144   : > { %vm1182_vm10 = vcmp.ge.f32.partialorder %v955_v22, 0.0  ;;  %v1214_v29 = vmul.f32 0.2, %v955_v22  ;;  %v959_v31 = vadd.f32 %v958_v28, %v2054_v48  ;;  %v960_v33 = vpop.f32.mrb[7].mxu0  ;;  %vm1184_vm11 = vcmp.ge.f32.partialorder %v998_v25, 0.0  ;;  %v1003_v38 = vpop.f32.mrb[7].mxu1 }
 0x145   : > { %v1216_v34 = vmul.f32 0.2, %v998_v25  ;;  %vm1183_vm12 = vcmp.ge.f32.partialorder %v957_v26, 0.0  ;;  %v1215_v35 = vmul.f32 0.2, %v957_v26  ;;  %vm1185_vm13 = vcmp.ge.f32.partialorder %v1000_v30, 0.0 }
 0x146   : > { %v1246_v36 = vsel %vm1182_vm10, %v955_v22, %v1214_v29  ;;  %v1217_v37 = vmul.f32 0.2, %v1000_v30  ;;  %vm1198_vm14 = vcmp.ge.f32.partialorder %v959_v31, 0.0  ;;  %v1230_v41 = vmul.f32 0.2, %v959_v31 }
 0x147   : > { %v1248_v39 = vsel %vm1184_vm11, %v998_v25, %v1216_v34  ;;  %v1247_v40 = vsel %vm1183_vm12, %v957_v26, %v1215_v35  ;;  %v1002_v42 = vadd.f32 %v1001_v32, %v2054_v48  ;;  %v961_v44 = vadd.f32 %v960_v33, %v2054_v48 }
 0x148   : > { %v1628_v43 = vpack.c.bf16 %v1247_v40, %v1246_v36  ;;  %v1249_v8 = vsel %vm1185_vm13, %v1000_v30, %v1217_v37  ;;  %v1004_v45 = vadd.f32 %v1003_v38, %v2054_v48  ;;  %v1262_v49 = vsel %vm1198_vm14, %v959_v31, %v1230_v41 }
 0x149   : > { %v1629_v47 = vpack.c.bf16 %v1249_v8, %v1248_v39  ;;  %vm1200_vm15 = vcmp.ge.f32.partialorder %v1002_v42, 0.0  ;;  %v1232_v50 = vmul.f32 0.2, %v1002_v42  ;;  %vm1199_vm0 = vcmp.ge.f32.partialorder %v961_v44, 0.0 }
 0x14a   : > { %1372 = vst [vmem:[%s2066_s11 + $0x10] sm:$0xff] %v1628_v43  ;;  %v1231_v51 = vmul.f32 0.2, %v961_v44  ;;  %vm1201_vm1 = vcmp.ge.f32.partialorder %v1004_v45, 0.0  ;;  %v1233_v52 = vmul.f32 0.2, %v1004_v45 }
 0x14b   : > { %1373 = vst [vmem:[%s2066_s11 + $0x18] sm:$0xff] %v1629_v47  ;;  %v1264_v53 = vsel %vm1200_vm15, %v1002_v42, %v1232_v50 }
 0x14c   : > { %v1263_v54 = vsel %vm1199_vm0, %v961_v44, %v1231_v51  ;;  %v1265_v55 = vsel %vm1201_vm1, %v1004_v45, %v1233_v52 }
 0x14d   : > { %v1636_v56 = vpack.c.bf16 %v1263_v54, %v1262_v49  ;;  %v1637_v59 = vpack.c.bf16 %v1265_v55, %v1264_v53 }
 0x14f   : > { %1380 = vst [vmem:[%s2066_s11 + $0x50] sm:$0xff] %v1636_v56  ;;  %1381 = vst [vmem:[%s2066_s11 + $0x58] sm:$0xff] %v1637_v59 }
 0x155   : > { %v1040_v57 = vpop.f32.mrb[8].mxu0  ;;  %v1083_v60 = vpop.f32.mrb[8].mxu1 }
 0x156   : > { %v1041_v58 = vadd.f32 %v1040_v57, %v2052_v46  ;;  %v1042_v61 = vpop.f32.mrb[9].mxu0  ;;  %v1084_v62 = vadd.f32 %v1083_v60, %v2052_v46  ;;  %v1085_v0 = vpop.f32.mrb[9].mxu1 }
 0x157   : > { %v1043_v63 = vadd.f32 %v1042_v61, %v2052_v46  ;;  %v1044_v1 = vpop.f32.mrb[10].mxu0  ;;  %v1086_v3 = vadd.f32 %v1085_v0, %v2052_v46  ;;  %v1087_v5 = vpop.f32.mrb[10].mxu1 }
 0x158   : > { %vm1186_vm2 = vcmp.ge.f32.partialorder %v1041_v58, 0.0  ;;  %v1218_v2 = vmul.f32 0.2, %v1041_v58  ;;  %v1045_v4 = vadd.f32 %v1044_v1, %v2054_v48  ;;  %v1046_v6 = vpop.f32.mrb[11].mxu0  ;;  %vm1188_vm3 = vcmp.ge.f32.partialorder %v1084_v62, 0.0  ;;  %v1089_v12 = vpop.f32.mrb[11].mxu1 }
 0x159   : > { %v1220_v7 = vmul.f32 0.2, %v1084_v62  ;;  %vm1187_vm4 = vcmp.ge.f32.partialorder %v1043_v63, 0.0  ;;  %v1219_v9 = vmul.f32 0.2, %v1043_v63  ;;  %vm1189_vm5 = vcmp.ge.f32.partialorder %v1086_v3, 0.0 }
 0x15a   : > { %v1250_v10 = vsel %vm1186_vm2, %v1041_v58, %v1218_v2  ;;  %v1221_v11 = vmul.f32 0.2, %v1086_v3  ;;  %vm1202_vm6 = vcmp.ge.f32.partialorder %v1045_v4, 0.0  ;;  %v1234_v15 = vmul.f32 0.2, %v1045_v4 }
 0x15b   : > { %v1252_v13 = vsel %vm1188_vm3, %v1084_v62, %v1220_v7  ;;  %v1251_v14 = vsel %vm1187_vm4, %v1043_v63, %v1219_v9  ;;  %v1088_v16 = vadd.f32 %v1087_v5, %v2054_v48  ;;  %v1047_v19 = vadd.f32 %v1046_v6, %v2054_v48  ;;  %v1414_v5 = vld [vmem:[%s2066_s11 + $0x18] sm:$0xff] (%p1763_p5) }
 0x15c   : > { %v1630_v17 = vpack.c.bf16 %v1251_v14, %v1250_v10  ;;  %v1253_v18 = vsel %vm1189_vm5, %v1086_v3, %v1221_v11  ;;  %v1090_v20 = vadd.f32 %v1089_v12, %v2054_v48  ;;  %v1266_v22 = vsel %vm1202_vm6, %v1045_v4, %v1234_v15  ;;  %v1410_v3 = vld [vmem:[%s2066_s11 + $0x8] sm:$0xff] (%p1763_p5)  ;;  %v1412_v4 = vld [vmem:[%s2066_s11 + $0x10] sm:$0xff] (%p1763_p5)  ;;  %1415 = vst [vmem:[%s1395_s20 + $0x18] sm:$0xff] (%p1763_p5), %v1414_v5  ;;  %v1424_v11 = vld [vmem:[%s2066_s11 + $0x40] sm:$0xff] (%p1763_p5) }
 0x15d   : > { %v1631_v21 = vpack.c.bf16 %v1253_v18, %v1252_v13  ;;  %vm1204_vm7 = vcmp.ge.f32.partialorder %v1088_v16, 0.0  ;;  %v1236_v23 = vmul.f32 0.2, %v1088_v16  ;;  %vm1203_vm8 = vcmp.ge.f32.partialorder %v1047_v19, 0.0  ;;  %1411 = vst [vmem:[%s1395_s20 + $0x8] sm:$0xff] (%p1763_p5), %v1410_v3  ;;  %1413 = vst [vmem:[%s1395_s20 + $0x10] sm:$0xff] (%p1763_p5), %v1412_v4 }
 0x15e   : > { %1374 = vst [vmem:[%s2066_s11 + $0x20] sm:$0xff] %v1630_v17  ;;  %v1235_v24 = vmul.f32 0.2, %v1047_v19  ;;  %vm1205_vm9 = vcmp.ge.f32.partialorder %v1090_v20, 0.0  ;;  %v1237_v25 = vmul.f32 0.2, %v1090_v20 }
 0x15f   : > { %1375 = vst [vmem:[%s2066_s11 + $0x28] sm:$0xff] %v1631_v21  ;;  %v1268_v26 = vsel %vm1204_vm7, %v1088_v16, %v1236_v23  ;;  %1425 = vst [vmem:[%s1395_s20 + $0xc0] sm:$0xff] (%p1763_p5), %v1424_v11  ;;  %v1426_v12 = vld [vmem:[%s2066_s11 + $0x48] sm:$0xff] (%p1763_p5)  ;;  %v1428_v13 = vld [vmem:[%s2066_s11 + $0x50] sm:$0xff] (%p1763_p5) }
 0x160   : > { %v1267_v27 = vsel %vm1203_vm8, %v1047_v19, %v1235_v24  ;;  %v1269_v28 = vsel %vm1205_vm9, %v1090_v20, %v1237_v25  ;;  %v1430_v14 = vld [vmem:[%s2066_s11 + $0x58] sm:$0xff] (%p1763_p5)  ;;  %1427 = vst [vmem:[%s1395_s20 + $0xc8] sm:$0xff] (%p1763_p5), %v1426_v12  ;;  %1429 = vst [vmem:[%s1395_s20 + $0xd0] sm:$0xff] (%p1763_p5), %v1428_v13 }
 0x161   : > { %v1638_v29 = vpack.c.bf16 %v1267_v27, %v1266_v22  ;;  %v1639_v30 = vpack.c.bf16 %v1269_v28, %v1268_v26  ;;  %1431 = vst [vmem:[%s1395_s20 + $0xd8] sm:$0xff] (%p1763_p5), %v1430_v14 }
 0x163   : > { %1382 = vst [vmem:[%s2066_s11 + $0x60] sm:$0xff] %v1638_v29  ;;  %1383 = vst [vmem:[%s2066_s11 + $0x68] sm:$0xff] %v1639_v30 }
 0x165   : > { %v1416_v6 = vld [vmem:[%s2066_s11 + $0x20] sm:$0xff] (%p1763_p5) }
 0x166   : > { %v1418_v7 = vld [vmem:[%s2066_s11 + $0x28] sm:$0xff] (%p1763_p5)  ;;  %1417 = vst [vmem:[%s1395_s20 + $0x20] sm:$0xff] (%p1763_p5), %v1416_v6 }
 0x167   : > { %1419 = vst [vmem:[%s1395_s20 + $0x28] sm:$0xff] (%p1763_p5), %v1418_v7 }
 0x169   : > { %v1126_v31 = vpop.f32.mrb[12].mxu0  ;;  %v1169_v33 = vpop.f32.mrb[12].mxu1 }
 0x16a   : > { %v1127_v32 = vadd.f32 %v1126_v31, %v2052_v46  ;;  %v1128_v34 = vpop.f32.mrb[13].mxu0  ;;  %v1170_v35 = vadd.f32 %v1169_v33, %v2052_v46  ;;  %v1171_v37 = vpop.f32.mrb[13].mxu1  ;;  %v1432_v15 = vld [vmem:[%s2066_s11 + $0x60] sm:$0xff] (%p1763_p5)  ;;  %v1434_v16 = vld [vmem:[%s2066_s11 + $0x68] sm:$0xff] (%p1763_p5) }
 0x16b   : > { %v1129_v36 = vadd.f32 %v1128_v34, %v2052_v46  ;;  %v1130_v38 = vpop.f32.mrb[14].mxu0  ;;  %v1172_v40 = vadd.f32 %v1171_v37, %v2052_v46  ;;  %v1173_v42 = vpop.f32.mrb[14].mxu1  ;;  %1433 = vst [vmem:[%s1395_s20 + $0xe0] sm:$0xff] (%p1763_p5), %v1432_v15  ;;  %1435 = vst [vmem:[%s1395_s20 + $0xe8] sm:$0xff] (%p1763_p5), %v1434_v16 }
 0x16c   : > { %vm1190_vm10 = vcmp.ge.f32.partialorder %v1127_v32, 0.0  ;;  %v1222_v39 = vmul.f32 0.2, %v1127_v32  ;;  %v1131_v41 = vadd.f32 %v1130_v38, %v2054_v48  ;;  %v1132_v43 = vpop.f32.mrb[15].mxu0  ;;  %vm1192_vm11 = vcmp.ge.f32.partialorder %v1170_v35, 0.0  ;;  %v1175_v49 = vpop.f32.mrb[15].mxu1 }
 0x16d   : > { %v1224_v8 = vmul.f32 0.2, %v1170_v35  ;;  %vm1191_vm12 = vcmp.ge.f32.partialorder %v1129_v36, 0.0  ;;  %v1223_v44 = vmul.f32 0.2, %v1129_v36  ;;  %vm1193_vm13 = vcmp.ge.f32.partialorder %v1172_v40, 0.0 }
 0x16e   : > { %v1254_v45 = vsel %vm1190_vm10, %v1127_v32, %v1222_v39  ;;  %v1225_v47 = vmul.f32 0.2, %v1172_v40  ;;  %vm1206_vm14 = vcmp.ge.f32.partialorder %v1131_v41, 0.0  ;;  %v1238_v52 = vmul.f32 0.2, %v1131_v41 }
 0x16f   : > { %v1256_v50 = vsel %vm1192_vm11, %v1170_v35, %v1224_v8  ;;  %v1255_v51 = vsel %vm1191_vm12, %v1129_v36, %v1223_v44  ;;  %v1174_v46 = vadd.f32 %v1173_v42, %v2054_v48  ;;  %v1133_v55 = vadd.f32 %v1132_v43, %v2054_v48 }
 0x170   : > { %v1632_v53 = vpack.c.bf16 %v1255_v51, %v1254_v45  ;;  %v1257_v54 = vsel %vm1193_vm13, %v1172_v40, %v1225_v47  ;;  %v1176_v56 = vadd.f32 %v1175_v49, %v2054_v48  ;;  %v1270_v57 = vsel %vm1206_vm14, %v1131_v41, %v1238_v52  ;;  %v1408_v48 = vld [vmem:[%s2066_s11] sm:$0xff] (%p1763_p5) }
 0x171   : > { %v1633_v59 = vpack.c.bf16 %v1257_v54, %v1256_v50  ;;  %vm1208_vm15 = vcmp.ge.f32.partialorder %v1174_v46, 0.0  ;;  %v1240_v58 = vmul.f32 0.2, %v1174_v46  ;;  %vm1207_vm0 = vcmp.ge.f32.partialorder %v1133_v55, 0.0  ;;  %1392 = sbr.rel (!%p1763_p5) target bundleno = 384 (0x180), region = 59  ;;  %1409 = vst [vmem:[%s1395_s20] sm:$0xff] (%p1763_p5), %v1408_v48 }
 0x172   : > { %1376 = vst [vmem:[%s2066_s11 + $0x30] sm:$0xff] %v1632_v53  ;;  %v1239_v60 = vmul.f32 0.2, %v1133_v55  ;;  %vm1209_vm1 = vcmp.ge.f32.partialorder %v1176_v56, 0.0  ;;  %v1241_v61 = vmul.f32 0.2, %v1176_v56 }
 0x173   : > { %1377 = vst [vmem:[%s2066_s11 + $0x38] sm:$0xff] %v1633_v59  ;;  %v1272_v62 = vsel %vm1208_vm15, %v1174_v46, %v1240_v58 }
 0x174   : > { %v1271_v63 = vsel %vm1207_vm0, %v1133_v55, %v1239_v60  ;;  %v1273_v0 = vsel %vm1209_vm1, %v1176_v56, %v1241_v61 }
 0x175   : > { %v1640_v1 = vpack.c.bf16 %v1271_v63, %v1270_v57  ;;  %v1641_v2 = vpack.c.bf16 %v1273_v0, %v1272_v62 }
 0x177   : > { %1384 = vst [vmem:[%s2066_s11 + $0x70] sm:$0xff] %v1640_v1  ;;  %1385 = vst [vmem:[%s2066_s11 + $0x78] sm:$0xff] %v1641_v2 }
 0x179   : > { %v1420_v9 = vld [vmem:[%s2066_s11 + $0x30] sm:$0xff] }
 0x17a   : > { %v1422_v10 = vld [vmem:[%s2066_s11 + $0x38] sm:$0xff]  ;;  %1421 = vst [vmem:[%s1395_s20 + $0x30] sm:$0xff] %v1420_v9 }
 0x17b   : > { %1423 = vst [vmem:[%s1395_s20 + $0x38] sm:$0xff] %v1422_v10 }
 0x17e   : > { %v1436_v17 = vld [vmem:[%s2066_s11 + $0x70] sm:$0xff]  ;;  %v1438_v18 = vld [vmem:[%s2066_s11 + $0x78] sm:$0xff] }
 0x17f   : > { %1437 = vst [vmem:[%s1395_s20 + $0xf0] sm:$0xff] %v1436_v17  ;;  %1439 = vst [vmem:[%s1395_s20 + $0xf8] sm:$0xff] %v1438_v18 }
 0x180 PF: > { %p10_p10 = scmp.ge.s32.totalorder %s1750_s16, 5   ;;  %s2146_s12 = smov %s1706_s13 }
 0x181   : > { %s2147_s13 = smov %s1761_s19  ;;  %s2148_s14 = smov %s1750_s16 }
 0x182   :  { %12 = sbr.rel (!%p10_p10) target bundleno = 2 (0x2), region = 113 }

// kernel: discriminator_forward.7
= control target key start
LH: loop header
LB: loop body
LE: loop exit
PB: predicated region body
PF: predicated region fallthrough
CT: control target
= control target key end

     0   :  { %s1370_s12 = smov 0   ;;  %s1372_s13 = smov 0   ;;  %s1703_s0 = inlined_call_operand.vmem [shape: bf16[32,144], index: 0, kind: input, shape index: {}]   ;;  %s1704_s1 = inlined_call_operand.vmem [shape: bf16[144,1458], index: 1, kind: input, shape index: {}]   ;;  %s1705_s2 = inlined_call_operand.vmem [shape: f32[32,1], index: 2, kind: input, shape index: {}]   ;;  %s1706_s3 = inlined_call_operand.vmem [shape: bf16[32,1458], index: 3, kind: output, shape index: {}]  }
   0x1   :  { %s1374_s14 = smov 0  }
   0x2 LB: > { %s1091_s15 = sadd.s32 4294967295, %s1347_s14   ;;  %s1387_s16 = sadd.s32 1, %s1347_s14   ;;  %s1347_s14 = sphi %s1374_s14, %s1710_s14   ;;  %s1343_s13 = sphi %s1372_s13, %s1709_s13   ;;  %s1339_s12 = sphi %s1370_s12, %s1708_s12  }
   0x3   : > { %s38_s17 = ssub.s32 %s1347_s14, %s1387_s16  ;;  %s41_s18 = sadd.s32 1, %s1343_s13 }
   0x4   : > { %p39_p0 = scmp.eq.s32.totalorder %s38_s17, 0  ;;  %p48_p1 = scmp.ne.s32.totalorder %s1343_s13, %s1339_s12 }
   0x5   : > { %p49_p2 = scmp.eq.s32.totalorder %s1347_s14, 0  ;;  %p99_p3 = scmp.eq.s32.totalorder %s1091_s15, 1 }
   0x6   : > { %s1398_s19 = scalar_select %p39_p0, %s1343_s13, %s41_s18  }
   0x7   : > { %p50_p4 = por %p49_p2, %p48_p1  ;;  %p1400_p5 = por %p99_p3, %p48_p1 }
   0x8   : > { %p1094_p6 = scmp.ge.s32.totalorder %s1347_s14, 2 }
   0xa   : > { %127 = sbr.rel (%p1094_p6) target bundleno = 49 (0x31), region = 24 }
  0x11   : > { %130 = sbr.rel (!%p50_p4) target bundleno = 49 (0x31), region = 28  ;;  %s132_s21 = sand.u32 (%p50_p4), 1, %s1343_s13  }
  0x12   : > { %s1176_s22 = smul.u32 (%p50_p4), 24, %s1347_s14 }
  0x13   : > { %s1208_s23 = smul.u32 (%p50_p4), 432, %s132_s21 }
  0x14   : > { %s1410_s26 = scalar_lea.vmem (%p50_p4), %s1704_s1, %s1176_s22 }
  0x15   : > { %v150_v0 = vld [vmem:[%s1410_s26] sm:$0xff] (%p50_p4)  ;;  %v152_v1 = vld [vmem:[%s1410_s26 + $0x8] sm:$0xff] (%p50_p4)  ;;  %v154_v2 = vld [vmem:[%s1410_s26 + $0x10] sm:$0xff] (%p50_p4)  ;;  %s1415_s27 = scalar_lea.vmem (%p50_p4), [#allocation2], %s1208_s23 }
  0x16   : > { %151 = vst [vmem:[%s1415_s27] sm:$0xff] (%p50_p4), %v150_v0  ;;  %153 = vst [vmem:[%s1415_s27 + $0x8] sm:$0xff] (%p50_p4), %v152_v1  ;;  %v156_v3 = vld [vmem:[%s1410_s26 + $0x30] sm:$0xff] (%p50_p4)  ;;  %v158_v4 = vld [vmem:[%s1410_s26 + $0x38] sm:$0xff] (%p50_p4) }
  0x17   : > { %155 = vst [vmem:[%s1415_s27 + $0x10] sm:$0xff] (%p50_p4), %v154_v2  ;;  %v160_v5 = vld [vmem:[%s1410_s26 + $0x40] sm:$0xff] (%p50_p4)  ;;  %157 = vst [vmem:[%s1415_s27 + $0x18] sm:$0xff] (%p50_p4), %v156_v3  ;;  %v164_v7 = vld [vmem:[%s1410_s26 + $0x68] sm:$0xff] (%p50_p4) }
  0x18   : > { %159 = vst [vmem:[%s1415_s27 + $0x20] sm:$0xff] %v158_v4  ;;  %161 = vst [vmem:[%s1415_s27 + $0x28] sm:$0xff] %v160_v5  ;;  %v162_v6 = vld [vmem:[%s1410_s26 + $0x60] sm:$0xff]  ;;  %v166_v8 = vld [vmem:[%s1410_s26 + $0x70] sm:$0xff] }
  0x19   : > { %163 = vst [vmem:[%s1415_s27 + $0x30] sm:$0xff] %v162_v6  ;;  %165 = vst [vmem:[%s1415_s27 + $0x38] sm:$0xff] %v164_v7  ;;  %v168_v9 = vld [vmem:[%s1410_s26 + $0x90] sm:$0xff]  ;;  %v170_v10 = vld [vmem:[%s1410_s26 + $0x98] sm:$0xff] }
  0x1a   : > { %167 = vst [vmem:[%s1415_s27 + $0x40] sm:$0xff] %v166_v8  ;;  %v172_v11 = vld [vmem:[%s1410_s26 + $0xa0] sm:$0xff]  ;;  %169 = vst [vmem:[%s1415_s27 + $0x48] sm:$0xff] %v168_v9  ;;  %v176_v13 = vld [vmem:[%s1410_s26 + $0xc8] sm:$0xff] }
  0x1b   : > { %171 = vst [vmem:[%s1415_s27 + $0x50] sm:$0xff] %v170_v10  ;;  %173 = vst [vmem:[%s1415_s27 + $0x58] sm:$0xff] %v172_v11  ;;  %v174_v12 = vld [vmem:[%s1410_s26 + $0xc0] sm:$0xff]  ;;  %v178_v14 = vld [vmem:[%s1410_s26 + $0xd0] sm:$0xff] }
  0x1c   : > { %175 = vst [vmem:[%s1415_s27 + $0x60] sm:$0xff] %v174_v12  ;;  %177 = vst [vmem:[%s1415_s27 + $0x68] sm:$0xff] %v176_v13  ;;  %v180_v15 = vld [vmem:[%s1410_s26 + $0xf0] sm:$0xff]  ;;  %v182_v16 = vld [vmem:[%s1410_s26 + $0xf8] sm:$0xff] }
  0x1d   : > { %179 = vst [vmem:[%s1415_s27 + $0x70] sm:$0xff] %v178_v14  ;;  %v184_v17 = vld [vmem:[%s1410_s26 + $0x100] sm:$0xff]  ;;  %181 = vst [vmem:[%s1415_s27 + $0x78] sm:$0xff] %v180_v15  ;;  %v188_v19 = vld [vmem:[%s1410_s26 + $0x128] sm:$0xff] }
  0x1e   : > { %183 = vst [vmem:[%s1415_s27 + $0x80] sm:$0xff] %v182_v16  ;;  %185 = vst [vmem:[%s1415_s27 + $0x88] sm:$0xff] %v184_v17  ;;  %v186_v18 = vld [vmem:[%s1410_s26 + $0x120] sm:$0xff]  ;;  %v190_v20 = vld [vmem:[%s1410_s26 + $0x130] sm:$0xff] }
  0x1f   : > { %187 = vst [vmem:[%s1415_s27 + $0x90] sm:$0xff] %v186_v18  ;;  %189 = vst [vmem:[%s1415_s27 + $0x98] sm:$0xff] %v188_v19  ;;  %v192_v21 = vld [vmem:[%s1410_s26 + $0x150] sm:$0xff]  ;;  %v194_v22 = vld [vmem:[%s1410_s26 + $0x158] sm:$0xff] }
  0x20   : > { %191 = vst [vmem:[%s1415_s27 + $0xa0] sm:$0xff] %v190_v20  ;;  %v196_v23 = vld [vmem:[%s1410_s26 + $0x160] sm:$0xff]  ;;  %193 = vst [vmem:[%s1415_s27 + $0xa8] sm:$0xff] %v192_v21  ;;  %v200_v25 = vld [vmem:[%s1410_s26 + $0x188] sm:$0xff] }
  0x21   : > { %195 = vst [vmem:[%s1415_s27 + $0xb0] sm:$0xff] %v194_v22  ;;  %197 = vst [vmem:[%s1415_s27 + $0xb8] sm:$0xff] %v196_v23  ;;  %v198_v24 = vld [vmem:[%s1410_s26 + $0x180] sm:$0xff]  ;;  %v202_v26 = vld [vmem:[%s1410_s26 + $0x190] sm:$0xff] }
  0x22   : > { %199 = vst [vmem:[%s1415_s27 + $0xc0] sm:$0xff] %v198_v24  ;;  %201 = vst [vmem:[%s1415_s27 + $0xc8] sm:$0xff] %v200_v25  ;;  %v204_v27 = vld [vmem:[%s1410_s26 + $0x1b0] sm:$0xff]  ;;  %v206_v28 = vld [vmem:[%s1410_s26 + $0x1b8] sm:$0xff] }
  0x23   : > { %203 = vst [vmem:[%s1415_s27 + $0xd0] sm:$0xff] %v202_v26  ;;  %v208_v29 = vld [vmem:[%s1410_s26 + $0x1c0] sm:$0xff]  ;;  %205 = vst [vmem:[%s1415_s27 + $0xd8] sm:$0xff] %v204_v27  ;;  %v212_v31 = vld [vmem:[%s1410_s26 + $0x1e8] sm:$0xff] }
  0x24   : > { %207 = vst [vmem:[%s1415_s27 + $0xe0] sm:$0xff] %v206_v28  ;;  %209 = vst [vmem:[%s1415_s27 + $0xe8] sm:$0xff] %v208_v29  ;;  %v210_v30 = vld [vmem:[%s1410_s26 + $0x1e0] sm:$0xff]  ;;  %v214_v32 = vld [vmem:[%s1410_s26 + $0x1f0] sm:$0xff] }
  0x25   : > { %211 = vst [vmem:[%s1415_s27 + $0xf0] sm:$0xff] %v210_v30  ;;  %213 = vst [vmem:[%s1415_s27 + $0xf8] sm:$0xff] %v212_v31  ;;  %v216_v33 = vld [vmem:[%s1410_s26 + $0x210] sm:$0xff]  ;;  %v218_v34 = vld [vmem:[%s1410_s26 + $0x218] sm:$0xff] }
  0x26   : > { %215 = vst [vmem:[%s1415_s27 + $0x100] sm:$0xff] %v214_v32  ;;  %v220_v35 = vld [vmem:[%s1410_s26 + $0x220] sm:$0xff]  ;;  %217 = vst [vmem:[%s1415_s27 + $0x108] sm:$0xff] %v216_v33  ;;  %v224_v37 = vld [vmem:[%s1410_s26 + $0x248] sm:$0xff] }
  0x27   : > { %219 = vst [vmem:[%s1415_s27 + $0x110] sm:$0xff] %v218_v34  ;;  %221 = vst [vmem:[%s1415_s27 + $0x118] sm:$0xff] %v220_v35  ;;  %v222_v36 = vld [vmem:[%s1410_s26 + $0x240] sm:$0xff]  ;;  %v226_v38 = vld [vmem:[%s1410_s26 + $0x250] sm:$0xff] }
  0x28   : > { %223 = vst [vmem:[%s1415_s27 + $0x120] sm:$0xff] %v222_v36  ;;  %225 = vst [vmem:[%s1415_s27 + $0x128] sm:$0xff] %v224_v37  ;;  %v228_v39 = vld [vmem:[%s1410_s26 + $0x270] sm:$0xff]  ;;  %v230_v40 = vld [vmem:[%s1410_s26 + $0x278] sm:$0xff] }
  0x29   : > { %227 = vst [vmem:[%s1415_s27 + $0x130] sm:$0xff] %v226_v38  ;;  %v232_v41 = vld [vmem:[%s1410_s26 + $0x280] sm:$0xff]  ;;  %229 = vst [vmem:[%s1415_s27 + $0x138] sm:$0xff] %v228_v39  ;;  %v236_v43 = vld [vmem:[%s1410_s26 + $0x2a8] sm:$0xff] }
  0x2a   : > { %231 = vst [vmem:[%s1415_s27 + $0x140] sm:$0xff] %v230_v40  ;;  %233 = vst [vmem:[%s1415_s27 + $0x148] sm:$0xff] %v232_v41  ;;  %v234_v42 = vld [vmem:[%s1410_s26 + $0x2a0] sm:$0xff]  ;;  %v238_v44 = vld [vmem:[%s1410_s26 + $0x2b0] sm:$0xff] }
  0x2b   : > { %235 = vst [vmem:[%s1415_s27 + $0x150] sm:$0xff] %v234_v42  ;;  %237 = vst [vmem:[%s1415_s27 + $0x158] sm:$0xff] %v236_v43  ;;  %v240_v45 = vld [vmem:[%s1410_s26 + $0x2d0] sm:$0xff]  ;;  %v242_v46 = vld [vmem:[%s1410_s26 + $0x2d8] sm:$0xff] }
  0x2c   : > { %239 = vst [vmem:[%s1415_s27 + $0x160] sm:$0xff] %v238_v44  ;;  %v244_v47 = vld [vmem:[%s1410_s26 + $0x2e0] sm:$0xff]  ;;  %241 = vst [vmem:[%s1415_s27 + $0x168] sm:$0xff] %v240_v45  ;;  %v248_v49 = vld [vmem:[%s1410_s26 + $0x308] sm:$0xff] }
  0x2d   : > { %243 = vst [vmem:[%s1415_s27 + $0x170] sm:$0xff] %v242_v46  ;;  %245 = vst [vmem:[%s1415_s27 + $0x178] sm:$0xff] %v244_v47  ;;  %v246_v48 = vld [vmem:[%s1410_s26 + $0x300] sm:$0xff]  ;;  %v250_v50 = vld [vmem:[%s1410_s26 + $0x310] sm:$0xff] }
  0x2e   : > { %247 = vst [vmem:[%s1415_s27 + $0x180] sm:$0xff] %v246_v48  ;;  %249 = vst [vmem:[%s1415_s27 + $0x188] sm:$0xff] %v248_v49  ;;  %v252_v51 = vld [vmem:[%s1410_s26 + $0x330] sm:$0xff]  ;;  %v254_v52 = vld [vmem:[%s1410_s26 + $0x338] sm:$0xff] }
  0x2f   : > { %251 = vst [vmem:[%s1415_s27 + $0x190] sm:$0xff] %v250_v50  ;;  %v256_v53 = vld [vmem:[%s1410_s26 + $0x340] sm:$0xff]  ;;  %253 = vst [vmem:[%s1415_s27 + $0x198] sm:$0xff] %v252_v51 }
  0x30   : > { %255 = vst [vmem:[%s1415_s27 + $0x1a0] sm:$0xff] %v254_v52  ;;  %257 = vst [vmem:[%s1415_s27 + $0x1a8] sm:$0xff] %v256_v53 }
  0x31 PF: > { %p1096_p7 = scmp.ge.s32.totalorder %s1347_s14, 1  ;;  %p262_p8 = scmp.lt.s32.totalorder %s1347_s14, 3 }
  0x33   : > { %p263_p9 = pnand %p1096_p7, %p262_p8 }
  0x34   : > { %s269_s28 = sand.u32 (!%p263_p9), 1, %s1339_s12   ;;  %v1528_v54 = vld [vmem:[%s1703_s0 + $0x4] ss:$8 sps:$4 sm:$0xff] (!%p263_p9)   ;;  %vm664_vm0 = vcmask (!%p263_p9), 130048   ;;  %v1349_v56 = vmov (!%p263_p9), 0   ;;  %v354_v57 = vld [vmem:[%s1705_s2 + $0x10] sm:$0xff] (!%p263_p9) }
  0x35   : > { %266 = sbr.rel (%p263_p9) target bundleno = 364 (0x16c), region = 51  ;;  %1155 = vmatprep.mubr.msk.bf16.mxu0 (!%p263_p9), %vm664_vm0, %v1528_v54  ;;  %1157 = vmatprep.mubr.msk.bf16.mxu1 (!%p263_p9), %vm664_vm0, %v1528_v54  ;;  %v352_v55 = vld [vmem:[%s1705_s2] sm:$0xff] (!%p263_p9)  ;;  %v353_v59 = vld [vmem:[%s1705_s2 + $0x8] sm:$0xff] (!%p263_p9)  ;;  %v355_v61 = vld [vmem:[%s1705_s2 + $0x18] sm:$0xff] (!%p263_p9) }
  0x36   : > { %s1209_s4 = smul.u32 (!%p263_p9), 432, %s269_s28  ;;  %1236 = vset.pattern.permute.xlu0 (!%p263_p9), %v1349_v56  ;;  %1237 = vset.pattern.permute.xlu1 (!%p263_p9), %v1349_v56  ;;  %v1590_v33 = vld [vmem:[%s1703_s0] ss:$8 sps:$4 sm:$0xff] (!%p263_p9)   ;;  %v1313_v36 = vld [vmem:[%s1703_s0 + $0x14] ss:$8 sps:$4 sm:$0xff] (!%p263_p9)  }
  0x37   : > { %358 = vperm.xlu0 (!%p263_p9), %1236, %v352_v55   ;;  %368 = vperm.xlu1 (!%p263_p9), %1237, %v354_v57   ;;  %v1315_v39 = vld [vmem:[%s1703_s0 + $0x10] ss:$8 sps:$4 sm:$0xff] (!%p263_p9)   ;;  %s1633_s27 = smul.u32 (!%p263_p9), 96, %s269_s28 }
  0x38   : > { %s1542_s9 = scalar_lea.vmem (!%p263_p9), [#allocation2], %s1209_s4 }
  0x39   : > { %v1238_v58 = vld [vmem:[%s1542_s9 + $0x4] ss:$24 sps:$4 sm:$0xff] (!%p263_p9)   ;;  %v1242_v62 = vld [vmem:[%s1542_s9] ss:$24 sps:$4 sm:$0xff] (!%p263_p9)   ;;  %v1244_v0 = vld [vmem:[%s1542_s9 + $0x34] ss:$24 sps:$4 sm:$0xff] (!%p263_p9)  }
  0x3a   : > { %v1240_v60 = vld [vmem:[%s1542_s9 + $0xc] ss:$24 sps:$4 sm:$0xff] (!%p263_p9)   ;;  %671 = vmatprep.subr.bf16.mxu0 (!%p263_p9), %v1238_v58  ;;  %v1243_v63 = vld [vmem:[%s1542_s9 + $0x8] ss:$24 sps:$4 sm:$0xff] (!%p263_p9)   ;;  %v1246_v1 = vld [vmem:[%s1542_s9 + $0x3c] ss:$24 sps:$4 sm:$0xff] (!%p263_p9)  }
  0x3b   : > { %724 = vmatprep.subr.bf16.mxu1 (!%p263_p9), %v1240_v60  ;;  %672 = vmatpush1.bf16.msra.mxu0 (!%p263_p9), %v1242_v62  ;;  %v1248_v2 = vld [vmem:[%s1542_s9 + $0x30] ss:$24 sps:$4 sm:$0xff] (!%p263_p9)   ;;  %v1250_v4 = vld [vmem:[%s1542_s9 + $0x64] ss:$24 sps:$4 sm:$0xff] (!%p263_p9)   ;;  %v1254_v6 = vld [vmem:[%s1542_s9 + $0x60] ss:$24 sps:$4 sm:$0xff] (!%p263_p9)  }
  0x3c   : > { %725 = vmatpush1.bf16.msra.mxu1 %v1243_v63  ;;  %673 = vmatprep.subr.bf16.mxu0 %v1244_v0  ;;  %v1249_v3 = vld [vmem:[%s1542_s9 + $0x38] ss:$24 sps:$4 sm:$0xff]   ;;  %v1252_v5 = vld [vmem:[%s1542_s9 + $0x6c] ss:$24 sps:$4 sm:$0xff]   ;;  %v1255_v7 = vld [vmem:[%s1542_s9 + $0x68] ss:$24 sps:$4 sm:$0xff]  }
  0x3d   : > { %363 = vperm.xlu0 %1236, %v353_v59   ;;  %726 = vmatprep.subr.bf16.mxu1 %v1246_v1  ;;  %v1256_v8 = vld [vmem:[%s1542_s9 + $0x94] ss:$24 sps:$4 sm:$0xff]   ;;  %v1260_v10 = vld [vmem:[%s1542_s9 + $0x90] ss:$24 sps:$4 sm:$0xff]   ;;  %v1262_v12 = vld [vmem:[%s1542_s9 + $0xc4] ss:$24 sps:$4 sm:$0xff]  }
  0x3e   : > { %373 = vperm.xlu1 %1237, %v355_v61   ;;  %v1258_v9 = vld [vmem:[%s1542_s9 + $0x9c] ss:$24 sps:$4 sm:$0xff]   ;;  %v1261_v11 = vld [vmem:[%s1542_s9 + $0x98] ss:$24 sps:$4 sm:$0xff]   ;;  %v1264_v13 = vld [vmem:[%s1542_s9 + $0xcc] ss:$24 sps:$4 sm:$0xff]  }
  0x3f   : > { %674 = vmatpush1.bf16.msra.mxu0 %v1248_v2  ;;  %v1266_v14 = vld [vmem:[%s1542_s9 + $0xc0] ss:$24 sps:$4 sm:$0xff]   ;;  %v1268_v16 = vld [vmem:[%s1542_s9 + $0xf4] ss:$24 sps:$4 sm:$0xff]   ;;  %v1272_v18 = vld [vmem:[%s1542_s9 + $0xf0] ss:$24 sps:$4 sm:$0xff]  }
  0x40   : > { %727 = vmatpush1.bf16.msra.mxu1 %v1249_v3  ;;  %675 = vmatprep.subr.bf16.mxu0 %v1250_v4  ;;  %v1267_v15 = vld [vmem:[%s1542_s9 + $0xc8] ss:$24 sps:$4 sm:$0xff]   ;;  %v1270_v17 = vld [vmem:[%s1542_s9 + $0xfc] ss:$24 sps:$4 sm:$0xff]   ;;  %v1273_v19 = vld [vmem:[%s1542_s9 + $0xf8] ss:$24 sps:$4 sm:$0xff]  }
  0x41   : > { %728 = vmatprep.subr.bf16.mxu1 %v1252_v5  ;;  %v1274_v20 = vld [vmem:[%s1542_s9 + $0x124] ss:$24 sps:$4 sm:$0xff]   ;;  %v1278_v22 = vld [vmem:[%s1542_s9 + $0x120] ss:$24 sps:$4 sm:$0xff]   ;;  %v1280_v24 = vld [vmem:[%s1542_s9 + $0x154] ss:$24 sps:$4 sm:$0xff]  }
  0x42   : > { %v1276_v21 = vld [vmem:[%s1542_s9 + $0x12c] ss:$24 sps:$4 sm:$0xff]   ;;  %v1279_v23 = vld [vmem:[%s1542_s9 + $0x128] ss:$24 sps:$4 sm:$0xff]   ;;  %v1282_v25 = vld [vmem:[%s1542_s9 + $0x15c] ss:$24 sps:$4 sm:$0xff]  }
  0x43   : > { %676 = vmatpush1.bf16.msra.mxu0 %v1254_v6  ;;  %v1284_v26 = vld [vmem:[%s1542_s9 + $0x150] ss:$24 sps:$4 sm:$0xff]   ;;  %v1286_v28 = vld [vmem:[%s1542_s9 + $0x184] ss:$24 sps:$4 sm:$0xff]   ;;  %v1290_v30 = vld [vmem:[%s1542_s9 + $0x180] ss:$24 sps:$4 sm:$0xff]  }
  0x44   : > { %729 = vmatpush1.bf16.msra.mxu1 %v1255_v7  ;;  %677 = vmatprep.subr.bf16.mxu0 %v1256_v8  ;;  %v1285_v27 = vld [vmem:[%s1542_s9 + $0x158] ss:$24 sps:$4 sm:$0xff]   ;;  %v1288_v29 = vld [vmem:[%s1542_s9 + $0x18c] ss:$24 sps:$4 sm:$0xff]   ;;  %v1291_v31 = vld [vmem:[%s1542_s9 + $0x188] ss:$24 sps:$4 sm:$0xff]  }
  0x45   : > { %730 = vmatprep.subr.bf16.mxu1 %v1258_v9  ;;  %v1297_v32 = vld [vmem:[%s1542_s9 + $0x14] ss:$24 sps:$4 sm:$0xff]   ;;  %v1295_v34 = vld [vmem:[%s1542_s9 + $0x10] ss:$24 sps:$4 sm:$0xff]   ;;  %v1300_v35 = vld [vmem:[%s1542_s9 + $0x44] ss:$24 sps:$4 sm:$0xff]  }
  0x46   : > { %v1298_v37 = vld [vmem:[%s1542_s9 + $0x40] ss:$24 sps:$4 sm:$0xff]   ;;  %v1303_v38 = vld [vmem:[%s1542_s9 + $0x74] ss:$24 sps:$4 sm:$0xff]   ;;  %v1301_v40 = vld [vmem:[%s1542_s9 + $0x70] ss:$24 sps:$4 sm:$0xff]  }
  0x47   : > { %678 = vmatpush1.bf16.msra.mxu0 %v1260_v10  ;;  %v1306_v41 = vld [vmem:[%s1542_s9 + $0xa4] ss:$24 sps:$4 sm:$0xff]   ;;  %v1304_v42 = vld [vmem:[%s1542_s9 + $0xa0] ss:$24 sps:$4 sm:$0xff]   ;;  %v1309_v43 = vld [vmem:[%s1542_s9 + $0xd4] ss:$24 sps:$4 sm:$0xff]  }
  0x48   : > { %731 = vmatpush1.bf16.msra.mxu1 %v1261_v11  ;;  %679 = vmatprep.subr.bf16.mxu0 %v1262_v12  ;;  %v1307_v44 = vld [vmem:[%s1542_s9 + $0xd0] ss:$24 sps:$4 sm:$0xff]   ;;  %v1312_v45 = vld [vmem:[%s1542_s9 + $0x104] ss:$24 sps:$4 sm:$0xff]   ;;  %v1310_v46 = vld [vmem:[%s1542_s9 + $0x100] ss:$24 sps:$4 sm:$0xff]  }
  0x49   : > { %732 = vmatprep.subr.bf16.mxu1 %v1264_v13  ;;  %v1318_v47 = vld [vmem:[%s1542_s9 + $0x134] ss:$24 sps:$4 sm:$0xff]   ;;  %v1316_v48 = vld [vmem:[%s1542_s9 + $0x130] ss:$24 sps:$4 sm:$0xff]   ;;  %v1321_v49 = vld [vmem:[%s1542_s9 + $0x164] ss:$24 sps:$4 sm:$0xff]  }
  0x4a   : > { %v1319_v50 = vld [vmem:[%s1542_s9 + $0x160] ss:$24 sps:$4 sm:$0xff]   ;;  %v1324_v51 = vld [vmem:[%s1542_s9 + $0x194] ss:$24 sps:$4 sm:$0xff]   ;;  %v1322_v52 = vld [vmem:[%s1542_s9 + $0x190] ss:$24 sps:$4 sm:$0xff]  }
  0x4b   : > { %680 = vmatpush1.bf16.msra.mxu0 %v1266_v14  ;;  %s1644_s12 = scalar_lea.vmem [#allocation3], %s1633_s27  ;;  %s1189_s28 = smul.u32 (%p1400_p5), 24, %s1091_s15 }
  0x4c   : > { %733 = vmatpush1.bf16.msra.mxu1 %v1267_v15  ;;  %681 = vmatprep.subr.bf16.mxu0 %v1268_v16 }
  0x4d   : > { %734 = vmatprep.subr.bf16.mxu1 %v1270_v17  ;;  %s995_s29 = scalar_lea.vmem (%p1400_p5), %s1706_s3, %s1189_s28 }
  0x4f   : > { %682 = vmatpush1.bf16.msra.mxu0 %v1272_v18 }
  0x50   : > { %735 = vmatpush1.bf16.msra.mxu1 %v1273_v19  ;;  %683 = vmatprep.subr.bf16.mxu0 %v1274_v20 }
  0x51   : > { %736 = vmatprep.subr.bf16.mxu1 %v1276_v21 }
  0x53   : > { %684 = vmatpush1.bf16.msra.mxu0 %v1278_v22 }
  0x54   : > { %737 = vmatpush1.bf16.msra.mxu1 %v1279_v23  ;;  %685 = vmatprep.subr.bf16.mxu0 %v1280_v24 }
  0x55   : > { %738 = vmatprep.subr.bf16.mxu1 %v1282_v25 }
  0x57   : > { %686 = vmatpush1.bf16.msra.mxu0 %v1284_v26 }
  0x58   : > { %739 = vmatpush1.bf16.msra.mxu1 %v1285_v27  ;;  %687 = vmatprep.subr.bf16.mxu0 %v1286_v28 }
  0x59   : > { %740 = vmatprep.subr.bf16.mxu1 %v1288_v29 }
  0x5b   : > { %688 = vmatpush1.bf16.msra.mxu0 %v1290_v30 }
  0x5c   : > { %741 = vmatpush1.bf16.msra.mxu1 %v1291_v31  ;;  %777 = vmatprep.subr.bf16.mxu0 %v1297_v32 }
  0x5d   : > { %1190 = vmatprep.subr.bf16.mxu1 %v1297_v32 }
  0x5e   : > { %704 = vmatmul.mubr.bf16.vlgmr.msra.gmra.mrb[0].mxu0 %v1590_v33 }
  0x5f   : > { %757 = vmatmul.mubr.bf16.vlgmr.msra.gmra.mrb[0].mxu1 %v1590_v33  ;;  %778 = vmatpush1.bf16.msra.mxu0 %v1295_v34 }
  0x60   : > { %1199 = vmatpush1.bf16.msra.mxu1 %v1295_v34  ;;  %779 = vmatprep.subr.bf16.mxu0 %v1300_v35 }
  0x61   : > { %1191 = vmatprep.subr.bf16.mxu1 %v1300_v35  ;;  %1156 = vmatprep.mubr.msk.bf16.mxu0 %vm664_vm0, %v1313_v36 }
  0x62   : > { %1158 = vmatprep.mubr.msk.bf16.mxu1 %vm664_vm0, %v1313_v36 }
  0x63   : > { %780 = vmatpush1.bf16.msra.mxu0 %v1298_v37 }
  0x64   : > { %1200 = vmatpush1.bf16.msra.mxu1 %v1298_v37  ;;  %781 = vmatprep.subr.bf16.mxu0 %v1303_v38 }
  0x65   : > { %1192 = vmatprep.subr.bf16.mxu1 %v1303_v38 }
  0x66   : > { %714 = vmatmul.mubr.bf16.gmra.mrb[4].mxu0 %v1315_v39 }
  0x67   : > { %767 = vmatmul.mubr.bf16.gmra.mrb[4].mxu1 %v1315_v39  ;;  %782 = vmatpush1.bf16.msra.mxu0 %v1301_v40 }
  0x68   : > { %1201 = vmatpush1.bf16.msra.mxu1 %v1301_v40  ;;  %783 = vmatprep.subr.bf16.mxu0 %v1306_v41 }
  0x69   : > { %1193 = vmatprep.subr.bf16.mxu1 %v1306_v41  ;;  %1159 = vmatprep.mubr.msk.bf16.mxu0 %vm664_vm0, %v1528_v54 }
  0x6a   : > { %1160 = vmatprep.mubr.msk.bf16.mxu1 %vm664_vm0, %v1313_v36 }
  0x6b   : > { %784 = vmatpush1.bf16.msra.mxu0 %v1304_v42 }
  0x6c   : > { %1202 = vmatpush1.bf16.msra.mxu1 %v1304_v42  ;;  %785 = vmatprep.subr.bf16.mxu0 %v1309_v43 }
  0x6d   : > { %1194 = vmatprep.subr.bf16.mxu1 %v1309_v43 }
  0x6f   : > { %786 = vmatpush1.bf16.msra.mxu0 %v1307_v44 }
  0x70   : > { %1203 = vmatpush1.bf16.msra.mxu1 %v1307_v44  ;;  %787 = vmatprep.subr.bf16.mxu0 %v1312_v45 }
  0x71   : > { %1195 = vmatprep.subr.bf16.mxu1 %v1312_v45 }
  0x73   : > { %788 = vmatpush1.bf16.msra.mxu0 %v1310_v46 }
  0x74   : > { %1204 = vmatpush1.bf16.msra.mxu1 %v1310_v46  ;;  %789 = vmatprep.subr.bf16.mxu0 %v1318_v47 }
  0x75   : > { %1196 = vmatprep.subr.bf16.mxu1 %v1318_v47 }
  0x77   : > { %790 = vmatpush1.bf16.msra.mxu0 %v1316_v48 }
  0x78   : > { %1205 = vmatpush1.bf16.msra.mxu1 %v1316_v48  ;;  %791 = vmatprep.subr.bf16.mxu0 %v1321_v49 }
  0x79   : > { %1197 = vmatprep.subr.bf16.mxu1 %v1321_v49 }
  0x7b   : > { %792 = vmatpush1.bf16.msra.mxu0 %v1319_v50 }
  0x7c   : > { %1206 = vmatpush1.bf16.msra.mxu1 %v1319_v50  ;;  %793 = vmatprep.subr.bf16.mxu0 %v1324_v51 }
  0x7d   : > { %1198 = vmatprep.subr.bf16.mxu1 %v1324_v51 }
  0x7f   : > { %794 = vmatpush1.bf16.msra.mxu0 %v1322_v52 }
  0x80   : > { %1207 = vmatpush1.bf16.msra.mxu1 %v1322_v52 }
  0x82   : > { %810 = vmatmul.mubr.bf16.vlgmr.msra.gmra.mrb[8].mxu0 %v1590_v33 }
  0x83   : > { %820 = vmatmul.mubr.bf16.vlgmr.msra.gmra.mrb[8].mxu1 %v1315_v39 }
  0xb6   : > { %v1623_v53 = vpop.permute.xlu0 %358  ;;  %v1627_v55 = vpop.permute.xlu1 %368 }
  0xbc   : > { %v1625_v54 = vpop.permute.xlu0 %363 }
  0xbd   : > { %v1641_v21 = vpop.permute.xlu1 %373 }
 0x131   : > { %v705_v56 = vpop.f32.mrb[0].mxu0 }
 0x132   : > { %v758_v57 = vpop.f32.mrb[0].mxu1  ;;  %v706_v58 = vadd.f32 %v705_v56, %v1623_v53  ;;  %v707_v60 = vpop.f32.mrb[1].mxu0 }
 0x133   : > { %v759_v59 = vadd.f32 %v758_v57, %v1623_v53  ;;  %v760_v61 = vpop.f32.mrb[1].mxu1  ;;  %v708_v62 = vadd.f32 %v707_v60, %v1623_v53  ;;  %v709_v0 = vpop.f32.mrb[2].mxu0 }
 0x134   : > { %v761_v63 = vadd.f32 %v760_v61, %v1623_v53  ;;  %v762_v1 = vpop.f32.mrb[2].mxu1  ;;  %vm830_vm1 = vcmp.ge.f32.partialorder %v706_v58, 0.0  ;;  %v854_v2 = vmul.f32 0.2, %v706_v58  ;;  %v710_v8 = vadd.f32 %v709_v0, %v1625_v54  ;;  %v711_v10 = vpop.f32.mrb[3].mxu0 }
 0x135   : > { %vm832_vm2 = vcmp.ge.f32.partialorder %v759_v59, 0.0  ;;  %v856_v3 = vmul.f32 0.2, %v759_v59  ;;  %vm831_vm3 = vcmp.ge.f32.partialorder %v708_v62, 0.0  ;;  %v855_v4 = vmul.f32 0.2, %v708_v62 }
 0x136   : > { %vm833_vm4 = vcmp.ge.f32.partialorder %v761_v63, 0.0  ;;  %v857_v5 = vmul.f32 0.2, %v761_v63  ;;  %v878_v6 = vsel %vm830_vm1, %v706_v58, %v854_v2  ;;  %v763_v9 = vadd.f32 %v762_v1, %v1625_v54  ;;  %v764_v11 = vpop.f32.mrb[3].mxu1 }
 0x137   : > { %v880_v7 = vsel %vm832_vm2, %v759_v59, %v856_v3  ;;  %v879_v12 = vsel %vm831_vm3, %v708_v62, %v855_v4  ;;  %v712_v14 = vadd.f32 %v711_v10, %v1625_v54  ;;  %v765_v15 = vadd.f32 %v764_v11, %v1625_v54 }
 0x138   : > { %v881_v13 = vsel %vm833_vm4, %v761_v63, %v857_v5  ;;  %v1177_v16 = vpack.c.bf16 %v879_v12, %v878_v6  ;;  %vm836_vm5 = vcmp.ge.f32.partialorder %v710_v8, 0.0  ;;  %v860_v18 = vmul.f32 0.2, %v710_v8 }
 0x139   : > { %v1178_v17 = vpack.c.bf16 %v881_v13, %v880_v7  ;;  %vm838_vm6 = vcmp.ge.f32.partialorder %v763_v9, 0.0  ;;  %v862_v19 = vmul.f32 0.2, %v763_v9  ;;  %vm837_vm7 = vcmp.ge.f32.partialorder %v712_v14, 0.0  ;;  %v715_v24 = vpop.f32.mrb[4].mxu0 }
 0x13a   : > { %v861_v20 = vmul.f32 0.2, %v712_v14  ;;  %974 = vst [vmem:[%s1644_s12] sm:$0xff] %v1177_v16  ;;  %v884_v22 = vsel %vm836_vm5, %v710_v8, %v860_v18  ;;  %vm839_vm8 = vcmp.ge.f32.partialorder %v765_v15, 0.0  ;;  %v863_v23 = vmul.f32 0.2, %v765_v15  ;;  %v768_v25 = vpop.f32.mrb[4].mxu1 }
 0x13b   : > { %975 = vst [vmem:[%s1644_s12 + $0x8] sm:$0xff] %v1178_v17  ;;  %v886_v26 = vsel %vm838_vm6, %v763_v9, %v862_v19  ;;  %v716_v28 = vadd.f32 %v715_v24, %v1627_v55  ;;  %v769_v29 = vadd.f32 %v768_v25, %v1627_v55  ;;  %v717_v30 = vpop.f32.mrb[5].mxu0  ;;  %v770_v31 = vpop.f32.mrb[5].mxu1 }
 0x13c   : > { %v885_v27 = vsel %vm837_vm7, %v712_v14, %v861_v20  ;;  %v887_v33 = vsel %vm839_vm8, %v765_v15, %v863_v23  ;;  %v718_v34 = vadd.f32 %v717_v30, %v1627_v55  ;;  %v771_v35 = vadd.f32 %v770_v31, %v1627_v55  ;;  %v719_v36 = vpop.f32.mrb[6].mxu0  ;;  %v772_v37 = vpop.f32.mrb[6].mxu1 }
 0x13d   : > { %v1180_v32 = vpack.c.bf16 %v885_v27, %v884_v22  ;;  %v1181_v38 = vpack.c.bf16 %v887_v33, %v886_v26  ;;  %vm842_vm9 = vcmp.ge.f32.partialorder %v716_v28, 0.0  ;;  %v866_v39 = vmul.f32 0.2, %v716_v28  ;;  %v721_v40 = vpop.f32.mrb[7].mxu0  ;;  %v774_v41 = vpop.f32.mrb[7].mxu1 }
 0x13e   : > { %vm844_vm10 = vcmp.ge.f32.partialorder %v769_v29, 0.0  ;;  %v868_v42 = vmul.f32 0.2, %v769_v29  ;;  %vm843_vm11 = vcmp.ge.f32.partialorder %v718_v34, 0.0  ;;  %v867_v43 = vmul.f32 0.2, %v718_v34 }
 0x13f   : > { %977 = vst [vmem:[%s1644_s12 + $0x18] sm:$0xff] %v1180_v32  ;;  %vm845_vm12 = vcmp.ge.f32.partialorder %v771_v35, 0.0  ;;  %978 = vst [vmem:[%s1644_s12 + $0x20] sm:$0xff] %v1181_v38  ;;  %v890_v44 = vsel %vm842_vm9, %v716_v28, %v866_v39  ;;  %v869_v45 = vmul.f32 0.2, %v771_v35  ;;  %v720_v46 = vadd.f32 %v719_v36, %v1641_v21 }
 0x140   : > { %v773_v47 = vadd.f32 %v772_v37, %v1641_v21  ;;  %v892_v48 = vsel %vm844_vm10, %v769_v29, %v868_v42  ;;  %v891_v49 = vsel %vm843_vm11, %v718_v34, %v867_v43  ;;  %v722_v50 = vadd.f32 %v721_v40, %v1641_v21 }
 0x141   : > { %v775_v51 = vadd.f32 %v774_v41, %v1641_v21  ;;  %v1183_v52 = vpack.c.bf16 %v891_v49, %v890_v44  ;;  %v893_v56 = vsel %vm845_vm12, %v771_v35, %v869_v45  ;;  %vm848_vm13 = vcmp.ge.f32.partialorder %v720_v46, 0.0  ;;  %v1008_v37 = vld [vmem:[%s1644_s12] sm:$0xff] (%p1400_p5) }
 0x142   : > { %v872_v57 = vmul.f32 0.2, %v720_v46  ;;  %v1184_v58 = vpack.c.bf16 %v893_v56, %v892_v48  ;;  %vm849_vm14 = vcmp.ge.f32.partialorder %v722_v50, 0.0  ;;  %v873_v59 = vmul.f32 0.2, %v722_v50  ;;  %v1010_v38 = vld [vmem:[%s1644_s12 + $0x8] sm:$0xff] (%p1400_p5)  ;;  %1009 = vst [vmem:[%s995_s29] sm:$0xff] (%p1400_p5), %v1008_v37 }
 0x143   : > { %vm850_vm15 = vcmp.ge.f32.partialorder %v773_v47, 0.0  ;;  %980 = vst [vmem:[%s1644_s12 + $0x30] sm:$0xff] %v1183_v52  ;;  %vm851_vm0 = vcmp.ge.f32.partialorder %v775_v51, 0.0  ;;  %v874_v61 = vmul.f32 0.2, %v773_v47  ;;  %1011 = vst [vmem:[%s995_s29 + $0x8] sm:$0xff] (%p1400_p5), %v1010_v38 }
 0x144   : > { %v896_v60 = vsel %vm848_vm13, %v720_v46, %v872_v57  ;;  %v875_v62 = vmul.f32 0.2, %v775_v51  ;;  %981 = vst [vmem:[%s1644_s12 + $0x38] sm:$0xff] %v1184_v58  ;;  %v897_v63 = vsel %vm849_vm14, %v722_v50, %v873_v59 }
 0x145   : > { %v1186_v0 = vpack.c.bf16 %v897_v63, %v896_v60  ;;  %v898_v1 = vsel %vm850_vm15, %v773_v47, %v874_v61 }
 0x146   : > { %v899_v2 = vsel %vm851_vm0, %v775_v51, %v875_v62  ;;  %v1014_v40 = vld [vmem:[%s1644_s12 + $0x18] sm:$0xff] (%p1400_p5)  ;;  %v1016_v41 = vld [vmem:[%s1644_s12 + $0x20] sm:$0xff] (%p1400_p5) }
 0x147   : > { %v1187_v3 = vpack.c.bf16 %v899_v2, %v898_v1  ;;  %983 = vst [vmem:[%s1644_s12 + $0x48] sm:$0xff] %v1186_v0  ;;  %1015 = vst [vmem:[%s995_s29 + $0x30] sm:$0xff] (%p1400_p5), %v1014_v40 }
 0x148   : > { %1017 = vst [vmem:[%s995_s29 + $0x38] sm:$0xff] (%p1400_p5), %v1016_v41 }
 0x149   : > { %984 = vst [vmem:[%s1644_s12 + $0x50] sm:$0xff] %v1187_v3 }
 0x14a   : > { %v1020_v43 = vld [vmem:[%s1644_s12 + $0x30] sm:$0xff] (%p1400_p5) }
 0x14b   : > { %v1022_v44 = vld [vmem:[%s1644_s12 + $0x38] sm:$0xff] (%p1400_p5)  ;;  %1021 = vst [vmem:[%s995_s29 + $0x60] sm:$0xff] (%p1400_p5), %v1020_v43 }
 0x14c   : > { %1023 = vst [vmem:[%s995_s29 + $0x68] sm:$0xff] (%p1400_p5), %v1022_v44 }
 0x14e   : > { %v1026_v46 = vld [vmem:[%s1644_s12 + $0x48] sm:$0xff] (%p1400_p5) }
 0x14f   : > { %1027 = vst [vmem:[%s995_s29 + $0x90] sm:$0xff] (%p1400_p5), %v1026_v46 }
 0x150   : > { %v1028_v47 = vld [vmem:[%s1644_s12 + $0x50] sm:$0xff] (%p1400_p5) }
 0x151   : > { %1029 = vst [vmem:[%s995_s29 + $0x98] sm:$0xff] (%p1400_p5), %v1028_v47 }
 0x155   : > { %v811_v4 = vpop.f32.mrb[8].mxu0 }
 0x156   : > { %v821_v5 = vpop.f32.mrb[8].mxu1  ;;  %v812_v6 = vadd.f32 %v811_v4, %v1623_v53  ;;  %v813_v8 = vpop.f32.mrb[9].mxu0 }
 0x157   : > { %v822_v7 = vadd.f32 %v821_v5, %v1627_v55  ;;  %v823_v9 = vpop.f32.mrb[9].mxu1  ;;  %v814_v10 = vadd.f32 %v813_v8, %v1623_v53  ;;  %v815_v12 = vpop.f32.mrb[10].mxu0 }
 0x158   : > { %v824_v11 = vadd.f32 %v823_v9, %v1627_v55  ;;  %v825_v13 = vpop.f32.mrb[10].mxu1  ;;  %vm834_vm1 = vcmp.ge.f32.partialorder %v812_v6, 0.0  ;;  %v858_v14 = vmul.f32 0.2, %v812_v6  ;;  %v816_v20 = vadd.f32 %v815_v12, %v1625_v54  ;;  %v817_v53 = vpop.f32.mrb[11].mxu0 }
 0x159   : > { %vm846_vm2 = vcmp.ge.f32.partialorder %v822_v7, 0.0  ;;  %v870_v15 = vmul.f32 0.2, %v822_v7  ;;  %vm835_vm3 = vcmp.ge.f32.partialorder %v814_v10, 0.0  ;;  %v859_v16 = vmul.f32 0.2, %v814_v10 }
 0x15a   : > { %vm847_vm4 = vcmp.ge.f32.partialorder %v824_v11, 0.0  ;;  %v871_v17 = vmul.f32 0.2, %v824_v11  ;;  %v882_v18 = vsel %vm834_vm1, %v812_v6, %v858_v14  ;;  %v826_v22 = vadd.f32 %v825_v13, %v1641_v21  ;;  %v827_v55 = vpop.f32.mrb[11].mxu1 }
 0x15b   : > { %v894_v19 = vsel %vm846_vm2, %v822_v7, %v870_v15  ;;  %v883_v23 = vsel %vm835_vm3, %v814_v10, %v859_v16  ;;  %v818_v25 = vadd.f32 %v817_v53, %v1625_v54  ;;  %v828_v26 = vadd.f32 %v827_v55, %v1641_v21 }
 0x15c   : > { %v895_v24 = vsel %vm847_vm4, %v824_v11, %v871_v17  ;;  %v1179_v27 = vpack.c.bf16 %v883_v23, %v882_v18  ;;  %vm840_vm5 = vcmp.ge.f32.partialorder %v816_v20, 0.0  ;;  %v864_v29 = vmul.f32 0.2, %v816_v20 }
 0x15d   : > { %v1185_v28 = vpack.c.bf16 %v895_v24, %v894_v19  ;;  %vm852_vm6 = vcmp.ge.f32.partialorder %v826_v22, 0.0  ;;  %v876_v30 = vmul.f32 0.2, %v826_v22  ;;  %vm841_vm7 = vcmp.ge.f32.partialorder %v818_v25, 0.0  ;;  %992 = sbr.rel (!%p1400_p5) target bundleno = 364 (0x16c), region = 59 }
 0x15e   : > { %v865_v31 = vmul.f32 0.2, %v818_v25  ;;  %976 = vst [vmem:[%s1644_s12 + $0x10] sm:$0xff] %v1179_v27  ;;  %v888_v32 = vsel %vm840_vm5, %v816_v20, %v864_v29  ;;  %vm853_vm8 = vcmp.ge.f32.partialorder %v828_v26, 0.0  ;;  %v877_v33 = vmul.f32 0.2, %v828_v26 }
 0x15f   : > { %982 = vst [vmem:[%s1644_s12 + $0x40] sm:$0xff] %v1185_v28  ;;  %v900_v34 = vsel %vm852_vm6, %v826_v22, %v876_v30 }
 0x160   : > { %v889_v35 = vsel %vm841_vm7, %v818_v25, %v865_v31  ;;  %v901_v36 = vsel %vm853_vm8, %v828_v26, %v877_v33 }
 0x161   : > { %v1182_v54 = vpack.c.bf16 %v889_v35, %v888_v32  ;;  %v1188_v21 = vpack.c.bf16 %v901_v36, %v900_v34 }
 0x163   : > { %979 = vst [vmem:[%s1644_s12 + $0x28] sm:$0xff] %v1182_v54  ;;  %985 = vst [vmem:[%s1644_s12 + $0x58] sm:$0xff] %v1188_v21 }
 0x165   : > { %v1012_v39 = vld [vmem:[%s1644_s12 + $0x10] sm:$0xff] }
 0x166   : > { %v1024_v45 = vld [vmem:[%s1644_s12 + $0x40] sm:$0xff]  ;;  %1013 = vst [vmem:[%s995_s29 + $0x10] sm:$0xff] %v1012_v39 }
 0x167   : > { %1025 = vst [vmem:[%s995_s29 + $0x70] sm:$0xff] %v1024_v45 }
 0x16a   : > { %v1018_v42 = vld [vmem:[%s1644_s12 + $0x28] sm:$0xff]  ;;  %v1030_v48 = vld [vmem:[%s1644_s12 + $0x58] sm:$0xff] }
 0x16b   : > { %1019 = vst [vmem:[%s995_s29 + $0x40] sm:$0xff] %v1018_v42  ;;  %1031 = vst [vmem:[%s995_s29 + $0xa0] sm:$0xff] %v1030_v48 }
 0x16c PF: > { %p10_p10 = scmp.ge.s32.totalorder %s1387_s16, 4   ;;  %s1708_s12 = smov %s1343_s13 }
 0x16d   : > { %s1709_s13 = smov %s1398_s19  ;;  %s1710_s14 = smov %s1387_s16 }
 0x16e   :  { %12 = sbr.rel (!%p10_p10) target bundleno = 2 (0x2), region = 113 }

// kernel: discriminator_forward.8
= control target key start
LH: loop header
LB: loop body
LE: loop exit
PB: predicated region body
PF: predicated region fallthrough
CT: control target
= control target key end

     0   :  { %s2794_s12 = smov 0   ;;  %s2796_s13 = smov 0   ;;  %s4166_s0 = inlined_call_operand.vmem [shape: bf16[32,288], index: 0, kind: input, shape index: {}]   ;;  %s4167_s1 = inlined_call_operand.vmem [shape: bf16[288,338], index: 1, kind: input, shape index: {}]   ;;  %s4168_s2 = inlined_call_operand.vmem [shape: f32[32,1], index: 2, kind: input, shape index: {}]   ;;  %s4169_s3 = inlined_call_operand.vmem [shape: bf16[32,338], index: 3, kind: output, shape index: {}]  }
   0x1   :  { %s2798_s14 = smov 0  }
   0x2 LB: > { %s2810_s15 = sadd.s32 4294967295, %s2639_s14   ;;  %s2813_s16 = sadd.s32 1, %s2639_s14   ;;  %s2639_s14 = sphi %s2798_s14, %s4207_s14   ;;  %s2635_s13 = sphi %s2796_s13, %s4206_s13   ;;  %s2631_s12 = sphi %s2794_s12, %s4205_s12  }
   0x3   : > { %s38_s17 = ssub.s32 %s2639_s14, %s2813_s16  ;;  %s41_s18 = sadd.s32 1, %s2635_s13 }
   0x4   : > { %p39_p0 = scmp.eq.s32.totalorder %s38_s17, 0  ;;  %p48_p1 = scmp.ne.s32.totalorder %s2635_s13, %s2631_s12 }
   0x5   : > { %p49_p2 = scmp.eq.s32.totalorder %s2639_s14, 0  ;;  %p99_p3 = scmp.eq.s32.totalorder %s2810_s15, 1 }
   0x6   : > { %s2823_s19 = scalar_select %p39_p0, %s2635_s13, %s41_s18  }
   0x7   : > { %p50_p4 = por %p49_p2, %p48_p1  ;;  %p2825_p5 = por %p99_p3, %p48_p1 }
   0x8   : > { %p2003_p6 = scmp.ge.s32.totalorder %s2639_s14, 2 }
   0xa   : > { %127 = sbr.rel (%p2003_p6) target bundleno = 246 (0xf6), region = 24 }
  0x11   : > { %130 = sbr.rel (!%p50_p4) target bundleno = 246 (0xf6), region = 28  ;;  %s132_s21 = sand.u32 (%p50_p4), 1, %s2635_s13  }
  0x12   : > { %s2004_s22 = sshll.u32 (%p50_p4), %s2639_s14, 1  ;;  %s2138_s23 = smul.u32 (%p50_p4), 288, %s132_s21 }
  0x13   : > { %s136_s24 = ssub.s32 (%p50_p4), 3, %s2004_s22  ;;  %s2108_s25 = sshll.u32 (%p50_p4), %s2639_s14, 3 }
  0x14   : > { %p137_p7 = scmp.lt.s32.totalorder (%p50_p4), %s136_s24, 2  ;;  %s2836_s28 = scalar_lea.vmem (%p50_p4), %s4167_s1, %s2108_s25  }
  0x15   : > { %s2840_s4 = scalar_lea.vmem (%p50_p4), [#allocation2], %s2138_s23  }
  0x18   : > { %s4209_s24 = smov (!%p137_p7, %s136_s24), 2 }
  0x19   : > { %s139_s29 = smul.u32 2304, %s4209_s24  ;;  %s2838_s30 = sshll.u32 %s4209_s24, 2 }
  0x1b   : > { %p2008_p8 = scmp.eq.s32.totalorder %s139_s29, 0 }
  0x1c   : > { %p147_p9 = scmp.lt.u32.totalorder (!%p2008_p8), %s2838_s30, 8 }
  0x1d   : > { %146 = sbr.rel (%p2008_p8) target bundleno = 246 (0xf6), region = 32 }
  0x24   : > { %150 = sbr.rel (%p147_p9) target bundleno = 207 (0xcf), region = 36  ;;  %s2844_s5 = sand.u32 (!%p147_p9), 7, %s2838_s30  }
  0x25   : > { %p236_p10 = scmp.eq.s32.totalorder (!%p147_p9), %s2844_s5, 0  ;;  %p2009_p11 = scmp.ne.s32.totalorder (!%p147_p9), %s2844_s5, 0 }
  0x2b   : > { %239 = sbr.rel (%p2009_p11) target bundleno = 106 (0x6a), region = 51  ;;  %s240_s6 = sshrl.u32 (!%p2009_p11), %s2838_s30, 3 }
  0x2c   : > { %s2851_s7 = sshrl.u32 (!%p2009_p11), %s240_s6, 1 }
  0x2d   : > { %p2010_p12 = scmp.le.s32.totalorder (!%p2009_p11), %s2851_s7, 0 }
  0x32   : > { %1873 = sbr.rel (%p2010_p12) target bundleno = 77 (0x4d), region = 229  ;;  %s4171_s8 = smov (!%p2010_p12), %s2840_s4 }
  0x33   : > { %s4172_s9 = smov (!%p2010_p12), %s2836_s28  ;;  %s2860_s10 = smov (!%p2010_p12), 0  }
  0x34   : > { %s2862_s11 = smov (!%p2010_p12), 0  }
  0x39 LB: >> { %v253_v0 = vld [vmem:[%s2647_s9] sm:$0xff]  ;;  %v257_v1 = vld [vmem:[%s2647_s9 + $0xc] sm:$0xff]  ;;  %v261_v2 = vld [vmem:[%s2647_s9 + $0x18] sm:$0xff]  ;;  %s397_s17 = sadd.s32 1, %s2651_s10  ;;  %s247_s11 = sadd.s32 1, %s2655_s11   ;;  %s2655_s11 = sphi %s2862_s11, %s247_s11   ;;  %s2651_s10 = sphi %s2860_s10, %s4175_s10   ;;  %s2647_s9 = sphi %s4172_s9, %s4174_s9   ;;  %s2643_s8 = sphi %s4171_s8, %s4173_s8  }
  0x3a   : >> { %254 = vst [vmem:[%s2643_s8] sm:$0xff] %v253_v0  ;;  %258 = vst [vmem:[%s2643_s8 + $0x8] sm:$0xff] %v257_v1  ;;  %v265_v3 = vld [vmem:[%s2647_s9 + $0x24] sm:$0xff]  ;;  %v269_v4 = vld [vmem:[%s2647_s9 + $0x30] sm:$0xff]  ;;  %p398_p13 = scmp.ge.s32.totalorder %s397_s17, %s2851_s7  ;;  %p246_p0 = scmp.ge.s32.totalorder %s247_s11, %s2851_s7 }
  0x3b   : >> { %262 = vst [vmem:[%s2643_s8 + $0x10] sm:$0xff] %v261_v2  ;;  %v273_v5 = vld [vmem:[%s2647_s9 + $0x3c] sm:$0xff]  ;;  %266 = vst [vmem:[%s2643_s8 + $0x18] sm:$0xff] %v265_v3  ;;  %v277_v6 = vld [vmem:[%s2647_s9 + $0x48] sm:$0xff] }
  0x3c   : >> { %270 = vst [vmem:[%s2643_s8 + $0x20] sm:$0xff] %v269_v4  ;;  %274 = vst [vmem:[%s2643_s8 + $0x28] sm:$0xff] %v273_v5  ;;  %v281_v7 = vld [vmem:[%s2647_s9 + $0x54] sm:$0xff]  ;;  %v285_v8 = vld [vmem:[%s2647_s9 + $0x60] sm:$0xff]  ;;  %s4211_s17 = smov (%p398_p13, %s397_s17), 0 }
  0x3d   : >> { %278 = vst [vmem:[%s2643_s8 + $0x30] sm:$0xff] %v277_v6  ;;  %282 = vst [vmem:[%s2643_s8 + $0x38] sm:$0xff] %v281_v7  ;;  %v289_v9 = vld [vmem:[%s2647_s9 + $0x6c] sm:$0xff]  ;;  %v293_v10 = vld [vmem:[%s2647_s9 + $0x78] sm:$0xff]  ;;  %s2011_s18 = sshll.u32 %s4211_s17, 4  ;;  %s4175_s10 = smov %s4211_s17 }
  0x3e   : >> { %286 = vst [vmem:[%s2643_s8 + $0x40] sm:$0xff] %v285_v8  ;;  %v297_v11 = vld [vmem:[%s2647_s9 + $0x84] sm:$0xff]  ;;  %290 = vst [vmem:[%s2643_s8 + $0x48] sm:$0xff] %v289_v9  ;;  %v301_v12 = vld [vmem:[%s2647_s9 + $0x90] sm:$0xff]  ;;  %s402_s21 = scalar_lea.vmem %s2836_s28, %s2011_s18   ;;  %s403_s22 = scalar_lea.vmem %s2840_s4, %s2011_s18 [#allocation2]  }
  0x3f   : >> { %294 = vst [vmem:[%s2643_s8 + $0x50] sm:$0xff] %v293_v10  ;;  %298 = vst [vmem:[%s2643_s8 + $0x58] sm:$0xff] %v297_v11  ;;  %v305_v13 = vld [vmem:[%s2647_s9 + $0x9c] sm:$0xff]  ;;  %v309_v14 = vld [vmem:[%s2647_s9 + $0xa8] sm:$0xff] }
  0x40   : >> { %302 = vst [vmem:[%s2643_s8 + $0x60] sm:$0xff] %v301_v12  ;;  %306 = vst [vmem:[%s2643_s8 + $0x68] sm:$0xff] %v305_v13  ;;  %v313_v15 = vld [vmem:[%s2647_s9 + $0xb4] sm:$0xff]  ;;  %v317_v16 = vld [vmem:[%s2647_s9 + $0xc0] sm:$0xff] }
  0x41   : >> { %310 = vst [vmem:[%s2643_s8 + $0x70] sm:$0xff] %v309_v14  ;;  %v321_v17 = vld [vmem:[%s2647_s9 + $0xcc] sm:$0xff]  ;;  %314 = vst [vmem:[%s2643_s8 + $0x78] sm:$0xff] %v313_v15  ;;  %v325_v18 = vld [vmem:[%s2647_s9 + $0xd8] sm:$0xff] }
  0x42   : >> { %318 = vst [vmem:[%s2643_s8 + $0x80] sm:$0xff] %v317_v16  ;;  %322 = vst [vmem:[%s2643_s8 + $0x88] sm:$0xff] %v321_v17  ;;  %v329_v19 = vld [vmem:[%s2647_s9 + $0xe4] sm:$0xff]  ;;  %v333_v20 = vld [vmem:[%s2647_s9 + $0xf0] sm:$0xff] }
  0x43   : >> { %326 = vst [vmem:[%s2643_s8 + $0x90] sm:$0xff] %v325_v18  ;;  %330 = vst [vmem:[%s2643_s8 + $0x98] sm:$0xff] %v329_v19  ;;  %v337_v21 = vld [vmem:[%s2647_s9 + $0xfc] sm:$0xff]  ;;  %v341_v22 = vld [vmem:[%s2647_s9 + $0x108] sm:$0xff] }
  0x44   : >> { %334 = vst [vmem:[%s2643_s8 + $0xa0] sm:$0xff] %v333_v20  ;;  %v345_v23 = vld [vmem:[%s2647_s9 + $0x114] sm:$0xff]  ;;  %338 = vst [vmem:[%s2643_s8 + $0xa8] sm:$0xff] %v337_v21  ;;  %v349_v24 = vld [vmem:[%s2647_s9 + $0x120] sm:$0xff] }
  0x45   : >> { %342 = vst [vmem:[%s2643_s8 + $0xb0] sm:$0xff] %v341_v22  ;;  %346 = vst [vmem:[%s2643_s8 + $0xb8] sm:$0xff] %v345_v23  ;;  %v353_v25 = vld [vmem:[%s2647_s9 + $0x12c] sm:$0xff]  ;;  %v357_v26 = vld [vmem:[%s2647_s9 + $0x138] sm:$0xff] }
  0x46   : >> { %350 = vst [vmem:[%s2643_s8 + $0xc0] sm:$0xff] %v349_v24  ;;  %354 = vst [vmem:[%s2643_s8 + $0xc8] sm:$0xff] %v353_v25  ;;  %v361_v27 = vld [vmem:[%s2647_s9 + $0x144] sm:$0xff]  ;;  %v365_v28 = vld [vmem:[%s2647_s9 + $0x150] sm:$0xff]  ;;  %249 = sbr.rel (!%p246_p0) target bundleno = 57 (0x39), region = 235 }
  0x47   : >> { %358 = vst [vmem:[%s2643_s8 + $0xd0] sm:$0xff] %v357_v26  ;;  %v369_v29 = vld [vmem:[%s2647_s9 + $0x15c] sm:$0xff]  ;;  %362 = vst [vmem:[%s2643_s8 + $0xd8] sm:$0xff] %v361_v27  ;;  %v373_v30 = vld [vmem:[%s2647_s9 + $0x168] sm:$0xff] }
  0x48   : >> { %366 = vst [vmem:[%s2643_s8 + $0xe0] sm:$0xff] %v365_v28  ;;  %370 = vst [vmem:[%s2643_s8 + $0xe8] sm:$0xff] %v369_v29  ;;  %v377_v31 = vld [vmem:[%s2647_s9 + $0x174] sm:$0xff]  ;;  %v381_v32 = vld [vmem:[%s2647_s9 + $0x180] sm:$0xff] }
  0x49   : >> { %374 = vst [vmem:[%s2643_s8 + $0xf0] sm:$0xff] %v373_v30  ;;  %378 = vst [vmem:[%s2643_s8 + $0xf8] sm:$0xff] %v377_v31  ;;  %v385_v33 = vld [vmem:[%s2647_s9 + $0x18c] sm:$0xff]  ;;  %v389_v34 = vld [vmem:[%s2647_s9 + $0x198] sm:$0xff] }
  0x4a   : >> { %382 = vst [vmem:[%s2643_s8 + $0x100] sm:$0xff] %v381_v32  ;;  %v393_v35 = vld [vmem:[%s2647_s9 + $0x1a4] sm:$0xff]  ;;  %386 = vst [vmem:[%s2643_s8 + $0x108] sm:$0xff] %v385_v33  ;;  %v395_v36 = vld [vmem:[%s2647_s9 + $0x1ac] sm:$0xff]  ;;  %s4174_s9 = smov %s402_s21 }
  0x4b   : >> { %390 = vst [vmem:[%s2643_s8 + $0x110] sm:$0xff] %v389_v34  ;;  %394 = vst [vmem:[%s2643_s8 + $0x118] sm:$0xff] %v393_v35 }
  0x4c   : >> { %396 = vst [vmem:[%s2643_s8 + $0x120] sm:$0xff] %v395_v36  ;;  %s4173_s8 = smov %s403_s22 }
  0x4d PF: > { %s2970_s23 = sand.u32 1, %s240_s6   ;;  %s2109_s24 = sshll.u32 %s2851_s7, 8 }
  0x4e   : > { %s408_s25 = sshra.s32 %s2109_s24, 4  ;;  %p2016_p1 = scmp.le.s32.totalorder %s2970_s23, 0 }
  0x4f   : > { %s2974_s26 = scalar_lea.vmem %s2836_s28, %s408_s25   ;;  %s2977_s27 = scalar_lea.vmem %s2840_s4, %s408_s25 [#allocation2]  }
  0x50   : > { %1887 = sbr.rel (%p2016_p1) target bundleno = 106 (0x6a), region = 240  ;;  %s4176_s29 = smov (!%p2016_p1), %s2977_s27 }
  0x51   : > { %s4177_s8 = smov (!%p2016_p1), %s2974_s26  ;;  %s2986_s9 = smov (!%p2016_p1), 0  }
  0x52   : > { %s2988_s10 = smov (!%p2016_p1), 0  }
  0x57 LB: >> { %v424_v37 = vld [vmem:[%s2663_s8] sm:$0xff]  ;;  %v426_v38 = vld [vmem:[%s2663_s8 + $0xc] sm:$0xff]  ;;  %v428_v39 = vld [vmem:[%s2663_s8 + $0x18] sm:$0xff]  ;;  %s496_s6 = sadd.s32 1, %s2667_s9  ;;  %s418_s10 = sadd.s32 1, %s2671_s10   ;;  %s2671_s10 = sphi %s2988_s10, %s418_s10   ;;  %s2667_s9 = sphi %s2986_s9, %s4180_s9   ;;  %s2663_s8 = sphi %s4177_s8, %s4179_s8   ;;  %s2659_s29 = sphi %s4176_s29, %s4178_s29  }
  0x58   : >> { %425 = vst [vmem:[%s2659_s29] sm:$0xff] %v424_v37  ;;  %427 = vst [vmem:[%s2659_s29 + $0x8] sm:$0xff] %v426_v38  ;;  %v430_v40 = vld [vmem:[%s2663_s8 + $0x24] sm:$0xff]  ;;  %v432_v41 = vld [vmem:[%s2663_s8 + $0x30] sm:$0xff]  ;;  %p497_p2 = scmp.ge.s32.totalorder %s496_s6, %s2970_s23  ;;  %p417_p3 = scmp.ge.s32.totalorder %s418_s10, %s2970_s23 }
  0x59   : >> { %429 = vst [vmem:[%s2659_s29 + $0x10] sm:$0xff] %v428_v39  ;;  %v434_v42 = vld [vmem:[%s2663_s8 + $0x3c] sm:$0xff]  ;;  %431 = vst [vmem:[%s2659_s29 + $0x18] sm:$0xff] %v430_v40  ;;  %v436_v43 = vld [vmem:[%s2663_s8 + $0x48] sm:$0xff] }
  0x5a   : >> { %433 = vst [vmem:[%s2659_s29 + $0x20] sm:$0xff] %v432_v41  ;;  %435 = vst [vmem:[%s2659_s29 + $0x28] sm:$0xff] %v434_v42  ;;  %v438_v44 = vld [vmem:[%s2663_s8 + $0x54] sm:$0xff]  ;;  %v440_v45 = vld [vmem:[%s2663_s8 + $0x60] sm:$0xff]  ;;  %s4213_s6 = smov (%p497_p2, %s496_s6), 0 }
  0x5b   : >> { %437 = vst [vmem:[%s2659_s29 + $0x30] sm:$0xff] %v436_v43  ;;  %439 = vst [vmem:[%s2659_s29 + $0x38] sm:$0xff] %v438_v44  ;;  %v442_v46 = vld [vmem:[%s2663_s8 + $0x6c] sm:$0xff]  ;;  %v444_v47 = vld [vmem:[%s2663_s8 + $0x78] sm:$0xff]  ;;  %s2017_s7 = sshll.u32 %s4213_s6, 3  ;;  %s4180_s9 = smov %s4213_s6 }
  0x5c   : >> { %441 = vst [vmem:[%s2659_s29 + $0x40] sm:$0xff] %v440_v45  ;;  %v446_v48 = vld [vmem:[%s2663_s8 + $0x84] sm:$0xff]  ;;  %443 = vst [vmem:[%s2659_s29 + $0x48] sm:$0xff] %v442_v46  ;;  %v448_v49 = vld [vmem:[%s2663_s8 + $0x90] sm:$0xff]  ;;  %s3044_s11 = scalar_lea.vmem %s2974_s26, %s2017_s7   ;;  %s3047_s17 = scalar_lea.vmem %s2977_s27, %s2017_s7 [#allocation2]  }
  0x5d   : >> { %445 = vst [vmem:[%s2659_s29 + $0x50] sm:$0xff] %v444_v47  ;;  %447 = vst [vmem:[%s2659_s29 + $0x58] sm:$0xff] %v446_v48  ;;  %v450_v50 = vld [vmem:[%s2663_s8 + $0x9c] sm:$0xff]  ;;  %v452_v51 = vld [vmem:[%s2663_s8 + $0xa8] sm:$0xff] }
  0x5e   : >> { %449 = vst [vmem:[%s2659_s29 + $0x60] sm:$0xff] %v448_v49  ;;  %451 = vst [vmem:[%s2659_s29 + $0x68] sm:$0xff] %v450_v50  ;;  %v454_v52 = vld [vmem:[%s2663_s8 + $0xb4] sm:$0xff]  ;;  %v456_v53 = vld [vmem:[%s2663_s8 + $0xc0] sm:$0xff] }
  0x5f   : >> { %453 = vst [vmem:[%s2659_s29 + $0x70] sm:$0xff] %v452_v51  ;;  %v458_v54 = vld [vmem:[%s2663_s8 + $0xcc] sm:$0xff]  ;;  %455 = vst [vmem:[%s2659_s29 + $0x78] sm:$0xff] %v454_v52  ;;  %v460_v55 = vld [vmem:[%s2663_s8 + $0xd8] sm:$0xff] }
  0x60   : >> { %457 = vst [vmem:[%s2659_s29 + $0x80] sm:$0xff] %v456_v53  ;;  %459 = vst [vmem:[%s2659_s29 + $0x88] sm:$0xff] %v458_v54  ;;  %v462_v56 = vld [vmem:[%s2663_s8 + $0xe4] sm:$0xff]  ;;  %v464_v57 = vld [vmem:[%s2663_s8 + $0xf0] sm:$0xff] }
  0x61   : >> { %461 = vst [vmem:[%s2659_s29 + $0x90] sm:$0xff] %v460_v55  ;;  %463 = vst [vmem:[%s2659_s29 + $0x98] sm:$0xff] %v462_v56  ;;  %v466_v58 = vld [vmem:[%s2663_s8 + $0xfc] sm:$0xff]  ;;  %v468_v59 = vld [vmem:[%s2663_s8 + $0x108] sm:$0xff] }
  0x62   : >> { %465 = vst [vmem:[%s2659_s29 + $0xa0] sm:$0xff] %v464_v57  ;;  %v470_v60 = vld [vmem:[%s2663_s8 + $0x114] sm:$0xff]  ;;  %467 = vst [vmem:[%s2659_s29 + $0xa8] sm:$0xff] %v466_v58  ;;  %v472_v61 = vld [vmem:[%s2663_s8 + $0x120] sm:$0xff] }
  0x63   : >> { %469 = vst [vmem:[%s2659_s29 + $0xb0] sm:$0xff] %v468_v59  ;;  %471 = vst [vmem:[%s2659_s29 + $0xb8] sm:$0xff] %v470_v60  ;;  %v474_v62 = vld [vmem:[%s2663_s8 + $0x12c] sm:$0xff]  ;;  %v476_v63 = vld [vmem:[%s2663_s8 + $0x138] sm:$0xff]  ;;  %420 = sbr.rel (!%p417_p3) target bundleno = 87 (0x57), region = 246 }
  0x64   : >> { %473 = vst [vmem:[%s2659_s29 + $0xc0] sm:$0xff] %v472_v61  ;;  %475 = vst [vmem:[%s2659_s29 + $0xc8] sm:$0xff] %v474_v62  ;;  %v478_v0 = vld [vmem:[%s2663_s8 + $0x144] sm:$0xff]  ;;  %v480_v1 = vld [vmem:[%s2663_s8 + $0x150] sm:$0xff] }
  0x65   : >> { %477 = vst [vmem:[%s2659_s29 + $0xd0] sm:$0xff] %v476_v63  ;;  %v482_v2 = vld [vmem:[%s2663_s8 + $0x15c] sm:$0xff]  ;;  %479 = vst [vmem:[%s2659_s29 + $0xd8] sm:$0xff] %v478_v0  ;;  %v484_v3 = vld [vmem:[%s2663_s8 + $0x168] sm:$0xff] }
  0x66   : >> { %481 = vst [vmem:[%s2659_s29 + $0xe0] sm:$0xff] %v480_v1  ;;  %483 = vst [vmem:[%s2659_s29 + $0xe8] sm:$0xff] %v482_v2  ;;  %v486_v4 = vld [vmem:[%s2663_s8 + $0x174] sm:$0xff]  ;;  %v488_v5 = vld [vmem:[%s2663_s8 + $0x180] sm:$0xff] }
  0x67   : >> { %485 = vst [vmem:[%s2659_s29 + $0xf0] sm:$0xff] %v484_v3  ;;  %487 = vst [vmem:[%s2659_s29 + $0xf8] sm:$0xff] %v486_v4  ;;  %v490_v6 = vld [vmem:[%s2663_s8 + $0x18c] sm:$0xff]  ;;  %v492_v7 = vld [vmem:[%s2663_s8 + $0x198] sm:$0xff] }
  0x68   : >> { %489 = vst [vmem:[%s2659_s29 + $0x100] sm:$0xff] %v488_v5  ;;  %v494_v8 = vld [vmem:[%s2663_s8 + $0x1a4] sm:$0xff]  ;;  %491 = vst [vmem:[%s2659_s29 + $0x108] sm:$0xff] %v490_v6  ;;  %s4179_s8 = smov %s3044_s11 }
  0x69   : >> { %493 = vst [vmem:[%s2659_s29 + $0x110] sm:$0xff] %v492_v7  ;;  %495 = vst [vmem:[%s2659_s29 + $0x118] sm:$0xff] %v494_v8  ;;  %s4178_s29 = smov %s3047_s17 }
  0x6a PF: > { %505 = sbr.rel (%p236_p10) target bundleno = 207 (0xcf), region = 69  ;;  %s507_s18 = ssub.s32 (!%p236_p10), %s2838_s30, %s2844_s5 }
  0x6b   : > { %s511_s21 = sshrl.u32 (!%p236_p10), %s2838_s30, 3  ;;  %s3101_s22 = scalar_lea.vmem (!%p236_p10), %s2836_s28, %s507_s18 }
  0x6c   : > { %s3104_s24 = scalar_lea.vmem (!%p236_p10), %s2840_s4, %s507_s18 [#allocation2]  ;;  %s3108_s25 = sshrl.u32 (!%p236_p10), %s511_s21, 1 }
  0x6d   : > { %p2019_p4 = scmp.le.s32.totalorder (!%p236_p10), %s3108_s25, 0 }
  0x71   : > { %1901 = sbr.rel (%p2019_p4) target bundleno = 140 (0x8c), region = 251  ;;  %s4181_s23 = smov (!%p2019_p4), %s2840_s4 }
  0x72   : > { %s4182_s26 = smov (!%p2019_p4), %s2836_s28  ;;  %s3117_s27 = smov (!%p2019_p4), 0  }
  0x73   : > { %s3119_s29 = smov (!%p2019_p4), 0  }
  0x78 LB: >> { %v524_v9 = vld [vmem:[%s2679_s26] sm:$0xff]  ;;  %v528_v10 = vld [vmem:[%s2679_s26 + $0xc] sm:$0xff]  ;;  %v532_v11 = vld [vmem:[%s2679_s26 + $0x18] sm:$0xff]  ;;  %s668_s8 = sadd.s32 1, %s2683_s27  ;;  %s518_s29 = sadd.s32 1, %s2687_s29   ;;  %s2687_s29 = sphi %s3119_s29, %s518_s29   ;;  %s2683_s27 = sphi %s3117_s27, %s4185_s27   ;;  %s2679_s26 = sphi %s4182_s26, %s4184_s26   ;;  %s2675_s23 = sphi %s4181_s23, %s4183_s23  }
  0x79   : >> { %525 = vst [vmem:[%s2675_s23] sm:$0xff] %v524_v9  ;;  %529 = vst [vmem:[%s2675_s23 + $0x8] sm:$0xff] %v528_v10  ;;  %v536_v12 = vld [vmem:[%s2679_s26 + $0x24] sm:$0xff]  ;;  %v540_v13 = vld [vmem:[%s2679_s26 + $0x30] sm:$0xff]  ;;  %p669_p6 = scmp.ge.s32.totalorder %s668_s8, %s3108_s25  ;;  %p517_p7 = scmp.ge.s32.totalorder %s518_s29, %s3108_s25 }
  0x7a   : >> { %533 = vst [vmem:[%s2675_s23 + $0x10] sm:$0xff] %v532_v11  ;;  %v544_v14 = vld [vmem:[%s2679_s26 + $0x3c] sm:$0xff]  ;;  %537 = vst [vmem:[%s2675_s23 + $0x18] sm:$0xff] %v536_v12  ;;  %v548_v15 = vld [vmem:[%s2679_s26 + $0x48] sm:$0xff] }
  0x7b   : >> { %541 = vst [vmem:[%s2675_s23 + $0x20] sm:$0xff] %v540_v13  ;;  %545 = vst [vmem:[%s2675_s23 + $0x28] sm:$0xff] %v544_v14  ;;  %v552_v16 = vld [vmem:[%s2679_s26 + $0x54] sm:$0xff]  ;;  %v556_v17 = vld [vmem:[%s2679_s26 + $0x60] sm:$0xff]  ;;  %s4215_s8 = smov (%p669_p6, %s668_s8), 0 }
  0x7c   : >> { %549 = vst [vmem:[%s2675_s23 + $0x30] sm:$0xff] %v548_v15  ;;  %553 = vst [vmem:[%s2675_s23 + $0x38] sm:$0xff] %v552_v16  ;;  %v560_v18 = vld [vmem:[%s2679_s26 + $0x6c] sm:$0xff]  ;;  %v564_v19 = vld [vmem:[%s2679_s26 + $0x78] sm:$0xff]  ;;  %s2020_s9 = sshll.u32 %s4215_s8, 4  ;;  %s4185_s27 = smov %s4215_s8 }
  0x7d   : >> { %557 = vst [vmem:[%s2675_s23 + $0x40] sm:$0xff] %v556_v17  ;;  %v568_v20 = vld [vmem:[%s2679_s26 + $0x84] sm:$0xff]  ;;  %561 = vst [vmem:[%s2675_s23 + $0x48] sm:$0xff] %v560_v18  ;;  %v572_v21 = vld [vmem:[%s2679_s26 + $0x90] sm:$0xff]  ;;  %s673_s10 = scalar_lea.vmem %s2836_s28, %s2020_s9   ;;  %s674_s6 = scalar_lea.vmem %s2840_s4, %s2020_s9 [#allocation2]  }
  0x7e   : >> { %565 = vst [vmem:[%s2675_s23 + $0x50] sm:$0xff] %v564_v19  ;;  %569 = vst [vmem:[%s2675_s23 + $0x58] sm:$0xff] %v568_v20  ;;  %v576_v22 = vld [vmem:[%s2679_s26 + $0x9c] sm:$0xff]  ;;  %v580_v23 = vld [vmem:[%s2679_s26 + $0xa8] sm:$0xff] }
  0x7f   : >> { %573 = vst [vmem:[%s2675_s23 + $0x60] sm:$0xff] %v572_v21  ;;  %577 = vst [vmem:[%s2675_s23 + $0x68] sm:$0xff] %v576_v22  ;;  %v584_v24 = vld [vmem:[%s2679_s26 + $0xb4] sm:$0xff]  ;;  %v588_v25 = vld [vmem:[%s2679_s26 + $0xc0] sm:$0xff] }
  0x80   : >> { %581 = vst [vmem:[%s2675_s23 + $0x70] sm:$0xff] %v580_v23  ;;  %v592_v26 = vld [vmem:[%s2679_s26 + $0xcc] sm:$0xff]  ;;  %585 = vst [vmem:[%s2675_s23 + $0x78] sm:$0xff] %v584_v24  ;;  %v596_v27 = vld [vmem:[%s2679_s26 + $0xd8] sm:$0xff] }
  0x81   : >> { %589 = vst [vmem:[%s2675_s23 + $0x80] sm:$0xff] %v588_v25  ;;  %593 = vst [vmem:[%s2675_s23 + $0x88] sm:$0xff] %v592_v26  ;;  %v600_v28 = vld [vmem:[%s2679_s26 + $0xe4] sm:$0xff]  ;;  %v604_v29 = vld [vmem:[%s2679_s26 + $0xf0] sm:$0xff] }
  0x82   : >> { %597 = vst [vmem:[%s2675_s23 + $0x90] sm:$0xff] %v596_v27  ;;  %601 = vst [vmem:[%s2675_s23 + $0x98] sm:$0xff] %v600_v28  ;;  %v608_v30 = vld [vmem:[%s2679_s26 + $0xfc] sm:$0xff]  ;;  %v612_v31 = vld [vmem:[%s2679_s26 + $0x108] sm:$0xff] }
  0x83   : >> { %605 = vst [vmem:[%s2675_s23 + $0xa0] sm:$0xff] %v604_v29  ;;  %v616_v32 = vld [vmem:[%s2679_s26 + $0x114] sm:$0xff]  ;;  %609 = vst [vmem:[%s2675_s23 + $0xa8] sm:$0xff] %v608_v30  ;;  %v620_v33 = vld [vmem:[%s2679_s26 + $0x120] sm:$0xff] }
  0x84   : >> { %613 = vst [vmem:[%s2675_s23 + $0xb0] sm:$0xff] %v612_v31  ;;  %617 = vst [vmem:[%s2675_s23 + $0xb8] sm:$0xff] %v616_v32  ;;  %v624_v34 = vld [vmem:[%s2679_s26 + $0x12c] sm:$0xff]  ;;  %v628_v35 = vld [vmem:[%s2679_s26 + $0x138] sm:$0xff] }
  0x85   : >> { %621 = vst [vmem:[%s2675_s23 + $0xc0] sm:$0xff] %v620_v33  ;;  %625 = vst [vmem:[%s2675_s23 + $0xc8] sm:$0xff] %v624_v34  ;;  %v632_v36 = vld [vmem:[%s2679_s26 + $0x144] sm:$0xff]  ;;  %v636_v37 = vld [vmem:[%s2679_s26 + $0x150] sm:$0xff]  ;;  %520 = sbr.rel (!%p517_p7) target bundleno = 120 (0x78), region = 257 }
  0x86   : >> { %629 = vst [vmem:[%s2675_s23 + $0xd0] sm:$0xff] %v628_v35  ;;  %v640_v38 = vld [vmem:[%s2679_s26 + $0x15c] sm:$0xff]  ;;  %633 = vst [vmem:[%s2675_s23 + $0xd8] sm:$0xff] %v632_v36  ;;  %v644_v39 = vld [vmem:[%s2679_s26 + $0x168] sm:$0xff] }
  0x87   : >> { %637 = vst [vmem:[%s2675_s23 + $0xe0] sm:$0xff] %v636_v37  ;;  %641 = vst [vmem:[%s2675_s23 + $0xe8] sm:$0xff] %v640_v38  ;;  %v648_v40 = vld [vmem:[%s2679_s26 + $0x174] sm:$0xff]  ;;  %v652_v41 = vld [vmem:[%s2679_s26 + $0x180] sm:$0xff] }
  0x88   : >> { %645 = vst [vmem:[%s2675_s23 + $0xf0] sm:$0xff] %v644_v39  ;;  %649 = vst [vmem:[%s2675_s23 + $0xf8] sm:$0xff] %v648_v40  ;;  %v656_v42 = vld [vmem:[%s2679_s26 + $0x18c] sm:$0xff]  ;;  %v660_v43 = vld [vmem:[%s2679_s26 + $0x198] sm:$0xff] }
  0x89   : >> { %653 = vst [vmem:[%s2675_s23 + $0x100] sm:$0xff] %v652_v41  ;;  %v664_v44 = vld [vmem:[%s2679_s26 + $0x1a4] sm:$0xff]  ;;  %657 = vst [vmem:[%s2675_s23 + $0x108] sm:$0xff] %v656_v42  ;;  %v666_v45 = vld [vmem:[%s2679_s26 + $0x1ac] sm:$0xff]  ;;  %s4184_s26 = smov %s673_s10 }
  0x8a   : >> { %661 = vst [vmem:[%s2675_s23 + $0x110] sm:$0xff] %v660_v43  ;;  %665 = vst [vmem:[%s2675_s23 + $0x118] sm:$0xff] %v664_v44 }
  0x8b   : >> { %667 = vst [vmem:[%s2675_s23 + $0x120] sm:$0xff] %v666_v45  ;;  %s4183_s23 = smov %s674_s6 }
  0x8c PF: > { %s3227_s7 = sand.u32 1, %s511_s21   ;;  %s2111_s11 = sshll.u32 %s3108_s25, 8 }
  0x8d   : > { %s679_s17 = sshra.s32 %s2111_s11, 4  ;;  %p2025_p8 = scmp.le.s32.totalorder %s3227_s7, 0 }
  0x8e   : > { %s3231_s18 = scalar_lea.vmem %s2836_s28, %s679_s17   ;;  %s3234_s9 = scalar_lea.vmem %s2840_s4, %s679_s17 [#allocation2]  }
  0x8f   : > { %1915 = sbr.rel (%p2025_p8) target bundleno = 169 (0xa9), region = 262  ;;  %s4186_s23 = smov (!%p2025_p8), %s3234_s9 }
  0x90   : > { %s4187_s26 = smov (!%p2025_p8), %s3231_s18  ;;  %s3243_s27 = smov (!%p2025_p8), 0  }
  0x91   : > { %s3245_s29 = smov (!%p2025_p8), 0  }
  0x96 LB: >> { %v695_v46 = vld [vmem:[%s2695_s26] sm:$0xff]  ;;  %v697_v47 = vld [vmem:[%s2695_s26 + $0xc] sm:$0xff]  ;;  %v699_v48 = vld [vmem:[%s2695_s26 + $0x18] sm:$0xff]  ;;  %s767_s21 = sadd.s32 1, %s2699_s27  ;;  %s689_s29 = sadd.s32 1, %s2703_s29   ;;  %s2703_s29 = sphi %s3245_s29, %s689_s29   ;;  %s2699_s27 = sphi %s3243_s27, %s4190_s27   ;;  %s2695_s26 = sphi %s4187_s26, %s4189_s26   ;;  %s2691_s23 = sphi %s4186_s23, %s4188_s23  }
  0x97   : >> { %696 = vst [vmem:[%s2691_s23] sm:$0xff] %v695_v46  ;;  %698 = vst [vmem:[%s2691_s23 + $0x8] sm:$0xff] %v697_v47  ;;  %v701_v49 = vld [vmem:[%s2695_s26 + $0x24] sm:$0xff]  ;;  %v703_v50 = vld [vmem:[%s2695_s26 + $0x30] sm:$0xff]  ;;  %p768_p9 = scmp.ge.s32.totalorder %s767_s21, %s3227_s7  ;;  %p688_p10 = scmp.ge.s32.totalorder %s689_s29, %s3227_s7 }
  0x98   : >> { %700 = vst [vmem:[%s2691_s23 + $0x10] sm:$0xff] %v699_v48  ;;  %v705_v51 = vld [vmem:[%s2695_s26 + $0x3c] sm:$0xff]  ;;  %702 = vst [vmem:[%s2691_s23 + $0x18] sm:$0xff] %v701_v49  ;;  %v707_v52 = vld [vmem:[%s2695_s26 + $0x48] sm:$0xff] }
  0x99   : >> { %704 = vst [vmem:[%s2691_s23 + $0x20] sm:$0xff] %v703_v50  ;;  %706 = vst [vmem:[%s2691_s23 + $0x28] sm:$0xff] %v705_v51  ;;  %v709_v53 = vld [vmem:[%s2695_s26 + $0x54] sm:$0xff]  ;;  %v711_v54 = vld [vmem:[%s2695_s26 + $0x60] sm:$0xff]  ;;  %s4217_s21 = smov (%p768_p9, %s767_s21), 0 }
  0x9a   : >> { %708 = vst [vmem:[%s2691_s23 + $0x30] sm:$0xff] %v707_v52  ;;  %710 = vst [vmem:[%s2691_s23 + $0x38] sm:$0xff] %v709_v53  ;;  %v713_v55 = vld [vmem:[%s2695_s26 + $0x6c] sm:$0xff]  ;;  %v715_v56 = vld [vmem:[%s2695_s26 + $0x78] sm:$0xff]  ;;  %s2026_s25 = sshll.u32 %s4217_s21, 3  ;;  %s4190_s27 = smov %s4217_s21 }
  0x9b   : >> { %712 = vst [vmem:[%s2691_s23 + $0x40] sm:$0xff] %v711_v54  ;;  %v717_v57 = vld [vmem:[%s2695_s26 + $0x84] sm:$0xff]  ;;  %714 = vst [vmem:[%s2691_s23 + $0x48] sm:$0xff] %v713_v55  ;;  %v719_v58 = vld [vmem:[%s2695_s26 + $0x90] sm:$0xff]  ;;  %s3301_s8 = scalar_lea.vmem %s3231_s18, %s2026_s25   ;;  %s3304_s10 = scalar_lea.vmem %s3234_s9, %s2026_s25 [#allocation2]  }
  0x9c   : >> { %716 = vst [vmem:[%s2691_s23 + $0x50] sm:$0xff] %v715_v56  ;;  %718 = vst [vmem:[%s2691_s23 + $0x58] sm:$0xff] %v717_v57  ;;  %v721_v59 = vld [vmem:[%s2695_s26 + $0x9c] sm:$0xff]  ;;  %v723_v60 = vld [vmem:[%s2695_s26 + $0xa8] sm:$0xff] }
  0x9d   : >> { %720 = vst [vmem:[%s2691_s23 + $0x60] sm:$0xff] %v719_v58  ;;  %722 = vst [vmem:[%s2691_s23 + $0x68] sm:$0xff] %v721_v59  ;;  %v725_v61 = vld [vmem:[%s2695_s26 + $0xb4] sm:$0xff]  ;;  %v727_v62 = vld [vmem:[%s2695_s26 + $0xc0] sm:$0xff] }
  0x9e   : >> { %724 = vst [vmem:[%s2691_s23 + $0x70] sm:$0xff] %v723_v60  ;;  %v729_v63 = vld [vmem:[%s2695_s26 + $0xcc] sm:$0xff]  ;;  %726 = vst [vmem:[%s2691_s23 + $0x78] sm:$0xff] %v725_v61  ;;  %v731_v0 = vld [vmem:[%s2695_s26 + $0xd8] sm:$0xff] }
  0x9f   : >> { %728 = vst [vmem:[%s2691_s23 + $0x80] sm:$0xff] %v727_v62  ;;  %730 = vst [vmem:[%s2691_s23 + $0x88] sm:$0xff] %v729_v63  ;;  %v733_v1 = vld [vmem:[%s2695_s26 + $0xe4] sm:$0xff]  ;;  %v735_v2 = vld [vmem:[%s2695_s26 + $0xf0] sm:$0xff] }
  0xa0   : >> { %732 = vst [vmem:[%s2691_s23 + $0x90] sm:$0xff] %v731_v0  ;;  %734 = vst [vmem:[%s2691_s23 + $0x98] sm:$0xff] %v733_v1  ;;  %v737_v3 = vld [vmem:[%s2695_s26 + $0xfc] sm:$0xff]  ;;  %v739_v4 = vld [vmem:[%s2695_s26 + $0x108] sm:$0xff] }
  0xa1   : >> { %736 = vst [vmem:[%s2691_s23 + $0xa0] sm:$0xff] %v735_v2  ;;  %v741_v5 = vld [vmem:[%s2695_s26 + $0x114] sm:$0xff]  ;;  %738 = vst [vmem:[%s2691_s23 + $0xa8] sm:$0xff] %v737_v3  ;;  %v743_v6 = vld [vmem:[%s2695_s26 + $0x120] sm:$0xff] }
  0xa2   : >> { %740 = vst [vmem:[%s2691_s23 + $0xb0] sm:$0xff] %v739_v4  ;;  %742 = vst [vmem:[%s2691_s23 + $0xb8] sm:$0xff] %v741_v5  ;;  %v745_v7 = vld [vmem:[%s2695_s26 + $0x12c] sm:$0xff]  ;;  %v747_v8 = vld [vmem:[%s2695_s26 + $0x138] sm:$0xff]  ;;  %691 = sbr.rel (!%p688_p10) target bundleno = 150 (0x96), region = 268 }
  0xa3   : >> { %744 = vst [vmem:[%s2691_s23 + $0xc0] sm:$0xff] %v743_v6  ;;  %746 = vst [vmem:[%s2691_s23 + $0xc8] sm:$0xff] %v745_v7  ;;  %v749_v9 = vld [vmem:[%s2695_s26 + $0x144] sm:$0xff]  ;;  %v751_v10 = vld [vmem:[%s2695_s26 + $0x150] sm:$0xff] }
  0xa4   : >> { %748 = vst [vmem:[%s2691_s23 + $0xd0] sm:$0xff] %v747_v8  ;;  %v753_v11 = vld [vmem:[%s2695_s26 + $0x15c] sm:$0xff]  ;;  %750 = vst [vmem:[%s2691_s23 + $0xd8] sm:$0xff] %v749_v9  ;;  %v755_v12 = vld [vmem:[%s2695_s26 + $0x168] sm:$0xff] }
  0xa5   : >> { %752 = vst [vmem:[%s2691_s23 + $0xe0] sm:$0xff] %v751_v10  ;;  %754 = vst [vmem:[%s2691_s23 + $0xe8] sm:$0xff] %v753_v11  ;;  %v757_v13 = vld [vmem:[%s2695_s26 + $0x174] sm:$0xff]  ;;  %v759_v14 = vld [vmem:[%s2695_s26 + $0x180] sm:$0xff] }
  0xa6   : >> { %756 = vst [vmem:[%s2691_s23 + $0xf0] sm:$0xff] %v755_v12  ;;  %758 = vst [vmem:[%s2691_s23 + $0xf8] sm:$0xff] %v757_v13  ;;  %v761_v15 = vld [vmem:[%s2695_s26 + $0x18c] sm:$0xff]  ;;  %v763_v16 = vld [vmem:[%s2695_s26 + $0x198] sm:$0xff] }
  0xa7   : >> { %760 = vst [vmem:[%s2691_s23 + $0x100] sm:$0xff] %v759_v14  ;;  %v765_v17 = vld [vmem:[%s2695_s26 + $0x1a4] sm:$0xff]  ;;  %762 = vst [vmem:[%s2691_s23 + $0x108] sm:$0xff] %v761_v15  ;;  %s4189_s26 = smov %s3301_s8 }
  0xa8   : >> { %764 = vst [vmem:[%s2691_s23 + $0x110] sm:$0xff] %v763_v16  ;;  %766 = vst [vmem:[%s2691_s23 + $0x118] sm:$0xff] %v765_v17  ;;  %s4188_s23 = smov %s3304_s10 }
  0xa9 PF: > { %s2769_s6 = smov 0  }
  0xaa   : > { %s3353_s11 = sshllo.u32 %s2769_s6, %s2844_s5 }
  0xab   : > { %v783_v18 = vld [vmem:[%s3101_s22] sm:%s3353_s11]  ;;  %v785_v19 = vld [vmem:[%s3101_s22 + $0xc] sm:%s3353_s11] }
  0xac   : > { %784 = vst [vmem:[%s3104_s24] sm:%s3353_s11] %v783_v18  ;;  %786 = vst [vmem:[%s3104_s24 + $0x8] sm:%s3353_s11] %v785_v19 }
  0xad   : > { %v787_v20 = vld [vmem:[%s3101_s22 + $0x18] sm:%s3353_s11]  ;;  %v789_v21 = vld [vmem:[%s3101_s22 + $0x24] sm:%s3353_s11] }
  0xae   : > { %788 = vst [vmem:[%s3104_s24 + $0x10] sm:%s3353_s11] %v787_v20  ;;  %790 = vst [vmem:[%s3104_s24 + $0x18] sm:%s3353_s11] %v789_v21 }
  0xaf   : > { %v791_v22 = vld [vmem:[%s3101_s22 + $0x30] sm:%s3353_s11]  ;;  %v793_v23 = vld [vmem:[%s3101_s22 + $0x3c] sm:%s3353_s11] }
  0xb0   : > { %792 = vst [vmem:[%s3104_s24 + $0x20] sm:%s3353_s11] %v791_v22  ;;  %794 = vst [vmem:[%s3104_s24 + $0x28] sm:%s3353_s11] %v793_v23 }
  0xb1   : > { %v795_v24 = vld [vmem:[%s3101_s22 + $0x48] sm:%s3353_s11]  ;;  %v797_v25 = vld [vmem:[%s3101_s22 + $0x54] sm:%s3353_s11] }
  0xb2   : > { %796 = vst [vmem:[%s3104_s24 + $0x30] sm:%s3353_s11] %v795_v24  ;;  %798 = vst [vmem:[%s3104_s24 + $0x38] sm:%s3353_s11] %v797_v25 }
  0xb3   : > { %v799_v26 = vld [vmem:[%s3101_s22 + $0x60] sm:%s3353_s11]  ;;  %v801_v27 = vld [vmem:[%s3101_s22 + $0x6c] sm:%s3353_s11] }
  0xb4   : > { %800 = vst [vmem:[%s3104_s24 + $0x40] sm:%s3353_s11] %v799_v26  ;;  %802 = vst [vmem:[%s3104_s24 + $0x48] sm:%s3353_s11] %v801_v27 }
  0xb5   : > { %v803_v28 = vld [vmem:[%s3101_s22 + $0x78] sm:%s3353_s11]  ;;  %v805_v29 = vld [vmem:[%s3101_s22 + $0x84] sm:%s3353_s11] }
  0xb6   : > { %804 = vst [vmem:[%s3104_s24 + $0x50] sm:%s3353_s11] %v803_v28  ;;  %806 = vst [vmem:[%s3104_s24 + $0x58] sm:%s3353_s11] %v805_v29 }
  0xb7   : > { %v807_v30 = vld [vmem:[%s3101_s22 + $0x90] sm:%s3353_s11]  ;;  %v809_v31 = vld [vmem:[%s3101_s22 + $0x9c] sm:%s3353_s11] }
  0xb8   : > { %808 = vst [vmem:[%s3104_s24 + $0x60] sm:%s3353_s11] %v807_v30  ;;  %810 = vst [vmem:[%s3104_s24 + $0x68] sm:%s3353_s11] %v809_v31 }
  0xb9   : > { %v811_v32 = vld [vmem:[%s3101_s22 + $0xa8] sm:%s3353_s11]  ;;  %v813_v33 = vld [vmem:[%s3101_s22 + $0xb4] sm:%s3353_s11] }
  0xba   : > { %812 = vst [vmem:[%s3104_s24 + $0x70] sm:%s3353_s11] %v811_v32  ;;  %814 = vst [vmem:[%s3104_s24 + $0x78] sm:%s3353_s11] %v813_v33 }
  0xbb   : > { %v815_v34 = vld [vmem:[%s3101_s22 + $0xc0] sm:%s3353_s11]  ;;  %v817_v35 = vld [vmem:[%s3101_s22 + $0xcc] sm:%s3353_s11] }
  0xbc   : > { %816 = vst [vmem:[%s3104_s24 + $0x80] sm:%s3353_s11] %v815_v34  ;;  %818 = vst [vmem:[%s3104_s24 + $0x88] sm:%s3353_s11] %v817_v35 }
  0xbd   : > { %v819_v36 = vld [vmem:[%s3101_s22 + $0xd8] sm:%s3353_s11]  ;;  %v821_v37 = vld [vmem:[%s3101_s22 + $0xe4] sm:%s3353_s11] }
  0xbe   : > { %820 = vst [vmem:[%s3104_s24 + $0x90] sm:%s3353_s11] %v819_v36  ;;  %822 = vst [vmem:[%s3104_s24 + $0x98] sm:%s3353_s11] %v821_v37 }
  0xbf   : > { %v823_v38 = vld [vmem:[%s3101_s22 + $0xf0] sm:%s3353_s11]  ;;  %v825_v39 = vld [vmem:[%s3101_s22 + $0xfc] sm:%s3353_s11] }
  0xc0   : > { %824 = vst [vmem:[%s3104_s24 + $0xa0] sm:%s3353_s11] %v823_v38  ;;  %826 = vst [vmem:[%s3104_s24 + $0xa8] sm:%s3353_s11] %v825_v39 }
  0xc1   : > { %v827_v40 = vld [vmem:[%s3101_s22 + $0x108] sm:%s3353_s11]  ;;  %v829_v41 = vld [vmem:[%s3101_s22 + $0x114] sm:%s3353_s11] }
  0xc2   : > { %828 = vst [vmem:[%s3104_s24 + $0xb0] sm:%s3353_s11] %v827_v40  ;;  %830 = vst [vmem:[%s3104_s24 + $0xb8] sm:%s3353_s11] %v829_v41 }
  0xc3   : > { %v831_v42 = vld [vmem:[%s3101_s22 + $0x120] sm:%s3353_s11]  ;;  %v833_v43 = vld [vmem:[%s3101_s22 + $0x12c] sm:%s3353_s11] }
  0xc4   : > { %832 = vst [vmem:[%s3104_s24 + $0xc0] sm:%s3353_s11] %v831_v42  ;;  %834 = vst [vmem:[%s3104_s24 + $0xc8] sm:%s3353_s11] %v833_v43 }
  0xc5   : > { %v835_v44 = vld [vmem:[%s3101_s22 + $0x138] sm:%s3353_s11]  ;;  %v837_v45 = vld [vmem:[%s3101_s22 + $0x144] sm:%s3353_s11] }
  0xc6   : > { %836 = vst [vmem:[%s3104_s24 + $0xd0] sm:%s3353_s11] %v835_v44  ;;  %838 = vst [vmem:[%s3104_s24 + $0xd8] sm:%s3353_s11] %v837_v45 }
  0xc7   : > { %v839_v46 = vld [vmem:[%s3101_s22 + $0x150] sm:%s3353_s11]  ;;  %v841_v47 = vld [vmem:[%s3101_s22 + $0x15c] sm:%s3353_s11] }
  0xc8   : > { %840 = vst [vmem:[%s3104_s24 + $0xe0] sm:%s3353_s11] %v839_v46  ;;  %842 = vst [vmem:[%s3104_s24 + $0xe8] sm:%s3353_s11] %v841_v47 }
  0xc9   : > { %v843_v48 = vld [vmem:[%s3101_s22 + $0x168] sm:%s3353_s11]  ;;  %v845_v49 = vld [vmem:[%s3101_s22 + $0x174] sm:%s3353_s11] }
  0xca   : > { %844 = vst [vmem:[%s3104_s24 + $0xf0] sm:%s3353_s11] %v843_v48  ;;  %846 = vst [vmem:[%s3104_s24 + $0xf8] sm:%s3353_s11] %v845_v49 }
  0xcb   : > { %v847_v50 = vld [vmem:[%s3101_s22 + $0x180] sm:%s3353_s11]  ;;  %v849_v51 = vld [vmem:[%s3101_s22 + $0x18c] sm:%s3353_s11] }
  0xcc   : > { %848 = vst [vmem:[%s3104_s24 + $0x100] sm:%s3353_s11] %v847_v50  ;;  %850 = vst [vmem:[%s3104_s24 + $0x108] sm:%s3353_s11] %v849_v51 }
  0xcd   : > { %v851_v52 = vld [vmem:[%s3101_s22 + $0x198] sm:%s3353_s11]  ;;  %v853_v53 = vld [vmem:[%s3101_s22 + $0x1a4] sm:%s3353_s11] }
  0xce   : > { %852 = vst [vmem:[%s3104_s24 + $0x110] sm:%s3353_s11] %v851_v52  ;;  %854 = vst [vmem:[%s3104_s24 + $0x118] sm:%s3353_s11] %v853_v53 }
  0xcf PF: > { %p2028_p11 = scmp.ge.u32.totalorder %s2838_s30, 8 }
  0xd0   : > { %s2770_s5 = smov (!%p2028_p11), 0  }
  0xd1   : > { %153 = sbr.rel (%p2028_p11) target bundleno = 246 (0xf6), region = 40  ;;  %s3501_s22 = sshllo.u32 (!%p2028_p11), %s2770_s5, %s2838_s30 }
  0xd2   : > { %v163_v54 = vld [vmem:[%s2836_s28] sm:%s3501_s22] (!%p2028_p11)  ;;  %v165_v55 = vld [vmem:[%s2836_s28 + $0xc] sm:%s3501_s22] (!%p2028_p11) }
  0xd3   : > { %164 = vst [vmem:[%s2840_s4] sm:%s3501_s22] (!%p2028_p11), %v163_v54  ;;  %166 = vst [vmem:[%s2840_s4 + $0x8] sm:%s3501_s22] (!%p2028_p11), %v165_v55 }
  0xd4   : > { %v167_v56 = vld [vmem:[%s2836_s28 + $0x18] sm:%s3501_s22] (!%p2028_p11)  ;;  %v169_v57 = vld [vmem:[%s2836_s28 + $0x24] sm:%s3501_s22] (!%p2028_p11) }
  0xd5   : > { %168 = vst [vmem:[%s2840_s4 + $0x10] sm:%s3501_s22] (!%p2028_p11), %v167_v56  ;;  %170 = vst [vmem:[%s2840_s4 + $0x18] sm:%s3501_s22] (!%p2028_p11), %v169_v57 }
  0xd6   : > { %v171_v58 = vld [vmem:[%s2836_s28 + $0x30] sm:%s3501_s22] (!%p2028_p11)  ;;  %v173_v59 = vld [vmem:[%s2836_s28 + $0x3c] sm:%s3501_s22] (!%p2028_p11) }
  0xd7   : > { %172 = vst [vmem:[%s2840_s4 + $0x20] sm:%s3501_s22] (!%p2028_p11), %v171_v58  ;;  %174 = vst [vmem:[%s2840_s4 + $0x28] sm:%s3501_s22] (!%p2028_p11), %v173_v59 }
  0xd8   : > { %v175_v60 = vld [vmem:[%s2836_s28 + $0x48] sm:%s3501_s22]  ;;  %v177_v61 = vld [vmem:[%s2836_s28 + $0x54] sm:%s3501_s22] }
  0xd9   : > { %176 = vst [vmem:[%s2840_s4 + $0x30] sm:%s3501_s22] %v175_v60  ;;  %178 = vst [vmem:[%s2840_s4 + $0x38] sm:%s3501_s22] %v177_v61 }
  0xda   : > { %v179_v62 = vld [vmem:[%s2836_s28 + $0x60] sm:%s3501_s22]  ;;  %v181_v63 = vld [vmem:[%s2836_s28 + $0x6c] sm:%s3501_s22] }
  0xdb   : > { %180 = vst [vmem:[%s2840_s4 + $0x40] sm:%s3501_s22] %v179_v62  ;;  %182 = vst [vmem:[%s2840_s4 + $0x48] sm:%s3501_s22] %v181_v63 }
  0xdc   : > { %v183_v0 = vld [vmem:[%s2836_s28 + $0x78] sm:%s3501_s22]  ;;  %v185_v1 = vld [vmem:[%s2836_s28 + $0x84] sm:%s3501_s22] }
  0xdd   : > { %184 = vst [vmem:[%s2840_s4 + $0x50] sm:%s3501_s22] %v183_v0  ;;  %186 = vst [vmem:[%s2840_s4 + $0x58] sm:%s3501_s22] %v185_v1 }
  0xde   : > { %v187_v2 = vld [vmem:[%s2836_s28 + $0x90] sm:%s3501_s22]  ;;  %v189_v3 = vld [vmem:[%s2836_s28 + $0x9c] sm:%s3501_s22] }
  0xdf   : > { %188 = vst [vmem:[%s2840_s4 + $0x60] sm:%s3501_s22] %v187_v2  ;;  %190 = vst [vmem:[%s2840_s4 + $0x68] sm:%s3501_s22] %v189_v3 }
  0xe0   : > { %v191_v4 = vld [vmem:[%s2836_s28 + $0xa8] sm:%s3501_s22]  ;;  %v193_v5 = vld [vmem:[%s2836_s28 + $0xb4] sm:%s3501_s22] }
  0xe1   : > { %192 = vst [vmem:[%s2840_s4 + $0x70] sm:%s3501_s22] %v191_v4  ;;  %194 = vst [vmem:[%s2840_s4 + $0x78] sm:%s3501_s22] %v193_v5 }
  0xe2   : > { %v195_v6 = vld [vmem:[%s2836_s28 + $0xc0] sm:%s3501_s22]  ;;  %v197_v7 = vld [vmem:[%s2836_s28 + $0xcc] sm:%s3501_s22] }
  0xe3   : > { %196 = vst [vmem:[%s2840_s4 + $0x80] sm:%s3501_s22] %v195_v6  ;;  %198 = vst [vmem:[%s2840_s4 + $0x88] sm:%s3501_s22] %v197_v7 }
  0xe4   : > { %v199_v8 = vld [vmem:[%s2836_s28 + $0xd8] sm:%s3501_s22]  ;;  %v201_v9 = vld [vmem:[%s2836_s28 + $0xe4] sm:%s3501_s22] }
  0xe5   : > { %200 = vst [vmem:[%s2840_s4 + $0x90] sm:%s3501_s22] %v199_v8  ;;  %202 = vst [vmem:[%s2840_s4 + $0x98] sm:%s3501_s22] %v201_v9 }
  0xe6   : > { %v203_v10 = vld [vmem:[%s2836_s28 + $0xf0] sm:%s3501_s22]  ;;  %v205_v11 = vld [vmem:[%s2836_s28 + $0xfc] sm:%s3501_s22] }
  0xe7   : > { %204 = vst [vmem:[%s2840_s4 + $0xa0] sm:%s3501_s22] %v203_v10  ;;  %206 = vst [vmem:[%s2840_s4 + $0xa8] sm:%s3501_s22] %v205_v11 }
  0xe8   : > { %v207_v12 = vld [vmem:[%s2836_s28 + $0x108] sm:%s3501_s22]  ;;  %v209_v13 = vld [vmem:[%s2836_s28 + $0x114] sm:%s3501_s22] }
  0xe9   : > { %208 = vst [vmem:[%s2840_s4 + $0xb0] sm:%s3501_s22] %v207_v12  ;;  %210 = vst [vmem:[%s2840_s4 + $0xb8] sm:%s3501_s22] %v209_v13 }
  0xea   : > { %v211_v14 = vld [vmem:[%s2836_s28 + $0x120] sm:%s3501_s22]  ;;  %v213_v15 = vld [vmem:[%s2836_s28 + $0x12c] sm:%s3501_s22] }
  0xeb   : > { %212 = vst [vmem:[%s2840_s4 + $0xc0] sm:%s3501_s22] %v211_v14  ;;  %214 = vst [vmem:[%s2840_s4 + $0xc8] sm:%s3501_s22] %v213_v15 }
  0xec   : > { %v215_v16 = vld [vmem:[%s2836_s28 + $0x138] sm:%s3501_s22]  ;;  %v217_v17 = vld [vmem:[%s2836_s28 + $0x144] sm:%s3501_s22] }
  0xed   : > { %216 = vst [vmem:[%s2840_s4 + $0xd0] sm:%s3501_s22] %v215_v16  ;;  %218 = vst [vmem:[%s2840_s4 + $0xd8] sm:%s3501_s22] %v217_v17 }
  0xee   : > { %v219_v18 = vld [vmem:[%s2836_s28 + $0x150] sm:%s3501_s22]  ;;  %v221_v19 = vld [vmem:[%s2836_s28 + $0x15c] sm:%s3501_s22] }
  0xef   : > { %220 = vst [vmem:[%s2840_s4 + $0xe0] sm:%s3501_s22] %v219_v18  ;;  %222 = vst [vmem:[%s2840_s4 + $0xe8] sm:%s3501_s22] %v221_v19 }
  0xf0   : > { %v223_v20 = vld [vmem:[%s2836_s28 + $0x168] sm:%s3501_s22]  ;;  %v225_v21 = vld [vmem:[%s2836_s28 + $0x174] sm:%s3501_s22] }
  0xf1   : > { %224 = vst [vmem:[%s2840_s4 + $0xf0] sm:%s3501_s22] %v223_v20  ;;  %226 = vst [vmem:[%s2840_s4 + $0xf8] sm:%s3501_s22] %v225_v21 }
  0xf2   : > { %v227_v22 = vld [vmem:[%s2836_s28 + $0x180] sm:%s3501_s22]  ;;  %v229_v23 = vld [vmem:[%s2836_s28 + $0x18c] sm:%s3501_s22] }
  0xf3   : > { %228 = vst [vmem:[%s2840_s4 + $0x100] sm:%s3501_s22] %v227_v22  ;;  %230 = vst [vmem:[%s2840_s4 + $0x108] sm:%s3501_s22] %v229_v23 }
  0xf4   : > { %v231_v24 = vld [vmem:[%s2836_s28 + $0x198] sm:%s3501_s22]  ;;  %v233_v25 = vld [vmem:[%s2836_s28 + $0x1a4] sm:%s3501_s22] }
  0xf5   : > { %232 = vst [vmem:[%s2840_s4 + $0x110] sm:%s3501_s22] %v231_v24  ;;  %234 = vst [vmem:[%s2840_s4 + $0x118] sm:%s3501_s22] %v233_v25 }
  0xf6 PF: > { %p2029_p12 = scmp.ge.s32.totalorder %s2639_s14, 1  ;;  %p857_p13 = scmp.lt.s32.totalorder %s2639_s14, 3 }
  0xf8   : > { %p858_p0 = pnand %p2029_p12, %p857_p13 }
  0xf9   : > { %s864_s30 = sand.u32 (!%p858_p0), 1, %s2631_s12   ;;  %v2771_v26 = vmov (!%p858_p0), 0   ;;  %v2483_v27 = vld [vmem:[%s4166_s0 + $0x4] ss:$12 sps:$4 sm:$0xff] (!%p858_p0)   ;;  %v2484_v47 = vld [vmem:[%s4166_s0 + $0x8] ss:$12 sps:$4 sm:$0xff] (!%p858_p0)  }
  0xfa   : > { %861 = sbr.rel (%p858_p0) target bundleno = 719 (0x2cf), region = 94  ;;  %1267 = vmatprep.mubr.bf16.mxu0 (!%p858_p0), %v2771_v26  ;;  %2425 = vset.pattern.permute.xlu0 (!%p858_p0), %v2771_v26  ;;  %v941_v48 = vld [vmem:[%s4168_s2] sm:$0xff] (!%p858_p0)  ;;  %v943_v49 = vld [vmem:[%s4168_s2 + $0x10] sm:$0xff] (!%p858_p0)  ;;  %vm1175_vm0 = vcmask (!%p858_p0), 261120   ;;  %v942_v51 = vld [vmem:[%s4168_s2 + $0x8] sm:$0xff] (!%p858_p0)  ;;  %s2030_s7 = sshll.u32 (!%p858_p0), %s864_s30, 5 }
  0xfb   : > { %s2139_s24 = smul.u32 (!%p858_p0), 288, %s864_s30  ;;  %2426 = vset.pattern.permute.xlu1 (!%p858_p0), %v2771_v26  ;;  %1214 = vmatprep.mubr.bf16.mxu1 (!%p858_p0), %v2483_v27  ;;  %v944_v53 = vld [vmem:[%s4168_s2 + $0x18] sm:$0xff] (!%p858_p0)  ;;  %v2487_v56 = vld [vmem:[%s4166_s0 + $0x20] ss:$12 sps:$4 sm:$0xff] (!%p858_p0)   ;;  %s3724_s12 = scalar_lea.vmem (!%p858_p0), [#allocation3], %s2030_s7  }
  0xfc   : > { %947 = vperm.xlu0 (!%p858_p0), %2425, %v941_v48   ;;  %957 = vperm.xlu1 (!%p858_p0), %2426, %v943_v49   ;;  %v2481_v6 = vld [vmem:[%s4166_s0] ss:$12 sps:$4 sm:$0xff] (!%p858_p0)   ;;  %v2485_v7 = vld [vmem:[%s4166_s0 + $0x1c] ss:$12 sps:$4 sm:$0xff] (!%p858_p0)   ;;  %v2488_v8 = vld [vmem:[%s4166_s0 + $0x18] ss:$12 sps:$4 sm:$0xff] (!%p858_p0)  }
  0xfd   : > { %s3655_s4 = scalar_lea.vmem (!%p858_p0), [#allocation2], %s2139_s24 }
  0xfe   : > { %v2427_v28 = vld [vmem:[%s3655_s4 + $0x4] ss:$8 sps:$4 sm:$0xff] (!%p858_p0)   ;;  %v2429_v29 = vld [vmem:[%s3655_s4] ss:$8 sps:$4 sm:$0xff] (!%p858_p0)   ;;  %v2430_v30 = vld [vmem:[%s3655_s4 + $0x14] ss:$8 sps:$4 sm:$0xff] (!%p858_p0)  }
  0xff   : > { %1182 = vmatprep.subr.bf16.mxu1 (!%p858_p0), %v2427_v28  ;;  %v2432_v31 = vld [vmem:[%s3655_s4 + $0x10] ss:$8 sps:$4 sm:$0xff] (!%p858_p0)   ;;  %v2433_v32 = vld [vmem:[%s3655_s4 + $0x24] ss:$8 sps:$4 sm:$0xff] (!%p858_p0)   ;;  %v2435_v33 = vld [vmem:[%s3655_s4 + $0x20] ss:$8 sps:$4 sm:$0xff] (!%p858_p0)  }
 0x100   : > { %1183 = vmatpush1.bf16.msra.mxu1 (!%p858_p0), %v2429_v29  ;;  %v2436_v34 = vld [vmem:[%s3655_s4 + $0x34] ss:$8 sps:$4 sm:$0xff] (!%p858_p0)   ;;  %v2438_v35 = vld [vmem:[%s3655_s4 + $0x30] ss:$8 sps:$4 sm:$0xff] (!%p858_p0)   ;;  %v2439_v36 = vld [vmem:[%s3655_s4 + $0x44] ss:$8 sps:$4 sm:$0xff] (!%p858_p0)   ;;  %952 = vperm.xlu0 (!%p858_p0), %2425, %v942_v51  }
 0x101   : > { %1184 = vmatprep.subr.bf16.mxu1 %v2430_v30  ;;  %v2441_v37 = vld [vmem:[%s3655_s4 + $0x40] ss:$8 sps:$4 sm:$0xff]   ;;  %v2442_v38 = vld [vmem:[%s3655_s4 + $0x54] ss:$8 sps:$4 sm:$0xff]   ;;  %v2444_v39 = vld [vmem:[%s3655_s4 + $0x50] ss:$8 sps:$4 sm:$0xff]   ;;  %962 = vperm.xlu1 %2426, %v944_v53  }
 0x102   : > { %v2469_v40 = vld [vmem:[%s3655_s4 + $0x104] ss:$8 sps:$4 sm:$0xff]   ;;  %v2473_v42 = vld [vmem:[%s3655_s4 + $0x100] ss:$8 sps:$4 sm:$0xff]   ;;  %v2475_v43 = vld [vmem:[%s3655_s4 + $0x114] ss:$8 sps:$4 sm:$0xff]  }
 0x103   : > { %v2445_v41 = vld [vmem:[%s3655_s4 + $0x64] ss:$8 sps:$4 sm:$0xff]   ;;  %1235 = vmatprep.subr.bf16.mxu0 %v2469_v40  ;;  %v2447_v44 = vld [vmem:[%s3655_s4 + $0x60] ss:$8 sps:$4 sm:$0xff]   ;;  %v2479_v45 = vld [vmem:[%s3655_s4 + $0x110] ss:$8 sps:$4 sm:$0xff]  }
 0x104   : > { %1185 = vmatpush1.bf16.msra.mxu1 %v2432_v31  ;;  %1236 = vmatpush1.bf16.msra.mxu0 %v2473_v42  ;;  %v2448_v46 = vld [vmem:[%s3655_s4 + $0x74] ss:$8 sps:$4 sm:$0xff]   ;;  %v2450_v50 = vld [vmem:[%s3655_s4 + $0x70] ss:$8 sps:$4 sm:$0xff]   ;;  %v2451_v52 = vld [vmem:[%s3655_s4 + $0x84] ss:$8 sps:$4 sm:$0xff]  }
 0x105   : > { %1186 = vmatprep.subr.bf16.mxu1 %v2433_v32  ;;  %1237 = vmatprep.subr.bf16.mxu0 %v2475_v43  ;;  %v2453_v54 = vld [vmem:[%s3655_s4 + $0x80] ss:$8 sps:$4 sm:$0xff]   ;;  %v2454_v55 = vld [vmem:[%s3655_s4 + $0x94] ss:$8 sps:$4 sm:$0xff]   ;;  %v2456_v57 = vld [vmem:[%s3655_s4 + $0x90] ss:$8 sps:$4 sm:$0xff]  }
 0x106   : > { %v2457_v58 = vld [vmem:[%s3655_s4 + $0xa4] ss:$8 sps:$4 sm:$0xff]   ;;  %v2459_v59 = vld [vmem:[%s3655_s4 + $0xa0] ss:$8 sps:$4 sm:$0xff]   ;;  %v2460_v60 = vld [vmem:[%s3655_s4 + $0xb4] ss:$8 sps:$4 sm:$0xff]  }
 0x107   : > { %v2462_v61 = vld [vmem:[%s3655_s4 + $0xb0] ss:$8 sps:$4 sm:$0xff]   ;;  %v2463_v62 = vld [vmem:[%s3655_s4 + $0xc4] ss:$8 sps:$4 sm:$0xff]   ;;  %v2465_v63 = vld [vmem:[%s3655_s4 + $0xc0] ss:$8 sps:$4 sm:$0xff]  }
 0x108   : > { %1187 = vmatpush1.bf16.msra.mxu1 %v2435_v33  ;;  %1238 = vmatpush1.bf16.msra.mxu0 %v2479_v45  ;;  %v2466_v0 = vld [vmem:[%s3655_s4 + $0xd4] ss:$8 sps:$4 sm:$0xff]   ;;  %v2468_v1 = vld [vmem:[%s3655_s4 + $0xd0] ss:$8 sps:$4 sm:$0xff]   ;;  %v2471_v2 = vld [vmem:[%s3655_s4 + $0xe4] ss:$8 sps:$4 sm:$0xff]  }
 0x109   : > { %1188 = vmatprep.subr.bf16.mxu1 %v2436_v34  ;;  %v2474_v3 = vld [vmem:[%s3655_s4 + $0xe0] ss:$8 sps:$4 sm:$0xff]   ;;  %v2477_v4 = vld [vmem:[%s3655_s4 + $0xf4] ss:$8 sps:$4 sm:$0xff]   ;;  %v2480_v5 = vld [vmem:[%s3655_s4 + $0xf0] ss:$8 sps:$4 sm:$0xff]  }
 0x10a   : > { %s2080_s30 = sshll.u32 (%p2825_p5), %s2810_s15, 1  ;;  %s2117_s4 = sshll.u32 (%p2825_p5), %s2810_s15, 3 }
 0x10b   : > { %2073 = vmatmul.mubr.msk.bf16.vlgmr.msra.gmra.mrb[0].mxu0 %vm1175_vm0, %v2484_v47  ;;  %s1348_s14 = ssub.s32 (%p2825_p5), 3, %s2080_s30  ;;  %s3737_s9 = scalar_lea.vmem (%p2825_p5), %s4169_s3, %s2117_s4  }
 0x10c   : > { %1189 = vmatpush1.bf16.msra.mxu1 %v2438_v35  ;;  %1277 = vmatprep.mubr.bf16.mxu0 %v2771_v26  ;;  %p1349_p1 = scmp.lt.s32.totalorder (%p2825_p5), %s1348_s14, 2 }
 0x10d   : > { %1190 = vmatprep.subr.bf16.mxu1 %v2439_v36 }
 0x110   : > { %1191 = vmatpush1.bf16.msra.mxu1 %v2441_v37 }
 0x111   : > { %1192 = vmatprep.subr.bf16.mxu1 %v2442_v38 }
 0x113   : > { %2074 = vmatmul.mubr.msk.bf16.gmra.mrb[4].mxu0 %vm1175_vm0, %v2487_v56 }
 0x114   : > { %1193 = vmatpush1.bf16.msra.mxu1 %v2444_v39 }
 0x115   : > { %1194 = vmatprep.subr.bf16.mxu1 %v2445_v41 }
 0x118   : > { %1195 = vmatpush1.bf16.msra.mxu1 %v2447_v44 }
 0x119   : > { %1196 = vmatprep.subr.bf16.mxu1 %v2448_v46 }
 0x11c   : > { %1197 = vmatpush1.bf16.msra.mxu1 %v2450_v50 }
 0x11d   : > { %1198 = vmatprep.subr.bf16.mxu1 %v2451_v52 }
 0x120   : > { %1199 = vmatpush1.bf16.msra.mxu1 %v2453_v54 }
 0x121   : > { %1200 = vmatprep.subr.bf16.mxu1 %v2454_v55 }
 0x124   : > { %1201 = vmatpush1.bf16.msra.mxu1 %v2456_v57 }
 0x125   : > { %1202 = vmatprep.subr.bf16.mxu1 %v2457_v58 }
 0x128   : > { %1203 = vmatpush1.bf16.msra.mxu1 %v2459_v59 }
 0x129   : > { %1204 = vmatprep.subr.bf16.mxu1 %v2460_v60 }
 0x12c   : > { %1205 = vmatpush1.bf16.msra.mxu1 %v2462_v61 }
 0x12d   : > { %1206 = vmatprep.subr.bf16.mxu1 %v2463_v62 }
 0x130   : > { %1207 = vmatpush1.bf16.msra.mxu1 %v2465_v63 }
 0x131   : > { %1208 = vmatprep.subr.bf16.mxu1 %v2466_v0 }
 0x134   : > { %1209 = vmatpush1.bf16.msra.mxu1 %v2468_v1 }
 0x135   : > { %1210 = vmatprep.subr.bf16.mxu1 %v2471_v2 }
 0x138   : > { %1211 = vmatpush1.bf16.msra.mxu1 %v2474_v3 }
 0x139   : > { %1212 = vmatprep.subr.bf16.mxu1 %v2477_v4 }
 0x13c   : > { %1213 = vmatpush1.bf16.msra.mxu1 %v2480_v5 }
 0x13f   : > { %1215 = vmatmul.mubr.bf16.vlgmr.msra.gmra.mrb[0].mxu1 %v2481_v6 }
 0x140   : > { %1224 = vmatprep.mubr.bf16.mxu1 %v2485_v7 }
 0x147   : > { %1225 = vmatmul.mubr.bf16.gmra.mrb[4].mxu1 %v2488_v8 }
 0x17b   : > { %v948_v17 = vpop.permute.xlu0 %947  ;;  %v958_v28 = vpop.permute.xlu1 %957 }
 0x17f   : > { %v953_v19 = vpop.permute.xlu0 %952 }
 0x180   : > { %v963_v44 = vpop.permute.xlu1 %962 }
 0x1de   : > { %v1269_v9 = vpop.f32.mrb[0].mxu0 }
 0x1df   : > { %v1271_v10 = vpop.f32.mrb[1].mxu0 }
 0x1e0   : > { %v1273_v11 = vpop.f32.mrb[2].mxu0 }
 0x1e1   : > { %v1275_v12 = vpop.f32.mrb[3].mxu0 }
 0x1e6   : > { %v1279_v13 = vpop.f32.mrb[4].mxu0 }
 0x1e7   : > { %v1281_v14 = vpop.f32.mrb[5].mxu0 }
 0x1e8   : > { %v1283_v15 = vpop.f32.mrb[6].mxu0 }
 0x1e9   : > { %v1285_v16 = vpop.f32.mrb[7].mxu0 }
 0x212   : > { %v1216_v18 = vpop.f32.mrb[0].mxu1 }
 0x213   : > { %v1217_v20 = vadd.f32 %v1216_v18, %v948_v17  ;;  %v1218_v21 = vpop.f32.mrb[1].mxu1 }
 0x214   : > { %v1219_v22 = vadd.f32 %v1218_v21, %v948_v17  ;;  %v1220_v23 = vpop.f32.mrb[2].mxu1 }
 0x215   : > { %v1270_v24 = vadd.f32 %v1269_v9, %v1217_v20  ;;  %v1221_v25 = vadd.f32 %v1220_v23, %v953_v19  ;;  %v1222_v26 = vpop.f32.mrb[3].mxu1 }
 0x216   : > { %v1272_v27 = vadd.f32 %v1271_v10, %v1219_v22  ;;  %v1223_v29 = vadd.f32 %v1222_v26, %v953_v19 }
 0x217   : > { %vm1288_vm1 = vcmp.ge.f32.partialorder %v1270_v24, 0.0  ;;  %v1296_v30 = vmul.f32 0.2, %v1270_v24  ;;  %v1274_v31 = vadd.f32 %v1273_v11, %v1221_v25 }
 0x218   : > { %vm1289_vm2 = vcmp.ge.f32.partialorder %v1272_v27, 0.0  ;;  %v1297_v32 = vmul.f32 0.2, %v1272_v27  ;;  %v1276_v33 = vadd.f32 %v1275_v12, %v1223_v29 }
 0x219   : > { %v1304_v34 = vsel %vm1288_vm1, %v1270_v24, %v1296_v30  ;;  %vm1290_vm3 = vcmp.ge.f32.partialorder %v1274_v31, 0.0  ;;  %v1298_v35 = vmul.f32 0.2, %v1274_v31 }
 0x21a   : > { %v1305_v36 = vsel %vm1289_vm2, %v1272_v27, %v1297_v32  ;;  %vm1291_vm4 = vcmp.ge.f32.partialorder %v1276_v33, 0.0  ;;  %v1299_v37 = vmul.f32 0.2, %v1276_v33  ;;  %v1226_v38 = vpop.f32.mrb[4].mxu1 }
 0x21b   : > { %v2113_v39 = vpack.c.bf16 %v1305_v36, %v1304_v34  ;;  %v1306_v40 = vsel %vm1290_vm3, %v1274_v31, %v1298_v35  ;;  %v1227_v41 = vadd.f32 %v1226_v38, %v958_v28  ;;  %v1228_v42 = vpop.f32.mrb[5].mxu1 }
 0x21c   : > { %v1307_v43 = vsel %vm1291_vm4, %v1276_v33, %v1299_v37  ;;  %v1229_v45 = vadd.f32 %v1228_v42, %v958_v28  ;;  %v1230_v46 = vpop.f32.mrb[6].mxu1 }
 0x21d   : > { %1336 = vst [vmem:[%s3724_s12] sm:$0xff] %v2113_v39  ;;  %v2114_v47 = vpack.c.bf16 %v1307_v43, %v1306_v40  ;;  %v1280_v48 = vadd.f32 %v1279_v13, %v1227_v41  ;;  %v1231_v49 = vadd.f32 %v1230_v46, %v963_v44  ;;  %v1232_v50 = vpop.f32.mrb[7].mxu1 }
 0x21e   : > { %v1282_v51 = vadd.f32 %v1281_v14, %v1229_v45  ;;  %v1233_v52 = vadd.f32 %v1232_v50, %v963_v44 }
 0x21f   : > { %1337 = vst [vmem:[%s3724_s12 + $0x8] sm:$0xff] %v2114_v47  ;;  %vm1292_vm5 = vcmp.ge.f32.partialorder %v1280_v48, 0.0  ;;  %v1300_v53 = vmul.f32 0.2, %v1280_v48  ;;  %v1284_v54 = vadd.f32 %v1283_v15, %v1231_v49 }
 0x220   : > { %vm1293_vm6 = vcmp.ge.f32.partialorder %v1282_v51, 0.0  ;;  %v1301_v55 = vmul.f32 0.2, %v1282_v51  ;;  %v1286_v56 = vadd.f32 %v1285_v16, %v1233_v52 }
 0x221   : > { %v1308_v57 = vsel %vm1292_vm5, %v1280_v48, %v1300_v53  ;;  %vm1294_vm7 = vcmp.ge.f32.partialorder %v1284_v54, 0.0  ;;  %v1302_v58 = vmul.f32 0.2, %v1284_v54  ;;  %1346 = sbr.rel (!%p2825_p5) target bundleno = 719 (0x2cf), region = 102 }
 0x222   : > { %v1309_v59 = vsel %vm1293_vm6, %v1282_v51, %v1301_v55  ;;  %vm1295_vm8 = vcmp.ge.f32.partialorder %v1286_v56, 0.0  ;;  %v1303_v60 = vmul.f32 0.2, %v1286_v56 }
 0x223   : > { %v2115_v61 = vpack.c.bf16 %v1309_v59, %v1308_v57  ;;  %v1310_v62 = vsel %vm1294_vm7, %v1284_v54, %v1302_v58 }
 0x224   : > { %v1311_v63 = vsel %vm1295_vm8, %v1286_v56, %v1303_v60 }
 0x225   : > { %1338 = vst [vmem:[%s3724_s12 + $0x10] sm:$0xff] %v2115_v61  ;;  %v2116_v0 = vpack.c.bf16 %v1311_v63, %v1310_v62 }
 0x227   : > { %1339 = vst [vmem:[%s3724_s12 + $0x18] sm:$0xff] %v2116_v0 }
 0x228   : > { %s4219_s14 = smov (!%p1349_p1, %s1348_s14), 2 }
 0x229   : > { %s2081_s23 = sshll.u32 %s4219_s14, 8  ;;  %s3739_s26 = sshll.u32 %s4219_s14, 2 }
 0x22a   : > { %p2085_p2 = scmp.eq.s32.totalorder %s2081_s23, 0 }
 0x22b   : > { %p1359_p3 = scmp.lt.u32.totalorder (!%p2085_p2), %s3739_s26, 8 }
 0x22c   : > { %1358 = sbr.rel (%p2085_p2) target bundleno = 719 (0x2cf), region = 106 }
 0x233   : > { %1362 = sbr.rel (%p1359_p3) target bundleno = 710 (0x2c6), region = 110  ;;  %s3743_s20 = sand.u32 (!%p1359_p3), 7, %s3739_s26  }
 0x234   : > { %p1384_p5 = scmp.eq.s32.totalorder (!%p1359_p3), %s3743_s20, 0  ;;  %p2086_p4 = scmp.ne.s32.totalorder (!%p1359_p3), %s3743_s20, 0 }
 0x23a   : > { %1387 = sbr.rel (%p2086_p4) target bundleno = 637 (0x27d), region = 125  ;;  %s1388_s15 = sshrl.u32 (!%p2086_p4), %s3739_s26, 3 }
 0x23b   : > { %s3750_s27 = sshrl.u32 (!%p2086_p4), %s1388_s15, 4 }
 0x23c   : > { %p2087_p6 = scmp.le.s32.totalorder (!%p2086_p4), %s3750_s27, 0 }
 0x241   : > { %1929 = sbr.rel (%p2087_p6) target bundleno = 617 (0x269), region = 273  ;;  %s4191_s29 = smov (!%p2087_p6), %s3737_s9 }
 0x242   : > { %s4192_s21 = smov (!%p2087_p6), %s3724_s12  ;;  %s3759_s25 = smov (!%p2087_p6), 0  }
 0x243   : > { %s3761_s8 = smov (!%p2087_p6), 0  }
 0x248 LB: >> { %v1407_v1 = vld [vmem:[%s2711_s21 + $0x18] sm:$0xff]  ;;  %v1409_v2 = vld [vmem:[%s2711_s21 + $0x20] sm:$0xff]  ;;  %v1411_v3 = vld [vmem:[%s2711_s21 + $0x28] sm:$0xff]  ;;  %s1529_s10 = sadd.s32 1, %s2715_s25  ;;  %s1395_s8 = sadd.s32 1, %s2719_s8   ;;  %s2719_s8 = sphi %s3761_s8, %s1395_s8   ;;  %s2715_s25 = sphi %s3759_s25, %s4194_s25   ;;  %s2711_s21 = sphi %s4192_s21, %s1534_s21   ;;  %s2707_s29 = sphi %s4191_s29, %s1535_s29  }
 0x249   : >> { %1408 = vst [vmem:[%s2707_s29 + $0x18] sm:$0xff] %v1407_v1  ;;  %1410 = vst [vmem:[%s2707_s29 + $0x20] sm:$0xff] %v1409_v2  ;;  %v1413_v4 = vld [vmem:[%s2711_s21 + $0x30] sm:$0xff]  ;;  %v1415_v5 = vld [vmem:[%s2711_s21 + $0x38] sm:$0xff]  ;;  %p3815_p7 = scmp.ge.s32.totalorder %s1529_s10, %s3750_s27  ;;  %p1394_p8 = scmp.ge.s32.totalorder %s1395_s8, %s3750_s27 }
 0x24a   : >> { %1412 = vst [vmem:[%s2707_s29 + $0x28] sm:$0xff] %v1411_v3  ;;  %v1417_v6 = vld [vmem:[%s2711_s21 + $0x40] sm:$0xff]  ;;  %1414 = vst [vmem:[%s2707_s29 + $0x30] sm:$0xff] %v1413_v4  ;;  %v3788_v7 = vld [vmem:[%s2711_s21 + $0x48] sm:$0xff] }
 0x24b   : >> { %1416 = vst [vmem:[%s2707_s29 + $0x38] sm:$0xff] %v1415_v5  ;;  %1418 = vst [vmem:[%s2707_s29 + $0x40] sm:$0xff] %v1417_v6  ;;  %v3791_v8 = vld [vmem:[%s2711_s21 + $0x50] sm:$0xff]  ;;  %v3794_v9 = vld [vmem:[%s2711_s21 + $0x58] sm:$0xff]  ;;  %s4221_s10 = smov (%p3815_p7, %s1529_s10), 0 }
 0x24c   : >> { %1438 = vst [vmem:[%s2707_s29 + $0x1c] sm:$0xff] %v1407_v1  ;;  %1440 = vst [vmem:[%s2707_s29 + $0x24] sm:$0xff] %v1409_v2  ;;  %v1425_v10 = vld [vmem:[%s2711_s21 + $0x60] sm:$0xff]  ;;  %v1427_v11 = vld [vmem:[%s2711_s21 + $0x68] sm:$0xff]  ;;  %s2088_s11 = sshll.u32 %s4221_s10, 7  ;;  %s4194_s25 = smov %s4221_s10 }
 0x24d   : >> { %1420 = vst [vmem:[%s2707_s29 + $0x48] sm:$0xff] %v3788_v7  ;;  %1422 = vst [vmem:[%s2707_s29 + $0x50] sm:$0xff] %v3791_v8  ;;  %v1429_v12 = vld [vmem:[%s2711_s21 + $0x70] sm:$0xff]  ;;  %v1431_v13 = vld [vmem:[%s2711_s21 + $0x78] sm:$0xff] }
 0x24e   : >> { %1424 = vst [vmem:[%s2707_s29 + $0x58] sm:$0xff] %v3794_v9  ;;  %1442 = vst [vmem:[%s2707_s29 + $0x2c] sm:$0xff] %v1411_v3  ;;  %v1405_v14 = vld [vmem:[%s2711_s21 + $0x10] sm:$0xff]  ;;  %v1463_v15 = vld [vmem:[%s2711_s21 + $0x80] sm:$0xff] }
 0x24f   : >> { %1444 = vst [vmem:[%s2707_s29 + $0x34] sm:$0xff] %v1413_v4  ;;  %1446 = vst [vmem:[%s2707_s29 + $0x3c] sm:$0xff] %v1415_v5  ;;  %v1403_v16 = vld [vmem:[%s2711_s21 + $0x8] sm:$0xff]  ;;  %v1401_v18 = vld [vmem:[%s2711_s21] sm:$0xff] }
 0x250   : >> { %1468 = vst [vmem:[%s2707_s29 + $0x20] sm:$0xff] %v1407_v1  ;;  %1426 = vst [vmem:[%s2707_s29 + $0x60] sm:$0xff] %v1425_v10  ;;  %v1495_v17 = vld [vmem:[%s2711_s21 + $0x88] sm:$0xff]  ;;  %v1527_v19 = vld [vmem:[%s2711_s21 + $0x90] sm:$0xff]  ;;  %s1534_s21 = scalar_lea.vmem %s3724_s12, %s2088_s11 [#allocation3]  }
 0x251   : >> { %1428 = vst [vmem:[%s2707_s29 + $0x68] sm:$0xff] %v1427_v11  ;;  %1430 = vst [vmem:[%s2707_s29 + $0x70] sm:$0xff] %v1429_v12 }
 0x252   : >> { %1448 = vst [vmem:[%s2707_s29 + $0x44] sm:$0xff] %v1417_v6  ;;  %1450 = vst [vmem:[%s2707_s29 + $0x4c] sm:$0xff] %v3788_v7 }
 0x253   : >> { %1452 = vst [vmem:[%s2707_s29 + $0x54] sm:$0xff] %v3791_v8  ;;  %1470 = vst [vmem:[%s2707_s29 + $0x28] sm:$0xff] %v1409_v2 }
 0x254   : >> { %1472 = vst [vmem:[%s2707_s29 + $0x30] sm:$0xff] %v1411_v3  ;;  %1474 = vst [vmem:[%s2707_s29 + $0x38] sm:$0xff] %v1413_v4 }
 0x255   : >> { %1432 = vst [vmem:[%s2707_s29 + $0x78] sm:$0xff] %v1431_v13  ;;  %1406 = vst [vmem:[%s2707_s29 + $0x10] sm:$0xff] %v1405_v14 }
 0x256   : >> { %1454 = vst [vmem:[%s2707_s29 + $0x5c] sm:$0xff] %v3794_v9  ;;  %1456 = vst [vmem:[%s2707_s29 + $0x64] sm:$0xff] %v1425_v10 }
 0x257   : >> { %1458 = vst [vmem:[%s2707_s29 + $0x6c] sm:$0xff] %v1427_v11  ;;  %1464 = vst [vmem:[%s2707_s29 + $0x84] sm:$0xff] %v1463_v15 }
 0x258   : >> { %1476 = vst [vmem:[%s2707_s29 + $0x40] sm:$0xff] %v1415_v5  ;;  %1478 = vst [vmem:[%s2707_s29 + $0x48] sm:$0xff] %v1417_v6 }
 0x259   : >> { %1480 = vst [vmem:[%s2707_s29 + $0x50] sm:$0xff] %v3788_v7  ;;  %1498 = vst [vmem:[%s2707_s29 + $0x24] sm:$0xff] %v1407_v1 }
 0x25a   : >> { %1500 = vst [vmem:[%s2707_s29 + $0x2c] sm:$0xff] %v1409_v2  ;;  %1502 = vst [vmem:[%s2707_s29 + $0x34] sm:$0xff] %v1411_v3 }
 0x25b   : >> { %1460 = vst [vmem:[%s2707_s29 + $0x74] sm:$0xff] %v1429_v12  ;;  %1462 = vst [vmem:[%s2707_s29 + $0x7c] sm:$0xff] %v1431_v13 }
 0x25c   : >> { %1404 = vst [vmem:[%s2707_s29 + $0x8] sm:$0xff] %v1403_v16  ;;  %1436 = vst [vmem:[%s2707_s29 + $0x14] sm:$0xff] %v1405_v14 }
 0x25d   : >> { %1482 = vst [vmem:[%s2707_s29 + $0x58] sm:$0xff] %v3791_v8  ;;  %1484 = vst [vmem:[%s2707_s29 + $0x60] sm:$0xff] %v3794_v9 }
 0x25e   : >> { %1486 = vst [vmem:[%s2707_s29 + $0x68] sm:$0xff] %v1425_v10  ;;  %1494 = vst [vmem:[%s2707_s29 + $0x88] sm:$0xff] %v1463_v15 }
 0x25f   : >> { %1496 = vst [vmem:[%s2707_s29 + $0x90] sm:$0xff] %v1495_v17  ;;  %1402 = vst [vmem:[%s2707_s29] sm:$0xff] %v1401_v18 }
 0x260   : >> { %1504 = vst [vmem:[%s2707_s29 + $0x3c] sm:$0xff] %v1413_v4  ;;  %1506 = vst [vmem:[%s2707_s29 + $0x44] sm:$0xff] %v1415_v5 }
 0x261   : >> { %1508 = vst [vmem:[%s2707_s29 + $0x4c] sm:$0xff] %v1417_v6  ;;  %1488 = vst [vmem:[%s2707_s29 + $0x70] sm:$0xff] %v1427_v11 }
 0x262   : >> { %1490 = vst [vmem:[%s2707_s29 + $0x78] sm:$0xff] %v1429_v12  ;;  %1492 = vst [vmem:[%s2707_s29 + $0x80] sm:$0xff] %v1431_v13  ;;  %1397 = sbr.rel (!%p1394_p8) target bundleno = 584 (0x248), region = 279 }
 0x263   : >> { %1434 = vst [vmem:[%s2707_s29 + $0xc] sm:$0xff] %v1403_v16  ;;  %1466 = vst [vmem:[%s2707_s29 + $0x18] sm:$0xff] %v1405_v14 }
 0x264   : >> { %1510 = vst [vmem:[%s2707_s29 + $0x54] sm:$0xff] %v3788_v7  ;;  %1512 = vst [vmem:[%s2707_s29 + $0x5c] sm:$0xff] %v3791_v8 }
 0x265   : >> { %1514 = vst [vmem:[%s2707_s29 + $0x64] sm:$0xff] %v3794_v9  ;;  %1524 = vst [vmem:[%s2707_s29 + $0x8c] sm:$0xff] %v1463_v15 }
 0x266   : >> { %1526 = vst [vmem:[%s2707_s29 + $0x94] sm:$0xff] %v1495_v17  ;;  %1528 = vst [vmem:[%s2707_s29 + $0x9c] sm:$0xff] %v1527_v19 }
 0x267   : >> { %1516 = vst [vmem:[%s2707_s29 + $0x6c] sm:$0xff] %v1425_v10  ;;  %1518 = vst [vmem:[%s2707_s29 + $0x74] sm:$0xff] %v1427_v11 }
 0x268   : >> { %1520 = vst [vmem:[%s2707_s29 + $0x7c] sm:$0xff] %v1429_v12  ;;  %1522 = vst [vmem:[%s2707_s29 + $0x84] sm:$0xff] %v1431_v13  ;;  %s1535_s29 = scalar_lea.vmem %s3737_s9, %s2088_s11  }
 0x269 PF: > { %s3906_s5 = sand.u32 15, %s1388_s15   ;;  %s2118_s22 = sshll.u32 %s3750_s27, 11 }
 0x26a   : > { %s1540_s24 = sshra.s32 %s2118_s22, 4  ;;  %p2093_p9 = scmp.le.s32.totalorder %s3906_s5, 0 }
 0x26b   : > { %s3910_s28 = scalar_lea.vmem %s3724_s12, %s1540_s24 [#allocation3]   ;;  %s3913_s7 = scalar_lea.vmem %s3737_s9, %s1540_s24  }
 0x26c   : > { %1943 = sbr.rel (%p2093_p9) target bundleno = 637 (0x27d), region = 284  ;;  %s4195_s30 = smov (!%p2093_p9), %s3913_s7 }
 0x26d   : > { %s4196_s4 = smov (!%p2093_p9), %s3910_s28  ;;  %s3922_s14 = smov (!%p2093_p9), 0  }
 0x26e   : > { %s2733_s17 = smov (!%p2093_p9), 0  }
 0x273 LB: >> { %v1556_v20 = vld [vmem:[%s2727_s4] sm:$0xff]  ;;  %v1558_v21 = vld [vmem:[%s2727_s4 + $0x8] sm:$0xff]  ;;  %v1560_v22 = vld [vmem:[%s2727_s4 + $0x10] sm:$0xff]  ;;  %s1564_s18 = sadd.s32 1, %s2731_s14  ;;  %s1550_s17 = sadd.s32 1, %s2735_s17   ;;  %s2735_s17 = sphi %s2733_s17, %s1550_s17   ;;  %s2731_s14 = sphi %s3922_s14, %s4197_s14   ;;  %s2727_s4 = sphi %s4196_s4, %s1569_s4   ;;  %s2723_s30 = sphi %s4195_s30, %s1570_s30  }
 0x274   : >> { %1557 = vst [vmem:[%s2723_s30] sm:$0xff] %v1556_v20  ;;  %1559 = vst [vmem:[%s2723_s30 + $0xc] sm:$0xff] %v1558_v21  ;;  %v1562_v23 = vld [vmem:[%s2727_s4 + $0x18] sm:$0xff]  ;;  %p1565_p10 = scmp.ge.s32.totalorder %s1564_s18, %s3906_s5  ;;  %p1549_p11 = scmp.ge.s32.totalorder %s1550_s17, %s3906_s5 }
 0x275   : >> { %1561 = vst [vmem:[%s2723_s30 + $0x18] sm:$0xff] %v1560_v22  ;;  %1563 = vst [vmem:[%s2723_s30 + $0x24] sm:$0xff] %v1562_v23 }
 0x276   : >> { %s4223_s18 = smov (%p1565_p10, %s1564_s18), 0  ;;  %1552 = sbr.rel (!%p1549_p11) target bundleno = 627 (0x273), region = 290 }
 0x277   : >> { %s2094_s23 = sshll.u32 %s4223_s18, 3  ;;  %s4197_s14 = smov %s4223_s18 }
 0x278   : >> { %s1569_s4 = scalar_lea.vmem %s3910_s28, %s2094_s23 [#allocation3]   ;;  %s1570_s30 = scalar_lea.vmem %s3913_s7, %s2094_s23  }
 0x27d PF: > { %1573 = sbr.rel (%p1384_p5) target bundleno = 710 (0x2c6), region = 143  ;;  %s1575_s15 = ssub.s32 (!%p1384_p5), %s3739_s26, %s3743_s20 }
 0x27e   : > { %s1579_s27 = sshrl.u32 (!%p1384_p5), %s3739_s26, 3  ;;  %s3943_s29 = scalar_lea.vmem (!%p1384_p5), %s3724_s12, %s1575_s15 [#allocation3] }
 0x27f   : > { %s3946_s21 = scalar_lea.vmem (!%p1384_p5), %s3737_s9, %s1575_s15  ;;  %s3950_s25 = sshrl.u32 (!%p1384_p5), %s1579_s27, 4 }
 0x280   : > { %p2096_p12 = scmp.le.s32.totalorder (!%p1384_p5), %s3950_s25, 0 }
 0x284   : > { %1957 = sbr.rel (%p2096_p12) target bundleno = 684 (0x2ac), region = 295  ;;  %s4198_s8 = smov (!%p2096_p12), %s3737_s9 }
 0x285   : > { %s4199_s10 = smov (!%p2096_p12), %s3724_s12  ;;  %s3959_s6 = smov (!%p2096_p12), 0  }
 0x286   : > { %s3961_s11 = smov (!%p2096_p12), 0  }
 0x28b LB: >> { %v1598_v24 = vld [vmem:[%s2743_s10 + $0x18] sm:$0xff]  ;;  %v1600_v25 = vld [vmem:[%s2743_s10 + $0x20] sm:$0xff]  ;;  %v1602_v26 = vld [vmem:[%s2743_s10 + $0x28] sm:$0xff]  ;;  %s1720_s5 = sadd.s32 1, %s2747_s6  ;;  %s1586_s11 = sadd.s32 1, %s2751_s11   ;;  %s2751_s11 = sphi %s3961_s11, %s1586_s11   ;;  %s2747_s6 = sphi %s3959_s6, %s4201_s6   ;;  %s2743_s10 = sphi %s4199_s10, %s1725_s10   ;;  %s2739_s8 = sphi %s4198_s8, %s1726_s8  }
 0x28c   : >> { %1599 = vst [vmem:[%s2739_s8 + $0x18] sm:$0xff] %v1598_v24  ;;  %1601 = vst [vmem:[%s2739_s8 + $0x20] sm:$0xff] %v1600_v25  ;;  %v1604_v27 = vld [vmem:[%s2743_s10 + $0x30] sm:$0xff]  ;;  %v1606_v28 = vld [vmem:[%s2743_s10 + $0x38] sm:$0xff]  ;;  %p4015_p13 = scmp.ge.s32.totalorder %s1720_s5, %s3950_s25  ;;  %p1585_p0 = scmp.ge.s32.totalorder %s1586_s11, %s3950_s25 }
 0x28d   : >> { %1603 = vst [vmem:[%s2739_s8 + $0x28] sm:$0xff] %v1602_v26  ;;  %v1608_v29 = vld [vmem:[%s2743_s10 + $0x40] sm:$0xff]  ;;  %1605 = vst [vmem:[%s2739_s8 + $0x30] sm:$0xff] %v1604_v27  ;;  %v3988_v30 = vld [vmem:[%s2743_s10 + $0x48] sm:$0xff] }
 0x28e   : >> { %1607 = vst [vmem:[%s2739_s8 + $0x38] sm:$0xff] %v1606_v28  ;;  %1609 = vst [vmem:[%s2739_s8 + $0x40] sm:$0xff] %v1608_v29  ;;  %v3991_v31 = vld [vmem:[%s2743_s10 + $0x50] sm:$0xff]  ;;  %v3994_v32 = vld [vmem:[%s2743_s10 + $0x58] sm:$0xff]  ;;  %s4225_s5 = smov (%p4015_p13, %s1720_s5), 0 }
 0x28f   : >> { %1629 = vst [vmem:[%s2739_s8 + $0x1c] sm:$0xff] %v1598_v24  ;;  %1631 = vst [vmem:[%s2739_s8 + $0x24] sm:$0xff] %v1600_v25  ;;  %v1616_v33 = vld [vmem:[%s2743_s10 + $0x60] sm:$0xff]  ;;  %v1618_v34 = vld [vmem:[%s2743_s10 + $0x68] sm:$0xff]  ;;  %s2097_s24 = sshll.u32 %s4225_s5, 7  ;;  %s4201_s6 = smov %s4225_s5 }
 0x290   : >> { %1611 = vst [vmem:[%s2739_s8 + $0x48] sm:$0xff] %v3988_v30  ;;  %1613 = vst [vmem:[%s2739_s8 + $0x50] sm:$0xff] %v3991_v31  ;;  %v1620_v35 = vld [vmem:[%s2743_s10 + $0x70] sm:$0xff]  ;;  %v1622_v36 = vld [vmem:[%s2743_s10 + $0x78] sm:$0xff] }
 0x291   : >> { %1615 = vst [vmem:[%s2739_s8 + $0x58] sm:$0xff] %v3994_v32  ;;  %1633 = vst [vmem:[%s2739_s8 + $0x2c] sm:$0xff] %v1602_v26  ;;  %v1596_v37 = vld [vmem:[%s2743_s10 + $0x10] sm:$0xff]  ;;  %v1654_v38 = vld [vmem:[%s2743_s10 + $0x80] sm:$0xff] }
 0x292   : >> { %1635 = vst [vmem:[%s2739_s8 + $0x34] sm:$0xff] %v1604_v27  ;;  %1637 = vst [vmem:[%s2739_s8 + $0x3c] sm:$0xff] %v1606_v28  ;;  %v1594_v39 = vld [vmem:[%s2743_s10 + $0x8] sm:$0xff]  ;;  %v1592_v41 = vld [vmem:[%s2743_s10] sm:$0xff] }
 0x293   : >> { %1659 = vst [vmem:[%s2739_s8 + $0x20] sm:$0xff] %v1598_v24  ;;  %1617 = vst [vmem:[%s2739_s8 + $0x60] sm:$0xff] %v1616_v33  ;;  %v1686_v40 = vld [vmem:[%s2743_s10 + $0x88] sm:$0xff]  ;;  %v1718_v42 = vld [vmem:[%s2743_s10 + $0x90] sm:$0xff]  ;;  %s1725_s10 = scalar_lea.vmem %s3724_s12, %s2097_s24 [#allocation3]  }
 0x294   : >> { %1619 = vst [vmem:[%s2739_s8 + $0x68] sm:$0xff] %v1618_v34  ;;  %1621 = vst [vmem:[%s2739_s8 + $0x70] sm:$0xff] %v1620_v35 }
 0x295   : >> { %1639 = vst [vmem:[%s2739_s8 + $0x44] sm:$0xff] %v1608_v29  ;;  %1641 = vst [vmem:[%s2739_s8 + $0x4c] sm:$0xff] %v3988_v30 }
 0x296   : >> { %1643 = vst [vmem:[%s2739_s8 + $0x54] sm:$0xff] %v3991_v31  ;;  %1661 = vst [vmem:[%s2739_s8 + $0x28] sm:$0xff] %v1600_v25 }
 0x297   : >> { %1663 = vst [vmem:[%s2739_s8 + $0x30] sm:$0xff] %v1602_v26  ;;  %1665 = vst [vmem:[%s2739_s8 + $0x38] sm:$0xff] %v1604_v27 }
 0x298   : >> { %1623 = vst [vmem:[%s2739_s8 + $0x78] sm:$0xff] %v1622_v36  ;;  %1597 = vst [vmem:[%s2739_s8 + $0x10] sm:$0xff] %v1596_v37 }
 0x299   : >> { %1645 = vst [vmem:[%s2739_s8 + $0x5c] sm:$0xff] %v3994_v32  ;;  %1647 = vst [vmem:[%s2739_s8 + $0x64] sm:$0xff] %v1616_v33 }
 0x29a   : >> { %1649 = vst [vmem:[%s2739_s8 + $0x6c] sm:$0xff] %v1618_v34  ;;  %1655 = vst [vmem:[%s2739_s8 + $0x84] sm:$0xff] %v1654_v38 }
 0x29b   : >> { %1667 = vst [vmem:[%s2739_s8 + $0x40] sm:$0xff] %v1606_v28  ;;  %1669 = vst [vmem:[%s2739_s8 + $0x48] sm:$0xff] %v1608_v29 }
 0x29c   : >> { %1671 = vst [vmem:[%s2739_s8 + $0x50] sm:$0xff] %v3988_v30  ;;  %1689 = vst [vmem:[%s2739_s8 + $0x24] sm:$0xff] %v1598_v24 }
 0x29d   : >> { %1691 = vst [vmem:[%s2739_s8 + $0x2c] sm:$0xff] %v1600_v25  ;;  %1693 = vst [vmem:[%s2739_s8 + $0x34] sm:$0xff] %v1602_v26 }
 0x29e   : >> { %1651 = vst [vmem:[%s2739_s8 + $0x74] sm:$0xff] %v1620_v35  ;;  %1653 = vst [vmem:[%s2739_s8 + $0x7c] sm:$0xff] %v1622_v36 }
 0x29f   : >> { %1595 = vst [vmem:[%s2739_s8 + $0x8] sm:$0xff] %v1594_v39  ;;  %1627 = vst [vmem:[%s2739_s8 + $0x14] sm:$0xff] %v1596_v37 }
 0x2a0   : >> { %1673 = vst [vmem:[%s2739_s8 + $0x58] sm:$0xff] %v3991_v31  ;;  %1675 = vst [vmem:[%s2739_s8 + $0x60] sm:$0xff] %v3994_v32 }
 0x2a1   : >> { %1677 = vst [vmem:[%s2739_s8 + $0x68] sm:$0xff] %v1616_v33  ;;  %1685 = vst [vmem:[%s2739_s8 + $0x88] sm:$0xff] %v1654_v38 }
 0x2a2   : >> { %1687 = vst [vmem:[%s2739_s8 + $0x90] sm:$0xff] %v1686_v40  ;;  %1593 = vst [vmem:[%s2739_s8] sm:$0xff] %v1592_v41 }
 0x2a3   : >> { %1695 = vst [vmem:[%s2739_s8 + $0x3c] sm:$0xff] %v1604_v27  ;;  %1697 = vst [vmem:[%s2739_s8 + $0x44] sm:$0xff] %v1606_v28 }
 0x2a4   : >> { %1699 = vst [vmem:[%s2739_s8 + $0x4c] sm:$0xff] %v1608_v29  ;;  %1679 = vst [vmem:[%s2739_s8 + $0x70] sm:$0xff] %v1618_v34 }
 0x2a5   : >> { %1681 = vst [vmem:[%s2739_s8 + $0x78] sm:$0xff] %v1620_v35  ;;  %1683 = vst [vmem:[%s2739_s8 + $0x80] sm:$0xff] %v1622_v36  ;;  %1588 = sbr.rel (!%p1585_p0) target bundleno = 651 (0x28b), region = 301 }
 0x2a6   : >> { %1625 = vst [vmem:[%s2739_s8 + $0xc] sm:$0xff] %v1594_v39  ;;  %1657 = vst [vmem:[%s2739_s8 + $0x18] sm:$0xff] %v1596_v37 }
 0x2a7   : >> { %1701 = vst [vmem:[%s2739_s8 + $0x54] sm:$0xff] %v3988_v30  ;;  %1703 = vst [vmem:[%s2739_s8 + $0x5c] sm:$0xff] %v3991_v31 }
 0x2a8   : >> { %1705 = vst [vmem:[%s2739_s8 + $0x64] sm:$0xff] %v3994_v32  ;;  %1715 = vst [vmem:[%s2739_s8 + $0x8c] sm:$0xff] %v1654_v38 }
 0x2a9   : >> { %1717 = vst [vmem:[%s2739_s8 + $0x94] sm:$0xff] %v1686_v40  ;;  %1719 = vst [vmem:[%s2739_s8 + $0x9c] sm:$0xff] %v1718_v42 }
 0x2aa   : >> { %1707 = vst [vmem:[%s2739_s8 + $0x6c] sm:$0xff] %v1616_v33  ;;  %1709 = vst [vmem:[%s2739_s8 + $0x74] sm:$0xff] %v1618_v34 }
 0x2ab   : >> { %1711 = vst [vmem:[%s2739_s8 + $0x7c] sm:$0xff] %v1620_v35  ;;  %1713 = vst [vmem:[%s2739_s8 + $0x84] sm:$0xff] %v1622_v36  ;;  %s1726_s8 = scalar_lea.vmem %s3737_s9, %s2097_s24  }
 0x2ac PF: > { %s4106_s28 = sand.u32 15, %s1579_s27   ;;  %s2120_s7 = sshll.u32 %s3950_s25, 11 }
 0x2ad   : > { %s1731_s30 = sshra.s32 %s2120_s7, 4  ;;  %p2102_p1 = scmp.le.s32.totalorder %s4106_s28, 0 }
 0x2ae   : > { %s4110_s4 = scalar_lea.vmem %s3724_s12, %s1731_s30 [#allocation3]   ;;  %s4113_s14 = scalar_lea.vmem %s3737_s9, %s1731_s30  }
 0x2af   : > { %1971 = sbr.rel (%p2102_p1) target bundleno = 704 (0x2c0), region = 306  ;;  %s4202_s17 = smov (!%p2102_p1), %s4113_s14 }
 0x2b0   : > { %s4203_s18 = smov (!%p2102_p1), %s4110_s4  ;;  %s4122_s23 = smov (!%p2102_p1), 0  }
 0x2b1   : > { %s2765_s15 = smov (!%p2102_p1), 0  }
 0x2b6 LB: >> { %v1747_v43 = vld [vmem:[%s2759_s18] sm:$0xff]  ;;  %v1749_v44 = vld [vmem:[%s2759_s18 + $0x8] sm:$0xff]  ;;  %v1751_v45 = vld [vmem:[%s2759_s18 + $0x10] sm:$0xff]  ;;  %s1755_s27 = sadd.s32 1, %s2763_s23  ;;  %s1741_s15 = sadd.s32 1, %s2767_s15   ;;  %s2767_s15 = sphi %s2765_s15, %s1741_s15   ;;  %s2763_s23 = sphi %s4122_s23, %s4204_s23   ;;  %s2759_s18 = sphi %s4203_s18, %s1760_s18   ;;  %s2755_s17 = sphi %s4202_s17, %s1761_s17  }
 0x2b7   : >> { %1748 = vst [vmem:[%s2755_s17] sm:$0xff] %v1747_v43  ;;  %1750 = vst [vmem:[%s2755_s17 + $0xc] sm:$0xff] %v1749_v44  ;;  %v1753_v46 = vld [vmem:[%s2759_s18 + $0x18] sm:$0xff]  ;;  %p1756_p2 = scmp.ge.s32.totalorder %s1755_s27, %s4106_s28  ;;  %p1740_p3 = scmp.ge.s32.totalorder %s1741_s15, %s4106_s28 }
 0x2b8   : >> { %1752 = vst [vmem:[%s2755_s17 + $0x18] sm:$0xff] %v1751_v45  ;;  %1754 = vst [vmem:[%s2755_s17 + $0x24] sm:$0xff] %v1753_v46 }
 0x2b9   : >> { %s4227_s27 = smov (%p1756_p2, %s1755_s27), 0  ;;  %1743 = sbr.rel (!%p1740_p3) target bundleno = 694 (0x2b6), region = 312 }
 0x2ba   : >> { %s2103_s25 = sshll.u32 %s4227_s27, 3  ;;  %s4204_s23 = smov %s4227_s27 }
 0x2bb   : >> { %s1760_s18 = scalar_lea.vmem %s4110_s4, %s2103_s25 [#allocation3]   ;;  %s1761_s17 = scalar_lea.vmem %s4113_s14, %s2103_s25  }
 0x2c0 PF: > { %s2772_s8 = smov 0  }
 0x2c1   : > { %s1762_s10 = sshllo.u32 %s2772_s8, %s3743_s20 }
 0x2c2   : > { %v1771_v47 = vld [vmem:[%s3943_s29] sm:%s1762_s10]  ;;  %v1773_v48 = vld [vmem:[%s3943_s29 + $0x8] sm:%s1762_s10] }
 0x2c3   : > { %1772 = vst [vmem:[%s3946_s21] sm:%s1762_s10] %v1771_v47  ;;  %1774 = vst [vmem:[%s3946_s21 + $0xc] sm:%s1762_s10] %v1773_v48 }
 0x2c4   : > { %v1775_v49 = vld [vmem:[%s3943_s29 + $0x10] sm:%s1762_s10]  ;;  %v1777_v50 = vld [vmem:[%s3943_s29 + $0x18] sm:%s1762_s10] }
 0x2c5   : > { %1776 = vst [vmem:[%s3946_s21 + $0x18] sm:%s1762_s10] %v1775_v49  ;;  %1778 = vst [vmem:[%s3946_s21 + $0x24] sm:%s1762_s10] %v1777_v50 }
 0x2c6 PF: > { %p2105_p5 = scmp.ge.u32.totalorder %s3739_s26, 8 }
 0x2c7   : > { %s2773_s6 = smov (!%p2105_p5), 0  }
 0x2c8   : > { %1365 = sbr.rel (%p2105_p5) target bundleno = 719 (0x2cf), region = 114  ;;  %s1366_s20 = sshllo.u32 (!%p2105_p5), %s2773_s6, %s3739_s26 }
 0x2c9   : > { %v1375_v51 = vld [vmem:[%s3724_s12] sm:%s1366_s20] (!%p2105_p5)  ;;  %v1377_v52 = vld [vmem:[%s3724_s12 + $0x8] sm:%s1366_s20] (!%p2105_p5) }
 0x2ca   : > { %1376 = vst [vmem:[%s3737_s9] sm:%s1366_s20] (!%p2105_p5), %v1375_v51  ;;  %1378 = vst [vmem:[%s3737_s9 + $0xc] sm:%s1366_s20] (!%p2105_p5), %v1377_v52 }
 0x2cb   : > { %v1379_v53 = vld [vmem:[%s3724_s12 + $0x10] sm:%s1366_s20] (!%p2105_p5)  ;;  %v1381_v54 = vld [vmem:[%s3724_s12 + $0x18] sm:%s1366_s20] (!%p2105_p5) }
 0x2cc   : > { %1380 = vst [vmem:[%s3737_s9 + $0x18] sm:%s1366_s20] (!%p2105_p5), %v1379_v53  ;;  %1382 = vst [vmem:[%s3737_s9 + $0x24] sm:%s1366_s20] (!%p2105_p5), %v1381_v54 }
 0x2cf PF: > { %p10_p4 = scmp.ge.s32.totalorder %s2813_s16, 4   ;;  %s4205_s12 = smov %s2635_s13 }
 0x2d0   : > { %s4206_s13 = smov %s2823_s19  ;;  %s4207_s14 = smov %s2813_s16 }
 0x2d1   :  { %12 = sbr.rel (!%p10_p4) target bundleno = 2 (0x2), region = 323 }

// kernel: discriminator_forward.9
= control target key start
LH: loop header
LB: loop body
LE: loop exit
PB: predicated region body
PF: predicated region fallthrough
CT: control target
= control target key end

     0   :  { %v678_v1 = vmov 0   ;;  %vm283_vm0 = vcmask 261120   ;;  %s830_s1 = inlined_call_operand.vmem [shape: bf16[288,72], index: 1, kind: input, shape index: {}]   ;;  %s831_s0 = inlined_call_operand.vmem [shape: bf16[64,288], index: 0, kind: input, shape index: {}]   ;;  %s832_s2 = inlined_call_operand.vmem [shape: f32[64,1], index: 2, kind: input, shape index: {}]   ;;  %s833_s3 = inlined_call_operand.vmem [shape: bf16[64,72], index: 3, kind: output, shape index: {}]  }
   0x1   :  { %v644_v0 = vld [vmem:[%s830_s1 + $0x40] sm:$0xff]   ;;  %643 = vset.pattern.permute.xlu1 %v678_v1  ;;  %642 = vset.pattern.permute.xlu0 %v678_v1  ;;  %v646_v3 = vld [vmem:[%s830_s1 + $0x48] sm:$0xff]   ;;  %v648_v5 = vld [vmem:[%s830_s1 + $0x50] sm:$0xff]  }
   0x2   :  { %v645_v2 = vld [vmem:[%s830_s1] sm:$0xff]   ;;  %567 = vmatprep.subr.bf16.mxu0 %v644_v0  ;;  %625 = vmatprep.subr.bf16.mxu1 %v644_v0  ;;  %v647_v4 = vld [vmem:[%s830_s1 + $0x8] sm:$0xff]   ;;  %v649_v6 = vld [vmem:[%s830_s1 + $0x10] sm:$0xff]  }
   0x3   :  { %568 = vmatpush3.bf16.msra.mxu0 %v645_v2  ;;  %633 = vmatpush3.bf16.msra.mxu1 %v645_v2  ;;  %v650_v7 = vld [vmem:[%s830_s1 + $0x58] sm:$0xff]   ;;  %v652_v9 = vld [vmem:[%s830_s1 + $0x60] sm:$0xff]   ;;  %v654_v11 = vld [vmem:[%s830_s1 + $0x68] sm:$0xff]  }
   0x4   :  { %569 = vmatprep.subr.bf16.mxu0 %v646_v3  ;;  %626 = vmatprep.subr.bf16.mxu1 %v646_v3  ;;  %v651_v8 = vld [vmem:[%s830_s1 + $0x18] sm:$0xff]   ;;  %v653_v10 = vld [vmem:[%s830_s1 + $0x20] sm:$0xff]   ;;  %v655_v14 = vld [vmem:[%s830_s1 + $0x28] sm:$0xff]  }
   0x5   :  { %v662_v12 = vld [vmem:[%s831_s0 + $0x4] ss:$12 sps:$4 sm:$0xff]   ;;  %v665_v13 = vld [vmem:[%s831_s0 + $0x4c] ss:$12 sps:$4 sm:$0xff]   ;;  %v663_v23 = vld [vmem:[%s831_s0 + $0x48] ss:$12 sps:$4 sm:$0xff]  }
   0x6   :  { %v656_v15 = vld [vmem:[%s830_s1 + $0x70] sm:$0xff]   ;;  %328 = vmatprep.mubr.bf16.mxu0 %v662_v12  ;;  %352 = vmatprep.mubr.bf16.mxu1 %v665_v13  ;;  %v658_v17 = vld [vmem:[%s830_s1 + $0x78] sm:$0xff]   ;;  %v67_v20 = vld [vmem:[%s832_s2] sm:$0xff] }
   0x7   :  { %570 = vmatpush3.bf16.msra.mxu0 %v647_v4  ;;  %634 = vmatpush3.bf16.msra.mxu1 %v647_v4  ;;  %v657_v16 = vld [vmem:[%s830_s1 + $0x30] sm:$0xff]   ;;  %v659_v18 = vld [vmem:[%s830_s1 + $0x38] sm:$0xff]   ;;  %v666_v21 = vld [vmem:[%s830_s1 + $0x80] sm:$0xff]  }
   0x8   :  { %571 = vmatprep.subr.bf16.mxu0 %v648_v5  ;;  %627 = vmatprep.subr.bf16.mxu1 %v648_v5  ;;  %v69_v19 = vld [vmem:[%s832_s2 + $0x10] sm:$0xff]  ;;  %v660_v22 = vld [vmem:[%s831_s0] ss:$12 sps:$4 sm:$0xff]   ;;  %v70_v24 = vld [vmem:[%s832_s2 + $0x18] sm:$0xff] }
   0x9   :  { %87 = vperm.xlu1 %643, %v69_v19   ;;  %77 = vperm.xlu0 %642, %v67_v20   ;;  %v68_v25 = vld [vmem:[%s832_s2 + $0x8] sm:$0xff]  ;;  %v71_v30 = vld [vmem:[%s832_s2 + $0x20] sm:$0xff]  ;;  %v74_v33 = vld [vmem:[%s832_s2 + $0x38] sm:$0xff] }
   0xa   :  { %v668_v26 = vld [vmem:[%s831_s0 + $0x1c] ss:$12 sps:$4 sm:$0xff]   ;;  %v671_v31 = vld [vmem:[%s831_s0 + $0x18] ss:$12 sps:$4 sm:$0xff]   ;;  %v672_v32 = vld [vmem:[%s831_s0 + $0x20] ss:$12 sps:$4 sm:$0xff]  }
   0xb   :  { %572 = vmatpush3.bf16.msra.mxu0 %v649_v6  ;;  %635 = vmatpush3.bf16.msra.mxu1 %v649_v6  ;;  %v667_v27 = vld [vmem:[%s830_s1 + $0x88] sm:$0xff]   ;;  %v73_v34 = vld [vmem:[%s832_s2 + $0x30] sm:$0xff]  ;;  %v675_v36 = vld [vmem:[%s831_s0 + $0x38] ss:$12 sps:$4 sm:$0xff]  }
   0xc   :  { %573 = vmatprep.subr.bf16.mxu0 %v650_v7  ;;  %628 = vmatprep.subr.bf16.mxu1 %v650_v7  ;;  %v670_v28 = vld [vmem:[%s831_s0 + $0x8] ss:$12 sps:$4 sm:$0xff]   ;;  %v676_v37 = vld [vmem:[%s831_s0 + $0x30] ss:$12 sps:$4 sm:$0xff]  }
   0xd   :  { %92 = vperm.xlu1 %643, %v70_v24   ;;  %82 = vperm.xlu0 %642, %v68_v25   ;;  %v72_v29 = vld [vmem:[%s832_s2 + $0x28] sm:$0xff]  ;;  %v673_v35 = vld [vmem:[%s831_s0 + $0x34] ss:$12 sps:$4 sm:$0xff]   ;;  %v677_v38 = vld [vmem:[%s831_s0 + $0x50] ss:$12 sps:$4 sm:$0xff]  }
   0xf   :  { %574 = vmatpush3.bf16.msra.mxu0 %v651_v8  ;;  %636 = vmatpush3.bf16.msra.mxu1 %v651_v8 }
  0x10   :  { %575 = vmatprep.subr.bf16.mxu0 %v652_v9  ;;  %629 = vmatprep.subr.bf16.mxu1 %v652_v9 }
  0x11   :  { %102 = vperm.xlu1 %643, %v72_v29   ;;  %97 = vperm.xlu0 %642, %v71_v30  }
  0x13   :  { %576 = vmatpush3.bf16.msra.mxu0 %v653_v10  ;;  %637 = vmatpush3.bf16.msra.mxu1 %v653_v10 }
  0x14   :  { %577 = vmatprep.subr.bf16.mxu0 %v654_v11  ;;  %630 = vmatprep.subr.bf16.mxu1 %v654_v11 }
  0x15   :  { %112 = vperm.xlu1 %643, %v74_v33   ;;  %107 = vperm.xlu0 %642, %v73_v34  }
  0x17   :  { %578 = vmatpush3.bf16.msra.mxu0 %v655_v14  ;;  %638 = vmatpush3.bf16.msra.mxu1 %v655_v14 }
  0x18   :  { %579 = vmatprep.subr.bf16.mxu0 %v656_v15  ;;  %631 = vmatprep.subr.bf16.mxu1 %v656_v15 }
  0x1b   :  { %580 = vmatpush3.bf16.msra.mxu0 %v657_v16  ;;  %639 = vmatpush3.bf16.msra.mxu1 %v657_v16 }
  0x1c   :  { %581 = vmatprep.subr.bf16.mxu0 %v658_v17  ;;  %632 = vmatprep.subr.bf16.mxu1 %v658_v17 }
  0x1f   :  { %582 = vmatpush3.bf16.msra.mxu0 %v659_v18  ;;  %640 = vmatpush3.bf16.msra.mxu1 %v659_v18 }
  0x20   :  { %613 = vmatprep.subr.bf16.mxu1 %v666_v21 }
  0x22   :  { %329 = vmatmul.mubr.bf16.vlgmr.msra.gmra.mrb[0].mxu0 %v660_v22  ;;  %353 = vmatmul.mubr.bf16.vlgmr.msra.gmra.mrb[0].mxu1 %v663_v23 }
  0x23   :  { %614 = vmatpush3.bf16.msra.mxu1 %v666_v21  ;;  %336 = vmatprep.mubr.bf16.mxu0 %v668_v26 }
  0x24   :  { %615 = vmatprep.subr.bf16.mxu1 %v667_v27  ;;  %617 = vmatprep.mubr.msk.bf16.mxu1 %vm283_vm0, %v670_v28 }
  0x27   :  { %616 = vmatpush3.bf16.msra.mxu1 %v667_v27 }
  0x2a   :  { %337 = vmatmul.mubr.bf16.gmra.mrb[4].mxu0 %v671_v31  ;;  %618 = vmatmul.mubr.msk.bf16.vlgmr.msra.gmra.mrb[4].mxu1 %vm283_vm0, %v672_v32 }
  0x2b   :  { %344 = vmatprep.mubr.bf16.mxu0 %v673_v35  ;;  %621 = vmatprep.mubr.msk.bf16.mxu1 %vm283_vm0, %v675_v36 }
  0x32   :  { %345 = vmatmul.mubr.bf16.gmra.mrb[8].mxu0 %v676_v37  ;;  %622 = vmatmul.mubr.msk.bf16.gmra.mrb[8].mxu1 %vm283_vm0, %v677_v38 }
  0x88   :  { %v88_v39 = vpop.permute.xlu1 %87  ;;  %v78_v40 = vpop.permute.xlu0 %77 }
  0x8c   :  { %v93_v41 = vpop.permute.xlu1 %92  ;;  %v83_v42 = vpop.permute.xlu0 %82 }
  0x90   :  { %v98_v55 = vpop.permute.xlu0 %97  ;;  %v103_v56 = vpop.permute.xlu1 %102 }
  0x94   :  { %v108_v5 = vpop.permute.xlu0 %107  ;;  %v113_v8 = vpop.permute.xlu1 %112 }
  0xf5   :  { %v583_v43 = vpop.f32.mrb[0].mxu0  ;;  %v601_v44 = vpop.f32.mrb[0].mxu1 }
  0xf6   :  { %v584_v45 = vpop.f32.mrb[1].mxu0  ;;  %v602_v46 = vpop.f32.mrb[1].mxu1 }
  0xf7   :  { %v585_v47 = vadd.f32 %v584_v45, %v583_v43  ;;  %v586_v48 = vpop.f32.mrb[2].mxu0  ;;  %v603_v49 = vadd.f32 %v602_v46, %v601_v44  ;;  %v604_v50 = vpop.f32.mrb[2].mxu1 }
  0xf8   :  { %v587_v51 = vpop.f32.mrb[3].mxu0  ;;  %v605_v52 = vpop.f32.mrb[3].mxu1 }
  0xf9   :  { %v588_v53 = vadd.f32 %v587_v51, %v586_v48  ;;  %v606_v54 = vadd.f32 %v605_v52, %v604_v50  ;;  %v331_v59 = vadd.f32 %v585_v47, %v78_v40  ;;  %v355_v13 = vadd.f32 %v603_v49, %v108_v5 }
  0xfb   :  { %v334_v3 = vadd.f32 %v588_v53, %v83_v42  ;;  %v358_v15 = vadd.f32 %v606_v54, %v113_v8 }
  0xfd   :  { %v589_v57 = vpop.f32.mrb[4].mxu0  ;;  %v619_v58 = vpop.f32.mrb[4].mxu1 }
  0xfe   :  { %v590_v60 = vpop.f32.mrb[5].mxu0  ;;  %v395_v61 = vpop.f32.mrb[5].mxu1 }
  0xff   :  { %v591_v62 = vadd.f32 %v590_v60, %v589_v57  ;;  %v396_v63 = vadd.f32 %v395_v61, %v331_v59  ;;  %v592_v0 = vpop.f32.mrb[6].mxu0  ;;  %v620_v1 = vpop.f32.mrb[6].mxu1 }
 0x100   :  { %v593_v2 = vpop.f32.mrb[7].mxu0  ;;  %v398_v4 = vpop.f32.mrb[7].mxu1 }
 0x101   :  { %v339_v6 = vadd.f32 %v591_v62, %v88_v39  ;;  %v594_v7 = vadd.f32 %v593_v2, %v592_v0  ;;  %v434_v9 = vmul.f32 0.2, %v396_v63  ;;  %v399_v10 = vadd.f32 %v398_v4, %v334_v3 }
 0x102   :  { %vm426_vm1 = vcmp.ge.f32.partialorder %v396_v63, 0.0 }
 0x103   :  { %v404_v11 = vadd.f32 %v619_v58, %v339_v6  ;;  %v342_v12 = vadd.f32 %v594_v7, %v93_v41  ;;  %vm427_vm2 = vcmp.ge.f32.partialorder %v399_v10, 0.0  ;;  %v435_v14 = vmul.f32 0.2, %v399_v10 }
 0x104   :  { %v442_v20 = vsel %vm426_vm1, %v396_v63, %v434_v9 }
 0x105   :  { %v436_v16 = vmul.f32 0.2, %v404_v11  ;;  %v407_v17 = vadd.f32 %v620_v1, %v342_v12  ;;  %v595_v18 = vpop.f32.mrb[8].mxu0  ;;  %v623_v19 = vpop.f32.mrb[8].mxu1  ;;  %vm428_vm3 = vcmp.ge.f32.partialorder %v404_v11, 0.0  ;;  %v443_v21 = vsel %vm427_vm2, %v399_v10, %v435_v14 }
 0x106   :  { %v420_v22 = vadd.f32 %v623_v19, %v355_v13  ;;  %v596_v23 = vpop.f32.mrb[9].mxu0  ;;  %v411_v24 = vpop.f32.mrb[9].mxu1  ;;  %v547_v26 = vpack.c.bf16 %v443_v21, %v442_v20 }
 0x107   :  { %vm429_vm4 = vcmp.ge.f32.partialorder %v407_v17, 0.0  ;;  %v437_v25 = vmul.f32 0.2, %v407_v17  ;;  %v598_v27 = vpop.f32.mrb[10].mxu0  ;;  %v624_v28 = vpop.f32.mrb[10].mxu1  ;;  %v597_v29 = vadd.f32 %v596_v23, %v595_v18  ;;  %v444_v33 = vsel %vm428_vm3, %v404_v11, %v436_v16 }
 0x108   :  { %v423_v30 = vadd.f32 %v624_v28, %v358_v15  ;;  %v599_v31 = vpop.f32.mrb[11].mxu0  ;;  %v414_v32 = vpop.f32.mrb[11].mxu1  ;;  %548 = vst [vmem:[%s833_s3] sm:$0xff] %v547_v26   ;;  %v440_v35 = vmul.f32 0.2, %v420_v22  ;;  %vm432_vm5 = vcmp.ge.f32.partialorder %v420_v22, 0.0 }
 0x109   :  { %v445_v34 = vsel %vm429_vm4, %v407_v17, %v437_v25  ;;  %v600_v36 = vadd.f32 %v599_v31, %v598_v27  ;;  %v347_v38 = vadd.f32 %v597_v29, %v98_v55 }
 0x10a   :  { %v552_v37 = vpack.c.bf16 %v445_v34, %v444_v33  ;;  %vm433_vm6 = vcmp.ge.f32.partialorder %v423_v30, 0.0  ;;  %v441_v39 = vmul.f32 0.2, %v423_v30  ;;  %v448_v42 = vsel %vm432_vm5, %v420_v22, %v440_v35 }
 0x10b   :  { %v350_v40 = vadd.f32 %v600_v36, %v103_v56  ;;  %v412_v41 = vadd.f32 %v411_v24, %v347_v38 }
 0x10c   :  { %564 = vst [vmem:[%s833_s3 + $0x8] sm:$0xff] %v552_v37   ;;  %v449_v43 = vsel %vm433_vm6, %v423_v30, %v441_v39 }
 0x10d   :  { %v415_v44 = vadd.f32 %v414_v32, %v350_v40  ;;  %vm430_vm7 = vcmp.ge.f32.partialorder %v412_v41, 0.0  ;;  %v438_v45 = vmul.f32 0.2, %v412_v41  ;;  %v562_v46 = vpack.c.bf16 %v449_v43, %v448_v42 }
 0x10f   :  { %vm431_vm8 = vcmp.ge.f32.partialorder %v415_v44, 0.0  ;;  %v439_v47 = vmul.f32 0.2, %v415_v44  ;;  %566 = vst [vmem:[%s833_s3 + $0x18] sm:$0xff] %v562_v46   ;;  %v446_v48 = vsel %vm430_vm7, %v412_v41, %v438_v45 }
 0x111   :  { %v447_v49 = vsel %vm431_vm8, %v415_v44, %v439_v47 }
 0x112   :  { %v557_v50 = vpack.c.bf16 %v447_v49, %v446_v48 }
 0x114   :  { %565 = vst [vmem:[%s833_s3 + $0x10] sm:$0xff] %v557_v50  }

</bundles_post_ra>
